<compile_context>
chip_gen: v5e
topology: v5e:2x2
jax: 0.10.0
libtpu: 0.0.40
codegen_flags: <defaults>
</compile_context>

<pallas_src>
import jax
import jax.numpy as jnp
from jax.experimental import pallas as pl
from jax.experimental.pallas import tpu as pltpu


def _round_up(x, m):
    return (x + m - 1) // m * m


def _silu(x):
    return x * jax.nn.sigmoid(x)


def gcl_kernel(work_nt_ref, work_et_ref, work_valid_ref,              # scalar prefetch (SMEM)
               xedge_ref, rowi_ref, h_ref, flags_ref,
               w1_ref, b1_ref, w2_ref, b2_ref, wa_ref, ba_ref,
               w3h_ref, w3a_ref, b3_ref, w4_ref, b4_ref,
               out_ref, agg_ref):
    f32 = jnp.float32
    t = pl.program_id(0)
    T = pl.num_programs(0)
    tn = agg_ref.shape[0]
    te = rowi_ref.shape[1]
    cdt = w1_ref.dtype                          # MXU-input (compute) dtype

    nt = work_nt_ref[t]                         # node tile handled by this step
    prev_nt = work_nt_ref[jnp.maximum(t - 1, 0)]
    next_nt = work_nt_ref[jnp.minimum(t + 1, T - 1)]
    is_first = jnp.logical_or(t == 0, prev_nt != nt)        # first step of this node tile
    is_last = jnp.logical_or(t == T - 1, next_nt != nt)     # last step of this node tile
    valid = work_valid_ref[t] == 1                           # real (non-padding) edge tile

    @pl.when(is_first)
    def _init():
        agg_ref[...] = jnp.zeros_like(agg_ref)

    @pl.when(valid)
    def _accumulate():
        # ---- msg_mlp: one fused matmul over [h_row | h_col | edge_attr] (K padded) ----
        z1 = jnp.dot(xedge_ref[...], w1_ref[...], preferred_element_type=f32) + b1_ref[...]
        a1 = _silu(z1)
        z2 = jnp.dot(a1.astype(cdt), w2_ref[...], preferred_element_type=f32) + b2_ref[...]
        msg = _silu(z2)                                       # [TE, D] f32

        # ---- att_mlp (output width 1): VPU multiply + cross-lane reduce, not MXU ----
        att = jax.nn.sigmoid(
            jnp.sum(msg * wa_ref[...], axis=-1, keepdims=True) + ba_ref[0, 0])
        msg = msg * att                                       # edge_mask handled via sentinel rows

        # ---- unsorted_segment_sum over `row` ('sum', norm factor 1):
        #      one-hot tile built in-kernel, scatter-add as an MXU matmul.
        #      Sentinel rows (masked/padded edges) match no node id -> excluded. ----
        node_ids = jax.lax.broadcasted_iota(jnp.int32, (tn, te), 0) + nt * tn
        scat = (node_ids == rowi_ref[...]).astype(cdt)        # [TN, TE] 0/1
        # msg cast to compute dtype for the MXU (bf16 path: bf16-rounded operands,
        # f32 accumulation) — documented deviation from the f32 reference.
        agg_ref[...] += jnp.dot(scat, msg.astype(cdt), preferred_element_type=f32)

    # ---- node_mlp + residual + flags on the last work step of this node tile ----
    @pl.when(is_last)
    def _finish():
        h = h_ref[...]                                        # f32: residual stays full precision
        z3 = (jnp.dot(h.astype(cdt), w3h_ref[...], preferred_element_type=f32)
              + jnp.dot(agg_ref[...].astype(cdt), w3a_ref[...],
                        preferred_element_type=f32)
              + b3_ref[...])
        a3 = _silu(z3)
        z4 = jnp.dot(a3.astype(cdt), w4_ref[...], preferred_element_type=f32) + b4_ref[...]
        out_ref[...] = (h + z4) * flags_ref[...]


def _build_schedule(row_sorted, Np, tn, te, ET):
    """CSR-style work list over (node_tile, edge_tile) pairs with actual overlap.

    Returns int32 arrays work_nt / work_et / work_valid of static length
    T = ET + NT (upper bound on total steps; padding steps are marked invalid).
    """
    NT = Np // tn
    bounds = jnp.arange(NT + 1, dtype=jnp.int32) * tn
    splits = jnp.searchsorted(row_sorted, bounds).astype(jnp.int32)   # [NT+1]
    e_start, e_end = splits[:-1], splits[1:]                          # edge range per node tile
    et_lo = jnp.minimum(e_start // te, ET - 1)
    et_hi = jnp.where(e_end > e_start, (e_end + te - 1) // te, et_lo)
    n_tiles = (et_hi - et_lo).astype(jnp.int32)                       # edge tiles per node tile
    w = jnp.maximum(n_tiles, 1)                                       # >=1 step: empty tiles still finalize
    offsets = jnp.concatenate([jnp.zeros((1,), jnp.int32),
                               jnp.cumsum(w, dtype=jnp.int32)])       # [NT+1]

    T = ET + NT                                                       # static upper bound
    steps = jnp.arange(T, dtype=jnp.int32)
    nt = jnp.clip(jnp.searchsorted(offsets, steps, side='right').astype(jnp.int32) - 1,
                  0, NT - 1)
    local = steps - offsets[nt]
    work_et = jnp.clip(et_lo[nt] + local, 0, ET - 1).astype(jnp.int32)
    work_valid = (local < n_tiles[nt]).astype(jnp.int32)              # padding/empty -> 0
    return nt.astype(jnp.int32), work_et, work_valid, T


def gcl_forward(h, edge_index, edge_attr, flags, edge_mask, params,
                *, compute_dtype=jnp.bfloat16, tile_e=256, tile_n=None):
    """GCL forward.  compute_dtype=bf16 (default) keeps f32 accumulation and f32 h
    residual; pass jnp.float32 for a bit-faithful check vs the reference."""
    f32 = jnp.float32
    N, in_dim = h.shape
    E, edge_dim = edge_attr.shape
    out_dim = params['w2'].shape[1]
    assert in_dim == out_dim, "residual h + node_mlp(...) requires in_dim == out_dim"

    # feature dims padded to lane width (128) -> unmasked MXU passes and stores
    D = _round_up(out_dim, 128)
    K = 2 * in_dim + edge_dim
    Kp = _round_up(K, 128)

    tn = tile_n if tile_n is not None else min(256, _round_up(N, 8))
    te = tile_e
    Np = _round_up(N, tn)
    Ep = _round_up(max(E, 1), te)
    NT, ET = Np // tn, Ep // te

    row = edge_index[0].astype(jnp.int32)
    col = edge_index[1].astype(jnp.int32)

    # Fold edge_mask into the scatter row: masked edges get sentinel row Np (never
    # matches any node id), equivalent to multiplying their message by zero.
    row_scat = jnp.where(edge_mask[:, 0] > 0, row, jnp.int32(Np))
    row_scat = jnp.pad(row_scat, (0, Ep - E), constant_values=Np)
    row_gth = jnp.pad(row, (0, Ep - E))
    col_p = jnp.pad(col, (0, Ep - E))
    ea_p = jnp.pad(edge_attr, ((0, Ep - E), (0, 0)))

    # Sort edges by destination row -> per-node-tile edge ranges are contiguous (CSR).
    perm = jnp.argsort(row_scat)
    row_s = row_scat[perm]
    xedge = jnp.concatenate([h[row_gth[perm]], h[col_p[perm]], ea_p[perm]], axis=1)
    xedge = jnp.pad(xedge, ((0, 0), (0, Kp - K))).astype(compute_dtype)    # [Ep, Kp]
    rowi = row_s[None, :].astype(jnp.int32)                                # [1, Ep]

    work_nt, work_et, work_valid, T = _build_schedule(row_s, Np, tn, te, ET)

    h_p = jnp.pad(h, ((0, Np - N), (0, D - in_dim))).astype(f32)           # f32 residual
    flags_p = jnp.pad(flags.astype(f32), ((0, Np - N), (0, 0)))            # [Np, 1]

    # weights: fuse W1 over [h_row|h_col|e_attr], zero-pad, cast MXU operands only
    w1 = jnp.concatenate([params['w1h'], params['w1c'], params['w1e']], axis=0)
    w1 = jnp.pad(w1, ((0, Kp - K), (0, D - out_dim))).astype(compute_dtype)
    b1 = jnp.pad(params['b1'], ((0, 0), (0, D - out_dim)))
    w2 = jnp.pad(params['w2'], ((0, D - out_dim), (0, D - out_dim))).astype(compute_dtype)
    b2 = jnp.pad(params['b2'], ((0, 0), (0, D - out_dim)))
    wa = jnp.pad(params['wa'].T, ((0, 0), (0, D - out_dim)))               # [1, D] f32
    ba = params['ba'].reshape(1, 1).astype(f32)                            # SMEM scalar
    w3h = jnp.pad(params['w3h'], ((0, D - in_dim), (0, D - out_dim))).astype(compute_dtype)
    w3a = jnp.pad(params['w3a'], ((0, D - out_dim), (0, D - out_dim))).astype(compute_dtype)
    b3 = jnp.pad(params['b3'], ((0, 0), (0, D - out_dim)))
    w4 = jnp.pad(params['w4'], ((0, D - out_dim), (0, D - out_dim))).astype(compute_dtype)
    b4 = jnp.pad(params['b4'], ((0, 0), (0, D - out_dim)))

    # index_maps receive the scalar-prefetch refs positionally after the grid index
    edge_map = lambda t, nt_r, et_r, v_r: (et_r[t], 0)
    rowi_map = lambda t, nt_r, et_r, v_r: (0, et_r[t])
    node_map = lambda t, nt_r, et_r, v_r: (nt_r[t], 0)
    const_map = lambda t, nt_r, et_r, v_r: (0, 0)
    res = lambda shp: pl.BlockSpec(shp, const_map)     # resident weight block (keep
    # depth-2 default buffering; consider single-buffering these on v7x if D grows)

    in_specs = [
        pl.BlockSpec((te, Kp), edge_map),              # xedge  (edge stream, streamed once)
        pl.BlockSpec((1, te), rowi_map),               # scatter row indices (int32)
        pl.BlockSpec((tn, D), node_map),               # h (f32)
        pl.BlockSpec((tn, 1), node_map),               # flags
        res((Kp, D)),                                  # w1 (fused)
        res((1, D)),                                   # b1
        res((D, D)),                                   # w2
        res((1, D)),                                   # b2
        res((1, D)),                                   # wa (row vector)
        pl.BlockSpec(memory_space=pltpu.MemorySpace.SMEM),   # ba (true scalar)
        res((D, D)),                                   # w3h
        res((D, D)),                                   # w3a
        res((1, D)),                                   # b3
        res((D, D)),                                   # w4
        res((1, D)),                                   # b4
    ]

    out = pl.pallas_call(
        gcl_kernel,
        out_shape=jax.ShapeDtypeStruct((Np, D), f32),
        grid_spec=pltpu.PrefetchScalarGridSpec(
            num_scalar_prefetch=3,
            grid=(T,),
            in_specs=in_specs,
            out_specs=pl.BlockSpec((tn, D), node_map),
            scratch_shapes=[pltpu.VMEM((tn, D), f32)],     # agg accumulator
        ),
        compiler_params=pltpu.CompilerParams(
            dimension_semantics=("arbitrary",),            # work-list carries the accumulator
            vmem_limit_bytes=64 * 1024 * 1024),            # explicit; within v7x 64 MiB
    )(work_nt, work_et, work_valid,
      xedge, rowi, h_p, flags_p,
      w1, b1, w2, b2, wa, ba, w3h, w3a, b3, w4, b4)

    return out[:N, :out_dim]


def gcl_reference(h, edge_index, edge_attr, flags, edge_mask, params):
    """Pure-JAX reference replicating the PyTorch forward exactly."""
    row, col = edge_index[0], edge_index[1]
    N = h.shape[0]
    msg_in = jnp.concatenate([h[row], h[col], edge_attr], axis=1)
    w1 = jnp.concatenate([params['w1h'], params['w1c'], params['w1e']], axis=0)
    a1 = jax.nn.silu(msg_in @ w1 + params['b1'][0])
    msg = jax.nn.silu(a1 @ params['w2'] + params['b2'][0])
    att = jax.nn.sigmoid(msg @ params['wa'] + params['ba'][0])
    msg = msg * att * edge_mask
    agg = jnp.zeros((N, msg.shape[1]), msg.dtype).at[row].add(msg)
    cat = jnp.concatenate([h, agg], axis=1)
    w3 = jnp.concatenate([params['w3h'], params['w3a']], axis=0)
    a3 = jax.nn.silu(cat @ w3 + params['b3'][0])
    out = h + a3 @ params['w4'] + params['b4'][0]
    return out * flags


def init_params(key, in_dim, out_dim, edge_dim):
    ks = jax.random.split(key, 12)

    def lin(k, fan_in, fan_out):
        s = 1.0 / jnp.sqrt(fan_in)
        return jax.random.uniform(k, (fan_in, fan_out), jnp.float32, -s, s)

    return {
        # msg_mlp layer 1, W split over [h_row | h_col | edge_attr]
        'w1h': lin(ks[0], in_dim, out_dim),
        'w1c': lin(ks[1], in_dim, out_dim),
        'w1e': lin(ks[2], edge_dim, out_dim),
        'b1': jax.random.uniform(ks[3], (1, out_dim), jnp.float32, -0.1, 0.1),
        # msg_mlp layer 2
        'w2': lin(ks[4], out_dim, out_dim),
        'b2': jax.random.uniform(ks[5], (1, out_dim), jnp.float32, -0.1, 0.1),
        # att_mlp
        'wa': lin(ks[6], out_dim, 1),
        'ba': jax.random.uniform(ks[7], (1, 1), jnp.float32, -0.1, 0.1),
        # node_mlp layer 1, W split over [h | agg]
        'w3h': lin(ks[8], in_dim, out_dim),
        'w3a': lin(ks[9], out_dim, out_dim),
        'b3': jax.random.uniform(ks[10], (1, out_dim), jnp.float32, -0.1, 0.1),
        # node_mlp layer 2
        'w4': lin(ks[11], out_dim, out_dim),
        'b4': jnp.zeros((1, out_dim), jnp.float32),
    }


if __name__ == "__main__":
    # small shapes: N nodes, fully connected graph (E = N*N edges)
    N = 8
    in_dim = out_dim = 32   # residual h + node_mlp(...) requires in_dim == out_dim
    edge_dim = 8
    E = N * N

    key = jax.random.PRNGKey(0)
    k_h, k_e, k_f, k_m, k_p = jax.random.split(key, 5)

    h = jax.random.normal(k_h, (N, in_dim), jnp.float32)
    row = jnp.repeat(jnp.arange(N), N)
    col = jnp.tile(jnp.arange(N), N)
    edge_index = jnp.stack([row, col], axis=0)          # [2, E]
    edge_attr = jax.random.normal(k_e, (E, edge_dim), jnp.float32)
    flags = (jax.random.uniform(k_f, (N, 1)) > 0.2).astype(jnp.float32)
    edge_mask = (jax.random.uniform(k_m, (E, 1)) > 0.3).astype(jnp.float32)

    params = init_params(k_p, in_dim, out_dim, edge_dim)

    ref = gcl_reference(h, edge_index, edge_attr, flags, edge_mask, params)

    # f32 MXU-input path: exact (to fp accumulation order) vs reference
    out_f32 = gcl_forward(h, edge_index, edge_attr, flags, edge_mask, params,
                          compute_dtype=jnp.float32)
    out_f32 = jax.block_until_ready(out_f32)
    assert out_f32.shape == (N, out_dim)
    assert jnp.allclose(out_f32, ref, rtol=1e-5, atol=1e-5), "f32 mismatch vs reference"

    # default bf16 MXU-input path (f32 accumulation, f32 residual h): loose tolerance
    out_bf16 = gcl_forward(h, edge_index, edge_attr, flags, edge_mask, params)
    out_bf16 = jax.block_until_ready(out_bf16)
    assert out_bf16.shape == (N, out_dim)
    assert jnp.max(jnp.abs(out_bf16 - ref)) < 0.25, "bf16 path diverged"

    print("KERNEL_OK")
</pallas_src>

<mosaic_0001>
module attributes {stable_mosaic.version = 11 : i64} {
  func.func @gcl_kernel(%arg0: i32, %arg1: memref<2xi32, #tpu.memory_space<smem>>, %arg2: memref<2xi32, #tpu.memory_space<smem>>, %arg3: memref<2xi32, #tpu.memory_space<smem>>, %arg4: memref<256x128xf32, #tpu.memory_space<vmem>>, %arg5: memref<1x256xi32, #tpu.memory_space<vmem>>, %arg6: memref<8x128xf32, #tpu.memory_space<vmem>>, %arg7: memref<8x1xf32, #tpu.memory_space<vmem>>, %arg8: memref<128x128xf32, #tpu.memory_space<vmem>>, %arg9: memref<1x128xf32, #tpu.memory_space<vmem>>, %arg10: memref<128x128xf32, #tpu.memory_space<vmem>>, %arg11: memref<1x128xf32, #tpu.memory_space<vmem>>, %arg12: memref<1x128xf32, #tpu.memory_space<vmem>>, %arg13: memref<1x1xf32, #tpu.memory_space<smem>>, %arg14: memref<128x128xf32, #tpu.memory_space<vmem>>, %arg15: memref<128x128xf32, #tpu.memory_space<vmem>>, %arg16: memref<1x128xf32, #tpu.memory_space<vmem>>, %arg17: memref<128x128xf32, #tpu.memory_space<vmem>>, %arg18: memref<1x128xf32, #tpu.memory_space<vmem>>, %arg19: memref<8x128xf32, #tpu.memory_space<vmem>>, %arg20: memref<8x128xf32, #tpu.memory_space<vmem>>) attributes {dimension_semantics = [#tpu.dimension_semantics<arbitrary>], iteration_bounds = array<i64: 2>, scalar_prefetch = 3 : i64, scratch_operands = 1 : i64, tpu.core_type = #tpu.core_type<tc>, window_params = [{transform_indices = @transform_0, window_bounds = array<i64: 256, 128>}, {transform_indices = @transform_1, window_bounds = array<i64: 1, 256>}, {transform_indices = @transform_2, window_bounds = array<i64: 8, 128>}, {transform_indices = @transform_3, window_bounds = array<i64: 8, 1>}, {pipeline_mode = #tpu.pipeline_mode<synchronous>, transform_indices = @transform_4, window_bounds = array<i64: 128, 128>}, {pipeline_mode = #tpu.pipeline_mode<synchronous>, transform_indices = @transform_5, window_bounds = array<i64: 1, 128>}, {pipeline_mode = #tpu.pipeline_mode<synchronous>, transform_indices = @transform_6, window_bounds = array<i64: 128, 128>}, {pipeline_mode = #tpu.pipeline_mode<synchronous>, transform_indices = @transform_7, window_bounds = array<i64: 1, 128>}, {pipeline_mode = #tpu.pipeline_mode<synchronous>, transform_indices = @transform_8, window_bounds = array<i64: 1, 128>}, {transform_indices = @transform_9, window_bounds = array<i64: 1, 1>}, {pipeline_mode = #tpu.pipeline_mode<synchronous>, transform_indices = @transform_10, window_bounds = array<i64: 128, 128>}, {pipeline_mode = #tpu.pipeline_mode<synchronous>, transform_indices = @transform_11, window_bounds = array<i64: 128, 128>}, {pipeline_mode = #tpu.pipeline_mode<synchronous>, transform_indices = @transform_12, window_bounds = array<i64: 1, 128>}, {pipeline_mode = #tpu.pipeline_mode<synchronous>, transform_indices = @transform_13, window_bounds = array<i64: 128, 128>}, {pipeline_mode = #tpu.pipeline_mode<synchronous>, transform_indices = @transform_14, window_bounds = array<i64: 1, 128>}, {transform_indices = @transform_15, window_bounds = array<i64: 8, 128>}]} {
    %0 = arith.index_cast %arg0 : i32 to index
    %1 = memref.load %arg1[%0] : memref<2xi32, #tpu.memory_space<smem>>
    %c1_i32 = arith.constant 1 : i32
    %2 = arith.subi %arg0, %c1_i32 : i32
    %c0_i32 = arith.constant 0 : i32
    %3 = arith.maxsi %2, %c0_i32 : i32
    %4 = arith.index_cast %3 : i32 to index
    %5 = memref.load %arg1[%4] : memref<2xi32, #tpu.memory_space<smem>>
    %c1_i32_0 = arith.constant 1 : i32
    %6 = arith.addi %arg0, %c1_i32_0 : i32
    %c1_i32_1 = arith.constant 1 : i32
    %7 = arith.minsi %6, %c1_i32_1 : i32
    %8 = arith.index_cast %7 : i32 to index
    %9 = memref.load %arg1[%8] : memref<2xi32, #tpu.memory_space<smem>>
    %c0_i32_2 = arith.constant 0 : i32
    %10 = arith.cmpi eq, %arg0, %c0_i32_2 : i32
    %11 = arith.cmpi ne, %5, %1 : i32
    %12 = arith.ori %10, %11 : i1
    %c1_i32_3 = arith.constant 1 : i32
    %13 = arith.cmpi eq, %arg0, %c1_i32_3 : i32
    %14 = arith.cmpi ne, %9, %1 : i32
    %15 = arith.ori %13, %14 : i1
    %16 = arith.index_cast %arg0 : i32 to index
    %17 = memref.load %arg3[%16] : memref<2xi32, #tpu.memory_space<smem>>
    %c1_i32_4 = arith.constant 1 : i32
    %18 = arith.cmpi eq, %17, %c1_i32_4 : i32
    %19 = arith.extui %12 : i1 to i32
    %c0_i32_5 = arith.constant 0 : i32
    %20 = arith.cmpi ne, %19, %c0_i32_5 : i32
    scf.if %20 {
      %cst = arith.constant 0.000000e+00 : f32
      %25 = vector.broadcast %cst : f32 to vector<8x128xf32>
      %c0 = arith.constant 0 : index
      %c0_8 = arith.constant 0 : index
      %26 = vector.load %arg20[%c0, %c0_8] : memref<8x128xf32, #tpu.memory_space<vmem>>, vector<8x128xf32>
      tpu.vector_store %arg20[%c0, %c0_8], %25 {strides = array<i32>} : memref<8x128xf32, #tpu.memory_space<vmem>>, vector<8x128xf32>,
    } else {
    }
    %21 = arith.extui %18 : i1 to i32
    %c0_i32_6 = arith.constant 0 : i32
    %22 = arith.cmpi ne, %21, %c0_i32_6 : i32
    scf.if %22 {
      %c0 = arith.constant 0 : index
      %c0_8 = arith.constant 0 : index
      %25 = vector.load %arg4[%c0, %c0_8] : memref<256x128xf32, #tpu.memory_space<vmem>>, vector<256x128xf32>
      %c0_9 = arith.constant 0 : index
      %c0_10 = arith.constant 0 : index
      %26 = vector.load %arg8[%c0_9, %c0_10] : memref<128x128xf32, #tpu.memory_space<vmem>>, vector<128x128xf32>
      %cst = arith.constant dense<0.000000e+00> : vector<256x128xf32>
      %27 = tpu.matmul %25, %26, %cst {dimension_numbers = #tpu.dot_dimension_numbers<[1], [0], [0], [1], [0, 0, 1, 1], [], []>} : vector<256x128xf32>, vector<128x128xf32>, vector<256x128xf32> -> vector<256x128xf32>
      %c0_11 = arith.constant 0 : index
      %c0_12 = arith.constant 0 : index
      %28 = vector.load %arg9[%c0_11, %c0_12] : memref<1x128xf32, #tpu.memory_space<vmem>>, vector<1x128xf32>
      %29 = vector.broadcast %28 : vector<1x128xf32> to vector<256x128xf32>
      %30 = arith.addf %27, %29 : vector<256x128xf32>
      %31 = arith.negf %30 : vector<256x128xf32>
      %32 = math.exp %31 : vector<256x128xf32>
      %cst_13 = arith.constant 1.000000e+00 : f32
      %33 = vector.broadcast %cst_13 : f32 to vector<256x128xf32>
      %34 = arith.addf %33, %32 : vector<256x128xf32>
      %35 = arith.divf %33, %34 : vector<256x128xf32>
      %36 = arith.mulf %30, %35 : vector<256x128xf32>
      %c0_14 = arith.constant 0 : index
      %c0_15 = arith.constant 0 : index
      %37 = vector.load %arg10[%c0_14, %c0_15] : memref<128x128xf32, #tpu.memory_space<vmem>>, vector<128x128xf32>
      %cst_16 = arith.constant dense<0.000000e+00> : vector<256x128xf32>
      %38 = tpu.matmul %36, %37, %cst_16 {dimension_numbers = #tpu.dot_dimension_numbers<[1], [0], [0], [1], [0, 0, 1, 1], [], []>} : vector<256x128xf32>, vector<128x128xf32>, vector<256x128xf32> -> vector<256x128xf32>
      %c0_17 = arith.constant 0 : index
      %c0_18 = arith.constant 0 : index
      %39 = vector.load %arg11[%c0_17, %c0_18] : memref<1x128xf32, #tpu.memory_space<vmem>>, vector<1x128xf32>
      %40 = vector.broadcast %39 : vector<1x128xf32> to vector<256x128xf32>
      %41 = arith.addf %38, %40 : vector<256x128xf32>
      %42 = arith.negf %41 : vector<256x128xf32>
      %43 = math.exp %42 : vector<256x128xf32>
      %cst_19 = arith.constant 1.000000e+00 : f32
      %44 = vector.broadcast %cst_19 : f32 to vector<256x128xf32>
      %45 = arith.addf %44, %43 : vector<256x128xf32>
      %46 = arith.divf %44, %45 : vector<256x128xf32>
      %47 = arith.mulf %41, %46 : vector<256x128xf32>
      %c0_20 = arith.constant 0 : index
      %c0_21 = arith.constant 0 : index
      %48 = vector.load %arg12[%c0_20, %c0_21] : memref<1x128xf32, #tpu.memory_space<vmem>>, vector<1x128xf32>
      %49 = vector.broadcast %48 : vector<1x128xf32> to vector<256x128xf32>
      %50 = arith.mulf %47, %49 : vector<256x128xf32>
      %cst_22 = arith.constant dense<0.000000e+00> : vector<256xf32>
      %51 = vector.multi_reduction <add>, %50, %cst_22 [1] : vector<256x128xf32> to vector<256xf32>
      %52 = vector.shape_cast %51 : vector<256xf32> to vector<256x1xf32>
      %c0_23 = arith.constant 0 : index
      %c0_24 = arith.constant 0 : index
      %53 = memref.load %arg13[%c0_23, %c0_24] : memref<1x1xf32, #tpu.memory_space<smem>>
      %54 = vector.broadcast %53 : f32 to vector<256x1xf32>
      %55 = arith.addf %52, %54 : vector<256x1xf32>
      %56 = arith.negf %55 : vector<256x1xf32>
      %57 = math.exp %56 : vector<256x1xf32>
      %cst_25 = arith.constant 1.000000e+00 : f32
      %58 = vector.broadcast %cst_25 : f32 to vector<256x1xf32>
      %59 = arith.addf %58, %57 : vector<256x1xf32>
      %60 = arith.divf %58, %59 : vector<256x1xf32>
      %61 = vector.broadcast %60 : vector<256x1xf32> to vector<256x128xf32>
      %62 = arith.mulf %47, %61 : vector<256x128xf32>
      %63 = tpu.iota {dimensions = array<i32: 0>} : vector<8x256xi32>
      %c8_i32 = arith.constant 8 : i32
      %64 = arith.muli %1, %c8_i32 : i32
      %65 = vector.broadcast %64 : i32 to vector<8x256xi32>
      %66 = arith.addi %63, %65 : vector<8x256xi32>
      %c0_26 = arith.constant 0 : index
      %c0_27 = arith.constant 0 : index
      %67 = vector.load %arg5[%c0_26, %c0_27] : memref<1x256xi32, #tpu.memory_space<vmem>>, vector<1x256xi32>
      %68 = vector.broadcast %67 : vector<1x256xi32> to vector<8x256xi32>
      %69 = arith.cmpi eq, %66, %68 : vector<8x256xi32>
      %70 = arith.extui %69 : vector<8x256xi1> to vector<8x256xi32>
      %71 = arith.sitofp %70 : vector<8x256xi32> to vector<8x256xf32>
      %c0_28 = arith.constant 0 : index
      %c0_29 = arith.constant 0 : index
      %72 = vector.load %arg20[%c0_28, %c0_29] : memref<8x128xf32, #tpu.memory_space<vmem>>, vector<8x128xf32>
      %cst_30 = arith.constant dense<0.000000e+00> : vector<8x128xf32>
      %73 = tpu.matmul %71, %62, %cst_30 {dimension_numbers = #tpu.dot_dimension_numbers<[1], [0], [0], [1], [0, 0, 1, 1], [], []>} : vector<8x256xf32>, vector<256x128xf32>, vector<8x128xf32> -> vector<8x128xf32>
      %74 = arith.addf %72, %73 : vector<8x128xf32>
      %c0_31 = arith.constant 0 : index
      %c0_32 = arith.constant 0 : index
      %75 = vector.load %arg20[%c0_31, %c0_32] : memref<8x128xf32, #tpu.memory_space<vmem>>, vector<8x128xf32>
      tpu.vector_store %arg20[%c0_31, %c0_32], %74 {strides = array<i32>} : memref<8x128xf32, #tpu.memory_space<vmem>>, vector<8x128xf32>,
    } else {
    }
    %23 = arith.extui %15 : i1 to i32
    %c0_i32_7 = arith.constant 0 : i32
    %24 = arith.cmpi ne, %23, %c0_i32_7 : i32
    scf.if %24 {
      %c0 = arith.constant 0 : index
      %c0_8 = arith.constant 0 : index
      %25 = vector.load %arg6[%c0, %c0_8] : memref<8x128xf32, #tpu.memory_space<vmem>>, vector<8x128xf32>
      %c0_9 = arith.constant 0 : index
      %c0_10 = arith.constant 0 : index
      %26 = vector.load %arg14[%c0_9, %c0_10] : memref<128x128xf32, #tpu.memory_space<vmem>>, vector<128x128xf32>
      %cst = arith.constant dense<0.000000e+00> : vector<8x128xf32>
      %27 = tpu.matmul %25, %26, %cst {dimension_numbers = #tpu.dot_dimension_numbers<[1], [0], [0], [1], [0, 0, 1, 1], [], []>} : vector<8x128xf32>, vector<128x128xf32>, vector<8x128xf32> -> vector<8x128xf32>
      %c0_11 = arith.constant 0 : index
      %c0_12 = arith.constant 0 : index
      %28 = vector.load %arg20[%c0_11, %c0_12] : memref<8x128xf32, #tpu.memory_space<vmem>>, vector<8x128xf32>
      %c0_13 = arith.constant 0 : index
      %c0_14 = arith.constant 0 : index
      %29 = vector.load %arg15[%c0_13, %c0_14] : memref<128x128xf32, #tpu.memory_space<vmem>>, vector<128x128xf32>
      %cst_15 = arith.constant dense<0.000000e+00> : vector<8x128xf32>
      %30 = tpu.matmul %28, %29, %cst_15 {dimension_numbers = #tpu.dot_dimension_numbers<[1], [0], [0], [1], [0, 0, 1, 1], [], []>} : vector<8x128xf32>, vector<128x128xf32>, vector<8x128xf32> -> vector<8x128xf32>
      %31 = arith.addf %27, %30 : vector<8x128xf32>
      %c0_16 = arith.constant 0 : index
      %c0_17 = arith.constant 0 : index
      %32 = vector.load %arg16[%c0_16, %c0_17] : memref<1x128xf32, #tpu.memory_space<vmem>>, vector<1x128xf32>
      %33 = vector.broadcast %32 : vector<1x128xf32> to vector<8x128xf32>
      %34 = arith.addf %31, %33 : vector<8x128xf32>
      %35 = arith.negf %34 : vector<8x128xf32>
      %36 = math.exp %35 : vector<8x128xf32>
      %cst_18 = arith.constant 1.000000e+00 : f32
      %37 = vector.broadcast %cst_18 : f32 to vector<8x128xf32>
      %38 = arith.addf %37, %36 : vector<8x128xf32>
      %39 = arith.divf %37, %38 : vector<8x128xf32>
      %40 = arith.mulf %34, %39 : vector<8x128xf32>
      %c0_19 = arith.constant 0 : index
      %c0_20 = arith.constant 0 : index
      %41 = vector.load %arg17[%c0_19, %c0_20] : memref<128x128xf32, #tpu.memory_space<vmem>>, vector<128x128xf32>
      %cst_21 = arith.constant dense<0.000000e+00> : vector<8x128xf32>
      %42 = tpu.matmul %40, %41, %cst_21 {dimension_numbers = #tpu.dot_dimension_numbers<[1], [0], [0], [1], [0, 0, 1, 1], [], []>} : vector<8x128xf32>, vector<128x128xf32>, vector<8x128xf32> -> vector<8x128xf32>
      %c0_22 = arith.constant 0 : index
      %c0_23 = arith.constant 0 : index
      %43 = vector.load %arg18[%c0_22, %c0_23] : memref<1x128xf32, #tpu.memory_space<vmem>>, vector<1x128xf32>
      %44 = vector.broadcast %43 : vector<1x128xf32> to vector<8x128xf32>
      %45 = arith.addf %42, %44 : vector<8x128xf32>
      %46 = arith.addf %25, %45 : vector<8x128xf32>
      %c0_24 = arith.constant 0 : index
      %c0_25 = arith.constant 0 : index
      %47 = vector.load %arg7[%c0_24, %c0_25] : memref<8x1xf32, #tpu.memory_space<vmem>>, vector<8x1xf32>
      %48 = vector.broadcast %47 : vector<8x1xf32> to vector<8x128xf32>
      %49 = arith.mulf %46, %48 : vector<8x128xf32>
      %c0_26 = arith.constant 0 : index
      %c0_27 = arith.constant 0 : index
      %50 = vector.load %arg19[%c0_26, %c0_27] : memref<8x128xf32, #tpu.memory_space<vmem>>, vector<8x128xf32>
      tpu.vector_store %arg19[%c0_26, %c0_27], %49 {strides = array<i32>} : memref<8x128xf32, #tpu.memory_space<vmem>>, vector<8x128xf32>,
    } else {
    }
    return
  }
  func.func @transform_0(%arg0: i32, %arg1: memref<2xi32, #tpu.memory_space<smem>>, %arg2: memref<2xi32, #tpu.memory_space<smem>>, %arg3: memref<2xi32, #tpu.memory_space<smem>>) -> (i32, i32) {
    %0 = arith.index_cast %arg0 : i32 to index
    %1 = memref.load %arg2[%0] : memref<2xi32, #tpu.memory_space<smem>>
    %c0_i32 = arith.constant 0 : i32
    %c0_i32_0 = arith.constant 0 : i32
    return %1, %c0_i32 : i32, i32
  }
  func.func @transform_1(%arg0: i32, %arg1: memref<2xi32, #tpu.memory_space<smem>>, %arg2: memref<2xi32, #tpu.memory_space<smem>>, %arg3: memref<2xi32, #tpu.memory_space<smem>>) -> (i32, i32) {
    %0 = arith.index_cast %arg0 : i32 to index
    %1 = memref.load %arg2[%0] : memref<2xi32, #tpu.memory_space<smem>>
    %c0_i32 = arith.constant 0 : i32
    %c0_i32_0 = arith.constant 0 : i32
    return %c0_i32, %1 : i32, i32
  }
  func.func @transform_2(%arg0: i32, %arg1: memref<2xi32, #tpu.memory_space<smem>>, %arg2: memref<2xi32, #tpu.memory_space<smem>>, %arg3: memref<2xi32, #tpu.memory_space<smem>>) -> (i32, i32) {
    %0 = arith.index_cast %arg0 : i32 to index
    %1 = memref.load %arg1[%0] : memref<2xi32, #tpu.memory_space<smem>>
    %c0_i32 = arith.constant 0 : i32
    %c0_i32_0 = arith.constant 0 : i32
    return %1, %c0_i32 : i32, i32
  }
  func.func @transform_3(%arg0: i32, %arg1: memref<2xi32, #tpu.memory_space<smem>>, %arg2: memref<2xi32, #tpu.memory_space<smem>>, %arg3: memref<2xi32, #tpu.memory_space<smem>>) -> (i32, i32) {
    %0 = arith.index_cast %arg0 : i32 to index
    %1 = memref.load %arg1[%0] : memref<2xi32, #tpu.memory_space<smem>>
    %c0_i32 = arith.constant 0 : i32
    %c0_i32_0 = arith.constant 0 : i32
    return %1, %c0_i32 : i32, i32
  }
  func.func @transform_4(%arg0: i32, %arg1: memref<2xi32, #tpu.memory_space<smem>>, %arg2: memref<2xi32, #tpu.memory_space<smem>>, %arg3: memref<2xi32, #tpu.memory_space<smem>>) -> (i32, i32) {
    %c0_i32 = arith.constant 0 : i32
    %c0_i32_0 = arith.constant 0 : i32
    %c0_i32_1 = arith.constant 0 : i32
    return %c0_i32, %c0_i32_0 : i32, i32
  }
  func.func @transform_5(%arg0: i32, %arg1: memref<2xi32, #tpu.memory_space<smem>>, %arg2: memref<2xi32, #tpu.memory_space<smem>>, %arg3: memref<2xi32, #tpu.memory_space<smem>>) -> (i32, i32) {
    %c0_i32 = arith.constant 0 : i32
    %c0_i32_0 = arith.constant 0 : i32
    %c0_i32_1 = arith.constant 0 : i32
    return %c0_i32, %c0_i32_0 : i32, i32
  }
  func.func @transform_6(%arg0: i32, %arg1: memref<2xi32, #tpu.memory_space<smem>>, %arg2: memref<2xi32, #tpu.memory_space<smem>>, %arg3: memref<2xi32, #tpu.memory_space<smem>>) -> (i32, i32) {
    %c0_i32 = arith.constant 0 : i32
    %c0_i32_0 = arith.constant 0 : i32
    %c0_i32_1 = arith.constant 0 : i32
    return %c0_i32, %c0_i32_0 : i32, i32
  }
  func.func @transform_7(%arg0: i32, %arg1: memref<2xi32, #tpu.memory_space<smem>>, %arg2: memref<2xi32, #tpu.memory_space<smem>>, %arg3: memref<2xi32, #tpu.memory_space<smem>>) -> (i32, i32) {
    %c0_i32 = arith.constant 0 : i32
    %c0_i32_0 = arith.constant 0 : i32
    %c0_i32_1 = arith.constant 0 : i32
    return %c0_i32, %c0_i32_0 : i32, i32
  }
  func.func @transform_8(%arg0: i32, %arg1: memref<2xi32, #tpu.memory_space<smem>>, %arg2: memref<2xi32, #tpu.memory_space<smem>>, %arg3: memref<2xi32, #tpu.memory_space<smem>>) -> (i32, i32) {
    %c0_i32 = arith.constant 0 : i32
    %c0_i32_0 = arith.constant 0 : i32
    %c0_i32_1 = arith.constant 0 : i32
    return %c0_i32, %c0_i32_0 : i32, i32
  }
  func.func @transform_9(%arg0: i32, %arg1: memref<2xi32, #tpu.memory_space<smem>>, %arg2: memref<2xi32, #tpu.memory_space<smem>>, %arg3: memref<2xi32, #tpu.memory_space<smem>>) -> (i32, i32) {
    %c0_i32 = arith.constant 0 : i32
    %c0_i32_0 = arith.constant 0 : i32
    %c0_i32_1 = arith.constant 0 : i32
    return %c0_i32, %c0_i32_0 : i32, i32
  }
  func.func @transform_10(%arg0: i32, %arg1: memref<2xi32, #tpu.memory_space<smem>>, %arg2: memref<2xi32, #tpu.memory_space<smem>>, %arg3: memref<2xi32, #tpu.memory_space<smem>>) -> (i32, i32) {
    %c0_i32 = arith.constant 0 : i32
    %c0_i32_0 = arith.constant 0 : i32
    %c0_i32_1 = arith.constant 0 : i32
    return %c0_i32, %c0_i32_0 : i32, i32
  }
  func.func @transform_11(%arg0: i32, %arg1: memref<2xi32, #tpu.memory_space<smem>>, %arg2: memref<2xi32, #tpu.memory_space<smem>>, %arg3: memref<2xi32, #tpu.memory_space<smem>>) -> (i32, i32) {
    %c0_i32 = arith.constant 0 : i32
    %c0_i32_0 = arith.constant 0 : i32
    %c0_i32_1 = arith.constant 0 : i32
    return %c0_i32, %c0_i32_0 : i32, i32
  }
  func.func @transform_12(%arg0: i32, %arg1: memref<2xi32, #tpu.memory_space<smem>>, %arg2: memref<2xi32, #tpu.memory_space<smem>>, %arg3: memref<2xi32, #tpu.memory_space<smem>>) -> (i32, i32) {
    %c0_i32 = arith.constant 0 : i32
    %c0_i32_0 = arith.constant 0 : i32
    %c0_i32_1 = arith.constant 0 : i32
    return %c0_i32, %c0_i32_0 : i32, i32
  }
  func.func @transform_13(%arg0: i32, %arg1: memref<2xi32, #tpu.memory_space<smem>>, %arg2: memref<2xi32, #tpu.memory_space<smem>>, %arg3: memref<2xi32, #tpu.memory_space<smem>>) -> (i32, i32) {
    %c0_i32 = arith.constant 0 : i32
    %c0_i32_0 = arith.constant 0 : i32
    %c0_i32_1 = arith.constant 0 : i32
    return %c0_i32, %c0_i32_0 : i32, i32
  }
  func.func @transform_14(%arg0: i32, %arg1: memref<2xi32, #tpu.memory_space<smem>>, %arg2: memref<2xi32, #tpu.memory_space<smem>>, %arg3: memref<2xi32, #tpu.memory_space<smem>>) -> (i32, i32) {
    %c0_i32 = arith.constant 0 : i32
    %c0_i32_0 = arith.constant 0 : i32
    %c0_i32_1 = arith.constant 0 : i32
    return %c0_i32, %c0_i32_0 : i32, i32
  }
  func.func @transform_15(%arg0: i32, %arg1: memref<2xi32, #tpu.memory_space<smem>>, %arg2: memref<2xi32, #tpu.memory_space<smem>>, %arg3: memref<2xi32, #tpu.memory_space<smem>>) -> (i32, i32) {
    %0 = arith.index_cast %arg0 : i32 to index
    %1 = memref.load %arg1[%0] : memref<2xi32, #tpu.memory_space<smem>>
    %c0_i32 = arith.constant 0 : i32
    %c0_i32_0 = arith.constant 0 : i32
    return %1, %c0_i32 : i32, i32
  }
}

</mosaic_0001>

<bundles_post_ra>
// kernel: tpu_custom_call.1
= control target key start
LH: loop header
LB: loop body
LE: loop exit
PB: predicated region body
PF: predicated region fallthrough
CT: control target
= control target key end

     0   :  { %s4472_s20 = smov [#allocation5]   ;;  %s4473_s25 = smov [#allocation6]   ;;  %s7360_s0 = inlined_call_operand.hbm [shape: s32[2], index: 0, kind: input, shape index: {}]   ;;  %s7361_s3 = inlined_call_operand.hbm [shape: f32[256,128], index: 3, kind: input, shape index: {}]   ;;  %s7362_s4 = inlined_call_operand.vmem [shape: s32[1,256], index: 4, kind: input, shape index: {}]   ;;  %s7363_s5 = inlined_call_operand.vmem [shape: f32[8,128], index: 5, kind: input, shape index: {}]   ;;  %s7364_s6 = inlined_call_operand.vmem [shape: f32[8,1], index: 6, kind: input, shape index: {}]   ;;  %s7365_s7 = inlined_call_operand.hbm [shape: f32[128,128], index: 7, kind: input, shape index: {}]   ;;  %s7366_s8 = inlined_call_operand.vmem [shape: f32[1,128], index: 8, kind: input, shape index: {}]   ;;  %s7367_s9 = inlined_call_operand.hbm [shape: f32[128,128], index: 9, kind: input, shape index: {}]   ;;  %s7368_s10 = inlined_call_operand.vmem [shape: f32[1,128], index: 10, kind: input, shape index: {}]   ;;  %s7369_s11 = inlined_call_operand.vmem [shape: f32[1,128], index: 11, kind: input, shape index: {}]   ;;  %s7370_s13 = inlined_call_operand.hbm [shape: f32[128,128], index: 13, kind: input, shape index: {}]   ;;  %s7371_s14 = inlined_call_operand.hbm [shape: f32[128,128], index: 14, kind: input, shape index: {}]   ;;  %s7372_s15 = inlined_call_operand.vmem [shape: f32[1,128], index: 15, kind: input, shape index: {}]   ;;  %s7373_s16 = inlined_call_operand.hbm [shape: f32[128,128], index: 16, kind: input, shape index: {}]   ;;  %s7374_s17 = inlined_call_operand.vmem [shape: f32[1,128], index: 17, kind: input, shape index: {}]   ;;  %s7375_s18 = inlined_call_operand.hbm [shape: f32[8,128], index: 18, kind: output, shape index: {}]   ;;  %s7376_s1 = inlined_call_operand.hbm [shape: s32[2], index: 1, kind: input, shape index: {}]   ;;  %s7377_s2 = inlined_call_operand.vmem [shape: s32[2], index: 2, kind: input, shape index: {}]   ;;  %s7378_s12 = inlined_call_operand.<no memory space> [shape: f32[1,1], index: 12, kind: input, shape index: {}]  }
   0x1   :  { %7459 = sst [smem:[#allocation67_spill]] %s7360_s0  ;;  %s29_s19 = sshll.u32 %s7376_s1, 4  ;;  %s30_s19 = int_to_ptr.hbm [resolvable:$true] %s29_s19 }
   0x2   :  { %7460 = sst [smem:[#allocation68_spill]] %s7361_s3  ;;  %s4471_s3 = smov [#allocation4]  }
   0x3   :  { %7461 = sst [smem:[#allocation69_spill]] %s7362_s4  ;;  %s34_s4 = sshll.u32 %s7377_s2, 4  ;;  %s35_s4 = int_to_ptr.vmem [resolvable:$true] %s34_s4 }
   0x4   :  { %7462 = sst [smem:[#allocation70_spill]] %s7365_s7 }
   0x5   :  { %7463 = sst [smem:[#allocation71_spill]] %s7367_s9 }
   0x6   :  { %7464 = sst [smem:[#allocation72_spill]] %s7369_s11 }
   0x7   :  { %7465 = sst [smem:[#allocation73_spill]] %s7370_s13 }
   0x8   :  { %7466 = sst [smem:[#allocation74_spill]] %s7371_s14 }
   0x9   :  { %7467 = sst [smem:[#allocation75_spill]] %s7372_s15 }
   0xa   :  { %7468 = sst [smem:[#allocation76_spill]] %s7373_s16 }
   0xb   :  { %7469 = sst [smem:[#allocation77_spill]] %s7374_s17 }
   0xc   :  { %7470 = sst [smem:[#allocation78_spill]] %s7375_s18 }
   0xd   :  { %s7471_s29 = sld [smem:[#allocation67_spill]] }
   0xe   :  { %38 = sst [smem:[#allocation7]] %s7378_s12 }
  0x13   :  { %s24_s15 = sshll.u32 %s7471_s29, 4  ;;  %s25_s15 = int_to_ptr.hbm [resolvable:$true] %s24_s15 }
  0x14   :  { %27 = dma.hbm_to_smem %s25_s15, 16, %s4471_s3, [#allocation3] }
  0x15   :  { %32 = dma.hbm_to_smem %s30_s19, 16, %s4472_s20, [#allocation3] }
  0x16   :  { %37 = dma.vmem_to_smem %s35_s4, 16, %s4473_s25, [#allocation3] }
  0x17   :  { %4421 = dma.done.wait [#allocation3], 48 }
  0x18   :  { %4422 = vsyncadd [#allocation3], 4294967248 }
  0x19   :  { %41 = sfence }
  0x1a   :  { %42 = vsyncpa [#allocation9], 0 }
  0x1b   :  { %44 = vsyncpa [#allocation9 + $0x1], 0 }
  0x1c   :  { %45 = vsyncpa [#allocation12], 0 }
  0x1d   :  { %46 = vsyncpa [#allocation15], 0 }
  0x1e   :  { %47 = vsyncpa [#allocation18], 0 }
  0x1f   :  { %48 = vsyncpa [#allocation10], 0 }
  0x20   :  { %50 = vsyncpa [#allocation10 + $0x1], 0  ;;  %s4591_s1 = smov 0   ;;  %s4593_s2 = smov 0  }
  0x21   :  { %s4595_s15 = smov 0   ;;  %s4597_s26 = smov 0  }
  0x22   :  { %s4599_s12 = smov 0   ;;  %s4601_s27 = smov 0  }
  0x23   :  { %s4603_s28 = smov 0  }
  0x24 LB: > { %7472 = sst [smem:[#allocation29_spill]] %s4445_s1  ;;  %s4627_s29 = sadd.s32 4294967295, %s4469_s28   ;;  %s4469_s28 = sphi %s4603_s28, %s7751_s28   ;;  %s4465_s27 = sphi %s4601_s27, %s7753_s27   ;;  %s4461_s12 = sphi %s4599_s12, %s7758_s12   ;;  %s4457_s26 = sphi %s4597_s26, %s7757_s26   ;;  %s4453_s15 = sphi %s4595_s15, %s7756_s15   ;;  %s4449_s2 = sphi %s4593_s2, %s7755_s2   ;;  %s4445_s1 = sphi %s4591_s1, %s7754_s1  }
  0x25   : > { %7473 = sst [smem:[#allocation30_spill]] %s4465_s27  ;;  %s3454_s30 = sadd.s32 4294967294, %s4469_s28  }
  0x26   : > { %p79_p0 = scmp.eq.s32.totalorder %s4627_s29, 0  ;;  %p418_p1 = scmp.ne.s32.totalorder %s4453_s15, %s4449_s2 }
  0x27   : > { %p7391_p2 = scmp.eq.s32.totalorder %s4627_s29, 1  ;;  %p424_p3 = scmp.ne.s32.totalorder %s4449_s2, %s4445_s1 }
  0x28   : > { %p425_p4 = scmp.eq.s32.totalorder %s3454_s30, 1  ;;  %p3455_p6 = scmp.ge.s32.totalorder %s4469_s28, 1 }
  0x29   : > { %p4638_p5 = por %p7391_p2, %p418_p1  ;;  %p432_p8 = scmp.lt.s32.totalorder %s4469_s28, 3 }
  0x2a   : > { %p4643_p7 = por %p425_p4, %p424_p3  ;;  %s7478_s7 = sld [smem:[#allocation70_spill]] }
  0x2b   : > { %s7474_s0 = scalar_select %p4638_p5, 1, 0 }
  0x2c   : > { %s7476_s19 = scalar_select %p4643_p7, 1, 0 }
  0x2d   : > { %7475 = sst [smem:[#allocation31_spill]] %s7474_s0  ;;  %p4651_p9 = pnand %p3455_p6, %p432_p8 }
  0x2e   : > { %7477 = sst [smem:[#allocation32_spill]] %s7476_s19  ;;  %s4474_s4 = smov [#allocation11]  }
  0x2f   : > { %p3645_p10 = pneg %p4651_p9  ;;  %s445_s23 = sshll.u32 %s4474_s4, 4  ;;  %s446_s23 = int_to_ptr.vmem [resolvable:$true] %s445_s23 }
  0x30   : > { %s443_s21 = sshll.u32 %s7478_s7, 4  ;;  %s7481_s13 = sld [smem:[#allocation73_spill]]  ;;  %s444_s21 = int_to_ptr.hbm [resolvable:$true] %s443_s21 }
  0x31   : > { %p4659_p11 = pnand %p3645_p10, %p79_p0  ;;  %s7385_s20 = smov 128  }
  0x32   : > { %s7386_s7 = smov 8   ;;  %s4477_s4 = smov [#allocation14]  }
  0x33   : > { %3648 = dma.hbm_to_vmem [thread:$0]  (!%p4659_p11), %s444_s21, 2048, %s446_s23, [#allocation12], %s7385_s20, %s7385_s20, %s7386_s7  }
  0x34   : > { %s485_s19 = sshll.u32 %s4477_s4, 4  ;;  %s7482_s9 = sld [smem:[#allocation71_spill]]  ;;  %s486_s19 = int_to_ptr.vmem [resolvable:$true] %s485_s19 }
  0x35   : > { %s7483_s14 = sld [smem:[#allocation74_spill]]  ;;  %s4478_s21 = smov [#allocation13]  }
  0x36   : > { %s483_s3 = sshll.u32 %s7481_s13, 4  ;;  %s462_s23 = sshll.u32 %s4478_s21, 4  ;;  %s484_s3 = int_to_ptr.hbm [resolvable:$true] %s483_s3  ;;  %s463_s23 = int_to_ptr.vmem [resolvable:$true] %s462_s23 }
  0x37   : > { %3654 = dma.hbm_to_vmem [thread:$0]  (!%p4659_p11), %s484_s3, 2048, %s486_s19, [#allocation15], %s7385_s20, %s7385_s20, %s7386_s7  }
  0x38   : > { %s4479_s18 = smov [#allocation16]   ;;  %s7484_s16 = sld [smem:[#allocation76_spill]] }
  0x39   : > { %s499_s1 = sshll.u32 %s4479_s18, 4  ;;  %s4702_s30 = sadd.s32 1, %s4469_s28   ;;  %s500_s1 = int_to_ptr.vmem [resolvable:$true] %s499_s1 }
  0x3a   : > { %s460_s0 = sshll.u32 %s7482_s9, 4  ;;  %7485 = sst [smem:[#allocation33_spill]] %s4702_s30  ;;  %s461_s0 = int_to_ptr.hbm [resolvable:$true] %s460_s0 }
  0x3b   : > { %s497_s13 = sshll.u32 %s7483_s14, 4  ;;  %s60_s21 = sld [smem:[#allocation5 + %s4469_s28]]  ;;  %s498_s13 = int_to_ptr.hbm [resolvable:$true] %s497_s13 }
  0x3c   : > { %3651 = dma.hbm_to_vmem [thread:$0]  (!%p4659_p11), %s461_s0, 2048, %s463_s23, [#allocation12], %s7385_s20, %s7385_s20, %s7386_s7  }
  0x3d   : > { %3657 = dma.hbm_to_vmem [thread:$0]  (!%p4659_p11), %s498_s13, 2048, %s500_s1, [#allocation15], %s7385_s20, %s7385_s20, %s7386_s7  }
  0x3e   : > { %s514_s4 = sshll.u32 %s7484_s16, 4  ;;  %s4480_s0 = smov [#allocation17]   ;;  %s515_s4 = int_to_ptr.hbm [resolvable:$true] %s514_s4 }
  0x3f   : > { %s516_s25 = sshll.u32 %s4480_s0, 4  ;;  %s61_s23 = sld [smem:[#allocation5 + %s4702_s30]]  ;;  %s517_s25 = int_to_ptr.vmem [resolvable:$true] %s516_s25 }
  0x40   : > { %3660 = dma.hbm_to_vmem [thread:$0]  (!%p4659_p11), %s515_s4, 2048, %s517_s25, [#allocation18], %s7385_s20, %s7385_s20, %s7386_s7  }
  0x41   : > { %p72_p13 = scmp.ne.s32.totalorder %s4465_s27, %s4461_s12  ;;  %p73_p1 = scmp.eq.s32.totalorder %s4469_s28, 0 }
  0x42   : > { %p78_p3 = scmp.ne.s32.totalorder %s4461_s12, %s4457_s26  ;;  %s403_s13 = sld [smem:[#allocation4 + %s4469_s28]] }
  0x43   : > { %p4718_p6 = por %p73_p1, %p72_p13  ;;  %s404_s1 = sld [smem:[#allocation4 + %s4702_s30]] }
  0x44   : > { %p4714_p4 = por %p79_p0, %p78_p3  ;;  %s408_s19 = sadd.s32 1, %s4453_s15 }
  0x45   : > { %s65_s3 = sadd.s32 1, %s4465_s27  ;;  %s62_s4 = ssub.s32 %s60_s21, %s61_s23 }
  0x46   : > { %p3676_p8 = scmp.lt.s32.totalorder %s4469_s28, 2  ;;  %p63_p10 = scmp.eq.s32.totalorder %s62_s4, 0 }
  0x47   : > { %s533_s26 = sand.u32 1, %s4465_s27  }
  0x48   : > { %s3627_s0 = scalar_select %p4718_p6, [#allocation5], [#allocation20] }
  0x49   : > { %s4730_s25 = scalar_select %p63_p10, %s4465_s27, %s65_s3  }
  0x4a   : > { %s405_s20 = ssub.s32 %s403_s13, %s404_s1  ;;  %s3462_s7 = sshll.u32 %s533_s26, 8 }
  0x4b   : > { %7488 = sst [smem:[#allocation34_spill]] %s4730_s25  ;;  %p406_p11 = scmp.eq.s32.totalorder %s405_s20, 0 }
  0x4c   : > { %p4734_p13 = pnand %p3676_p8, %p4718_p6  ;;  %s7760_s0 = smov (!%p3676_p8, %s3627_s0), [#allocation22] }
  0x4d   : > { %s3628_s14 = scalar_select %p4718_p6, %s4469_s28, 0 }
  0x4e   : > { %s4742_s16 = scalar_select %p406_p11, %s4453_s15, %s408_s19  }
  0x4f   : > { %s7762_s14 = smov (!%p3676_p8, %s3628_s14), 0  ;;  %s537_s23 = scalar_lea.vmem [#allocation8], %s3462_s7 }
  0x50   : > { %s538_s21 = sld [smem:[%s7760_s0 + %s7762_s14]]  ;;  %s546_s4 = sshll.u32 %s537_s23, 4  ;;  %s547_s4 = int_to_ptr.vmem [resolvable:$true] %s546_s4 }
  0x51   : > { %s7490_s1 = sld [smem:[#allocation68_spill]]  ;;  %s534_s17 = scalar_lea.sflag [#allocation9], %s533_s26 }
  0x52   : > { %p4339_p3 = pneg %p4734_p13 }
  0x56   : > { %s3584_s3 = sshll.u32 %s538_s21, 8 }
  0x57   : > { %s7491_s30 = smov %s7490_s1  ;;  %s543_s20 = scalar_lea.hbm %s7490_s1, %s3584_s3 }
  0x58   : > { %s544_s27 = sshll.u32 %s543_s20, 4  ;;  %s4342_s19 = scalar_lea.hbm %s7491_s30, 256  ;;  %s545_s27 = int_to_ptr.hbm [resolvable:$true] %s544_s27 }
  0x59   : > { %s4335_s11 = sshra.s32 %s545_s27, 4  ;;  %s4336_s11 = int_to_ptr.hbm [resolvable:$true] %s4335_s11 }
  0x5a   : > { %s4337_s18 = scalar_lea.hbm %s4336_s11, 256  ;;  %p4343_p10 = scmp.lt.s32.totalorder %s4336_s11, %s7491_s30 }
  0x5b   : > { %p4338_p1 = scmp.ne.s32.totalorder %s4336_s11, %s4337_s18  ;;  %p4344_p11 = scmp.lt.s32.totalorder %s4342_s19, %s4337_s18 }
  0x5d   : > { %p4340_p6 = pnand %p4339_p3, %p4338_p1  ;;  %p4345_p12 = por %p4344_p11, %p4343_p10 }
  0x5f   : > { %p4341_p8 = pneg %p4340_p6 }
  0x61   : > { %p4346_p2 = pnand %p4345_p12, %p4341_p8 }
  0x63   : > { %4349 = shalt.err (!%p4346_p2)
}
  0x64   : > { %s7492_s26 = smov 8   ;;  %s7493_s25 = smov 128  }
  0x65   : > { %3666 = dma.hbm_to_vmem [thread:$0]  (!%p4734_p13), %s545_s27, 4096, %s547_s4, %s534_s17, %s7493_s25, %s7493_s25, %s7492_s26  }
  0x66   : > { %586 = sbr.rel (%p4651_p9) target bundleno = 1378 (0x562), region = 80  ;;  %s588_s23 = sand.u32 (!%p4651_p9), 1, %s4461_s12  }
  0x67   : > { %s3466_s3 = sshll.u32 (!%p4651_p9), %s588_s23, 8  ;;  %s589_s13 = scalar_lea.sflag (!%p4651_p9), [#allocation9], %s588_s23 }
  0x68   : > { %s4763_s1 = scalar_lea.vmem (!%p4651_p9), [#allocation8], %s3466_s3 }
  0x6b   : > { %4424 = dma.done.wait (%p4714_p4), %s589_s13, 4096  }
  0x6c   : > { %4426 = vsyncadd (%p4714_p4), %s589_s13, 4294963200 }
  0x6d   : > { %4428 = dma.done.wait (%p79_p0), [#allocation12], 4096  }
  0x6e   : > { %4430 = vsyncadd (%p79_p0), [#allocation12], 4294963200 }
  0x6f   : > { %4432 = dma.done.wait (%p79_p0), [#allocation15], 4096  }
  0x70   : > { %4434 = vsyncadd (%p79_p0), [#allocation15], 4294963200 }
  0x71   : > { %4436 = dma.done.wait (%p79_p0), [#allocation18], 2048  }
  0x72   : > { %4438 = vsyncadd (%p79_p0), [#allocation18], 4294965248  ;;  %s3476_s9 = sadd.s32 4294967295, %s4627_s29  ;;  %s707_s11 = sadd.s32 1, %s4627_s29 }
  0x73   : > { %s682_s17 = sld [smem:[#allocation5 + %s4627_s29]]  ;;  %p704_p2 = scmp.gt.s32.totalorder %s3476_s9, 0 }
  0x74   : > { %s689_s27 = sld [smem:[#allocation4 + %s4627_s29]]  ;;  %p708_p9 = scmp.lt.s32.totalorder %s707_s11, 1 }
  0x75   : > { %s695_s22 = sld [smem:[#allocation4 + %s4627_s29]]  ;;  %s7392_s24 = sand.u32 1, %s4449_s2  }
  0x76   : > { %s4788_s4 = sld [smem:[#allocation4 + %s4627_s29]]  ;;  %s4792_s20 = sshll.u32 %s7392_s24, 3 }
  0x77   : > { %s7764_s9 = smov (!%p704_p2, %s3476_s9), 0  ;;  %s7766_s11 = smov (!%p708_p9, %s707_s11), 1 }
  0x78   : > { %s706_s14 = sld [smem:[#allocation4 + %s7764_s9]]  ;;  %p7495_p8 = scmp.eq.s32.totalorder %s4627_s29, 1 }
  0x79   : > { %s3473_s18 = sshll.u32 %s682_s17, 1  ;;  %s710_s7 = sld [smem:[#allocation4 + %s7766_s11]] }
  0x7a   : > { %p684_p12 = scmp.lt.s32.totalorder %s3473_s18, 1  ;;  %p690_p4 = scmp.lt.s32.totalorder %s689_s27, 0 }
  0x7b   : > { %p696_p13 = scmp.lt.s32.totalorder %s695_s22, 0  ;;  %s7494_s21 = sld [smem:[#allocation69_spill]] }
  0x7c   : > { %s7768_s18 = smov (!%p684_p12, %s3473_s18), 1  ;;  %s7770_s27 = smov (!%p690_p4, %s689_s27), 0 }
  0x7d   : > { %s717_s25 = sld [smem:[#allocation6 + %s4627_s29]]  ;;  %s3474_s23 = sshll.u32 %s7770_s27, 3 }
  0x7e   : > { %p712_p1 = scmp.ne.s32.totalorder %s706_s14, %s4788_s4  ;;  %s4805_s9 = scalar_lea.vmem %s7363_s5, %s3474_s23 }
  0x7f   : > { %s7772_s22 = smov (!%p696_p13, %s695_s22), 0  ;;  %p715_p6 = scmp.ne.s32.totalorder %s710_s7, %s4788_s4 }
  0x80   : > { %p713_p3 = por %p712_p1, %p79_p0  ;;  %s3475_s11 = sshll.u32 %s7772_s22, 3 }
  0x81   : > { %s686_s26 = scalar_lea.vmem %s7494_s21, %s7768_s18  ;;  %s4813_s30 = scalar_lea.vmem %s7364_s6, %s3475_s11  ;;  %v4481_v0 = vmov (%p713_p3), 0.0  }
  0x82   : > { %p4817_p10 = por %p715_p6, %p7495_p8  ;;  %s679_s27 = scalar_lea.vmem [#allocation19], %s4792_s20  ;;  %722 = vst [vmem:[#allocation2] sm:$0xff] (%p713_p3), %v4481_v0 }
  0x83   : > { %721 = sbr.rel (!%p713_p3) target bundleno = 136 (0x88), region = 108 }
  0x88 PF: > { %p3477_p11 = scmp.ne.s32.totalorder %s717_s25, 1 }
  0x8a   : > { %725 = sbr.rel (%p3477_p11) target bundleno = 1023 (0x3ff), region = 112 }
  0x8f   : > { %v773_v1 = vld [vmem:[#allocation11 + $0x78] sm:$0xff]  ;;  %v772_v2 = vld [vmem:[#allocation11 + $0x70] sm:$0xff]  ;;  %v771_v3 = vld [vmem:[#allocation11 + $0x68] sm:$0xff]  ;;  %s7550_s23 = sld [smem:[#allocation72_spill]]  ;;  %s3574_s24 = sshll.u32 %s4788_s4, 3 }
  0x90   : > { %778 = vmatpush.msra.mxu0 %v773_v1  ;;  %3585 = vmatpush.msra.mxu2 %v773_v1  ;;  %v770_v4 = vld [vmem:[#allocation11 + $0x60] sm:$0xff]  ;;  %v769_v5 = vld [vmem:[#allocation11 + $0x58] sm:$0xff]  ;;  %v768_v6 = vld [vmem:[#allocation11 + $0x50] sm:$0xff]  ;;  %s2404_s22 = sld [smem:[#allocation7]] }
  0x91   : > { %v767_v7 = vld [vmem:[#allocation11 + $0x48] sm:$0xff]  ;;  %v766_v8 = vld [vmem:[#allocation11 + $0x40] sm:$0xff]  ;;  %v765_v9 = vld [vmem:[#allocation11 + $0x38] sm:$0xff] }
  0x92   : > { %779 = vmatpush.msra.mxu0 %v772_v2  ;;  %3586 = vmatpush.msra.mxu2 %v772_v2  ;;  %v764_v10 = vld [vmem:[#allocation11 + $0x30] sm:$0xff]  ;;  %v763_v11 = vld [vmem:[#allocation11 + $0x28] sm:$0xff]  ;;  %v762_v12 = vld [vmem:[#allocation11 + $0x20] sm:$0xff] }
  0x93   : > { %v761_v13 = vld [vmem:[#allocation11 + $0x18] sm:$0xff]  ;;  %v760_v14 = vld [vmem:[#allocation11 + $0x10] sm:$0xff]  ;;  %v759_v15 = vld [vmem:[#allocation11 + $0x8] sm:$0xff] }
  0x94   : > { %780 = vmatpush.msra.mxu0 %v771_v3  ;;  %3587 = vmatpush.msra.mxu2 %v771_v3  ;;  %v758_v16 = vld [vmem:[#allocation11] sm:$0xff]  ;;  %v743_v18 = vld [vmem:[%s4763_s1 + $0x88] sm:$0xff]  ;;  %v744_v20 = vld [vmem:[%s4763_s1 + $0x90] sm:$0xff] }
  0x95   : > { %v726_v17 = vld [vmem:[%s4763_s1] sm:$0xff]  ;;  %v727_v19 = vld [vmem:[%s4763_s1 + $0x8] sm:$0xff]  ;;  %v728_v21 = vld [vmem:[%s4763_s1 + $0x10] sm:$0xff] }
  0x96   : > { %781 = vmatpush.msra.mxu0 %v770_v4  ;;  %3588 = vmatpush.msra.mxu2 %v770_v4  ;;  %v745_v22 = vld [vmem:[%s4763_s1 + $0x98] sm:$0xff]  ;;  %v746_v24 = vld [vmem:[%s4763_s1 + $0xa0] sm:$0xff]  ;;  %v747_v26 = vld [vmem:[%s4763_s1 + $0xa8] sm:$0xff] }
  0x97   : > { %v729_v23 = vld [vmem:[%s4763_s1 + $0x18] sm:$0xff]  ;;  %v730_v25 = vld [vmem:[%s4763_s1 + $0x20] sm:$0xff]  ;;  %v731_v27 = vld [vmem:[%s4763_s1 + $0x28] sm:$0xff] }
  0x98   : > { %782 = vmatpush.msra.mxu0 %v769_v5  ;;  %3589 = vmatpush.msra.mxu2 %v769_v5  ;;  %v748_v28 = vld [vmem:[%s4763_s1 + $0xb0] sm:$0xff]  ;;  %v749_v30 = vld [vmem:[%s4763_s1 + $0xb8] sm:$0xff]  ;;  %v750_v32 = vld [vmem:[%s4763_s1 + $0xc0] sm:$0xff] }
  0x99   : > { %v732_v29 = vld [vmem:[%s4763_s1 + $0x30] sm:$0xff]  ;;  %v733_v31 = vld [vmem:[%s4763_s1 + $0x38] sm:$0xff]  ;;  %v734_v33 = vld [vmem:[%s4763_s1 + $0x40] sm:$0xff] }
  0x9a   : > { %783 = vmatpush.msra.mxu0 %v768_v6  ;;  %3590 = vmatpush.msra.mxu2 %v768_v6  ;;  %v751_v34 = vld [vmem:[%s4763_s1 + $0xc8] sm:$0xff]  ;;  %v752_v36 = vld [vmem:[%s4763_s1 + $0xd0] sm:$0xff]  ;;  %v753_v38 = vld [vmem:[%s4763_s1 + $0xd8] sm:$0xff] }
  0x9b   : > { %v735_v35 = vld [vmem:[%s4763_s1 + $0x48] sm:$0xff]  ;;  %v736_v37 = vld [vmem:[%s4763_s1 + $0x50] sm:$0xff]  ;;  %v737_v39 = vld [vmem:[%s4763_s1 + $0x58] sm:$0xff] }
  0x9c   : > { %784 = vmatpush.msra.mxu0 %v767_v7  ;;  %3591 = vmatpush.msra.mxu2 %v767_v7  ;;  %v754_v40 = vld [vmem:[%s4763_s1 + $0xe0] sm:$0xff]  ;;  %v755_v42 = vld [vmem:[%s4763_s1 + $0xe8] sm:$0xff]  ;;  %v1546_v43 = vld [vmem:[#allocation13 + $0x78] sm:$0xff] }
  0x9d   : > { %v738_v41 = vld [vmem:[%s4763_s1 + $0x60] sm:$0xff]  ;;  %1551 = vmatpush.msra.mxu1 %v1546_v43  ;;  %3601 = vmatpush.msra.mxu3 %v1546_v43  ;;  %v1545_v44 = vld [vmem:[#allocation13 + $0x70] sm:$0xff]  ;;  %v1544_v45 = vld [vmem:[#allocation13 + $0x68] sm:$0xff] }
  0x9e   : > { %785 = vmatpush.msra.mxu0 %v766_v8  ;;  %3592 = vmatpush.msra.mxu2 %v766_v8  ;;  %v1543_v46 = vld [vmem:[#allocation13 + $0x60] sm:$0xff]  ;;  %v739_v47 = vld [vmem:[%s4763_s1 + $0x68] sm:$0xff]  ;;  %v756_v48 = vld [vmem:[%s4763_s1 + $0xf0] sm:$0xff] }
  0x9f   : > { %1552 = vmatpush.msra.mxu1 %v1545_v44  ;;  %3602 = vmatpush.msra.mxu3 %v1545_v44  ;;  %v1542_v49 = vld [vmem:[#allocation13 + $0x58] sm:$0xff]  ;;  %v1541_v50 = vld [vmem:[#allocation13 + $0x50] sm:$0xff]  ;;  %v1540_v51 = vld [vmem:[#allocation13 + $0x48] sm:$0xff] }
  0xa0   : > { %786 = vmatpush.msra.mxu0 %v765_v9  ;;  %3593 = vmatpush.msra.mxu2 %v765_v9  ;;  %v1539_v52 = vld [vmem:[#allocation13 + $0x40] sm:$0xff]  ;;  %v740_v53 = vld [vmem:[%s4763_s1 + $0x70] sm:$0xff]  ;;  %v757_v54 = vld [vmem:[%s4763_s1 + $0xf8] sm:$0xff] }
  0xa1   : > { %1553 = vmatpush.msra.mxu1 %v1544_v45  ;;  %3603 = vmatpush.msra.mxu3 %v1544_v45  ;;  %v1538_v55 = vld [vmem:[#allocation13 + $0x38] sm:$0xff]  ;;  %v1537_v56 = vld [vmem:[#allocation13 + $0x30] sm:$0xff]  ;;  %v1536_v57 = vld [vmem:[#allocation13 + $0x28] sm:$0xff] }
  0xa2   : > { %787 = vmatpush.msra.mxu0 %v764_v10  ;;  %3594 = vmatpush.msra.mxu2 %v764_v10  ;;  %v1535_v58 = vld [vmem:[#allocation13 + $0x20] sm:$0xff]  ;;  %v741_v59 = vld [vmem:[%s4763_s1 + $0x78] sm:$0xff]  ;;  %v1533_v61 = vld [vmem:[#allocation13 + $0x10] sm:$0xff] }
  0xa3   : > { %1554 = vmatpush.msra.mxu1 %v1543_v46  ;;  %3604 = vmatpush.msra.mxu3 %v1543_v46  ;;  %v1534_v60 = vld [vmem:[#allocation13 + $0x18] sm:$0xff]  ;;  %v1532_v63 = vld [vmem:[#allocation13 + $0x8] sm:$0xff]  ;;  %v1531_v0 = vld [vmem:[#allocation13] sm:$0xff] }
  0xa4   : > { %788 = vmatpush.msra.mxu0 %v763_v11  ;;  %3595 = vmatpush.msra.mxu2 %v763_v11  ;;  %v4856_v62 = vld [vmem:[%s7366_s8] ss:$0 sm:$0xff]  ;;  %v742_v2 = vld [vmem:[%s4763_s1 + $0x80] sm:$0xff] }
  0xa5   : > { %1555 = vmatpush.msra.mxu1 %v1542_v49  ;;  %3605 = vmatpush.msra.mxu3 %v1542_v49 }
  0xa6   : > { %789 = vmatpush.msra.mxu0 %v762_v12  ;;  %3596 = vmatpush.msra.mxu2 %v762_v12 }
  0xa7   : > { %1556 = vmatpush.msra.mxu1 %v1541_v50  ;;  %3606 = vmatpush.msra.mxu3 %v1541_v50 }
  0xa8   : > { %790 = vmatpush.msra.mxu0 %v761_v13  ;;  %3597 = vmatpush.msra.mxu2 %v761_v13 }
  0xa9   : > { %1557 = vmatpush.msra.mxu1 %v1540_v51  ;;  %3607 = vmatpush.msra.mxu3 %v1540_v51 }
  0xaa   : > { %791 = vmatpush.msra.mxu0 %v760_v14  ;;  %3598 = vmatpush.msra.mxu2 %v760_v14 }
  0xab   : > { %1558 = vmatpush.msra.mxu1 %v1539_v52  ;;  %3608 = vmatpush.msra.mxu3 %v1539_v52 }
  0xac   : > { %792 = vmatpush.msra.mxu0 %v759_v15  ;;  %3599 = vmatpush.msra.mxu2 %v759_v15 }
  0xad   : > { %1559 = vmatpush.msra.mxu1 %v1538_v55  ;;  %3609 = vmatpush.msra.mxu3 %v1538_v55 }
  0xae   : > { %793 = vmatpush.msra.mxu0 %v758_v16  ;;  %3600 = vmatpush.msra.mxu2 %v758_v16 }
  0xaf   : > { %794 = vmatmul.f32.vlgmr.msra.gmra.mxu0 %v726_v17  ;;  %845 = vmatmul.f32.vlgmr.msra.gmra.mxu2 %v743_v18 }
  0xb0   : > { %1560 = vmatpush.msra.mxu1 %v1537_v56  ;;  %3610 = vmatpush.msra.mxu3 %v1537_v56 }
  0xb2   : > { %1561 = vmatpush.msra.mxu1 %v1536_v57  ;;  %3611 = vmatpush.msra.mxu3 %v1536_v57 }
  0xb4   : > { %1562 = vmatpush.msra.mxu1 %v1535_v58  ;;  %3612 = vmatpush.msra.mxu3 %v1535_v58 }
  0xb6   : > { %1563 = vmatpush.msra.mxu1 %v1534_v60  ;;  %3613 = vmatpush.msra.mxu3 %v1534_v60 }
  0xb7   : > { %797 = vmatmul.f32.gmra.mxu0 %v727_v19  ;;  %848 = vmatmul.f32.gmra.mxu2 %v744_v20 }
  0xb8   : > { %1564 = vmatpush.msra.mxu1 %v1533_v61  ;;  %3614 = vmatpush.msra.mxu3 %v1533_v61 }
  0xba   : > { %1565 = vmatpush.msra.mxu1 %v1532_v63  ;;  %3615 = vmatpush.msra.mxu3 %v1532_v63 }
  0xbc   : > { %1566 = vmatpush.msra.mxu1 %v1531_v0  ;;  %3616 = vmatpush.msra.mxu3 %v1531_v0 }
  0xbf   : > { %800 = vmatmul.f32.gmra.mxu0 %v728_v21  ;;  %851 = vmatmul.f32.gmra.mxu2 %v745_v22 }
  0xc7   : > { %803 = vmatmul.f32.gmra.mxu0 %v729_v23  ;;  %854 = vmatmul.f32.gmra.mxu2 %v746_v24 }
  0xcf   : > { %806 = vmatmul.f32.gmra.mxu0 %v730_v25  ;;  %857 = vmatmul.f32.gmra.mxu2 %v747_v26 }
  0xd7   : > { %809 = vmatmul.f32.gmra.mxu0 %v731_v27  ;;  %860 = vmatmul.f32.gmra.mxu2 %v748_v28 }
  0xdf   : > { %812 = vmatmul.f32.gmra.mxu0 %v732_v29  ;;  %863 = vmatmul.f32.gmra.mxu2 %v749_v30 }
  0xe7   : > { %815 = vmatmul.f32.gmra.mxu0 %v733_v31  ;;  %866 = vmatmul.f32.gmra.mxu2 %v750_v32 }
  0xef   : > { %818 = vmatmul.f32.gmra.mxu0 %v734_v33  ;;  %869 = vmatmul.f32.gmra.mxu2 %v751_v34 }
  0xf7   : > { %821 = vmatmul.f32.gmra.mxu0 %v735_v35  ;;  %872 = vmatmul.f32.gmra.mxu2 %v752_v36 }
  0xff   : > { %824 = vmatmul.f32.gmra.mxu0 %v736_v37  ;;  %875 = vmatmul.f32.gmra.mxu2 %v753_v38 }
 0x107   : > { %827 = vmatmul.f32.gmra.mxu0 %v737_v39  ;;  %878 = vmatmul.f32.gmra.mxu2 %v754_v40 }
 0x10f   : > { %830 = vmatmul.f32.gmra.mxu0 %v738_v41  ;;  %881 = vmatmul.f32.gmra.mxu2 %v755_v42 }
 0x117   : > { %833 = vmatmul.f32.gmra.mxu0 %v739_v47  ;;  %884 = vmatmul.f32.gmra.mxu2 %v756_v48 }
 0x11f   : > { %836 = vmatmul.f32.gmra.mxu0 %v740_v53  ;;  %887 = vmatmul.f32.gmra.mxu2 %v757_v54 }
 0x127   : > { %839 = vmatmul.f32.gmra.mxu0 %v741_v59 }
 0x12c   : > { %v795_v1 = vpop.f32.mrf.mxu0 }
 0x12d   : > { %v4860_v3 = vadd.f32 %v4856_v62, %v795_v1 }
 0x12f   : > { %v3478_v4 = vmul.f32 -1.442695, %v4860_v3  ;;  %842 = vmatmul.f32.gmra.mxu0 %v742_v2 }
 0x131   : > { %3755 = vpow2.f32 %v3478_v4 }
 0x132   : > { %v846_v5 = vpop.f32.mrf.mxu2 }
 0x133   : > { %v4864_v6 = vadd.f32 %v4856_v62, %v846_v5 }
 0x134   : > { %v798_v7 = vpop.f32.mrf.mxu0 }
 0x135   : > { %v3495_v8 = vmul.f32 -1.442695, %v4864_v6  ;;  %v4868_v9 = vadd.f32 %v4856_v62, %v798_v7 }
 0x137   : > { %v3756_v10 = vpop.eup %3755  ;;  %3757 = vpow2.f32 %v3495_v8  ;;  %v3479_v11 = vmul.f32 -1.442695, %v4868_v9 }
 0x138   : > { %v987_v12 = vadd.f32 1.0, %v3756_v10 }
 0x139   : > { %3759 = vpow2.f32 %v3479_v11 }
 0x13a   : > { %3761 = vrcp.f32 %v987_v12  ;;  %v849_v13 = vpop.f32.mrf.mxu2  ;;  %v1028_v24 = vand.u32 2147483647, %v987_v12  ;;  %v1030_v27 = vand.u32 2147483648, %v987_v12  ;;  %vm1024_vm0 = vweird.f32 %v987_v12 }
 0x13b   : > { %v4872_v14 = vadd.f32 %v4856_v62, %v849_v13 }
 0x13c   : > { %v801_v15 = vpop.f32.mrf.mxu0  ;;  %vm4889_vm1 = vcmp.eq.f32.partialorder %v1028_v24, 8.507059e+37  ;;  %v1031_v40 = vor.u32 1.1754944e-38, %v1030_v27 }
 0x13d   : > { %v3758_v16 = vpop.eup %3757  ;;  %v3496_v17 = vmul.f32 -1.442695, %v4872_v14  ;;  %v4876_v18 = vadd.f32 %v4856_v62, %v801_v15 }
 0x13e   : > { %v4878_v19 = vadd.f32 1.0, %v3758_v16 }
 0x13f   : > { %v3760_v20 = vpop.eup %3759  ;;  %3763 = vpow2.f32 %v3496_v17  ;;  %v3480_v21 = vmul.f32 -1.442695, %v4876_v18 }
 0x140   : > { %v3762_v22 = vpop.eup %3761  ;;  %3765 = vrcp.f32 %v4878_v19  ;;  %v4882_v23 = vadd.f32 1.0, %v3760_v20  ;;  %v1283_v30 = vand.u32 2147483647, %v4878_v19  ;;  %v1285_v33 = vand.u32 2147483648, %v4878_v19 }
 0x141   : > { %3767 = vpow2.f32 %v3480_v21  ;;  %v1020_v25 = vmul.f32 %v3762_v22, %v987_v12  ;;  %vm1025_vm2 = vweird.f32 %v3762_v22  ;;  %vm1279_vm3 = vweird.f32 %v4878_v19 }
 0x142   : > { %3769 = vrcp.f32 %v4882_v23  ;;  %v852_v26 = vpop.f32.mrf.mxu2  ;;  %v1043_v41 = vand.u32 2147483647, %v4882_v23  ;;  %vm4904_vm4 = vcmp.eq.f32.partialorder %v1283_v30, 8.507059e+37  ;;  %vm1039_vm5 = vweird.f32 %v4882_v23  ;;  %vm1026_vm6 = vmor %vm1024_vm0, %vm1025_vm2 }
 0x143   : > { %v4886_v28 = vadd.f32 %v4856_v62, %v852_v26  ;;  %v1021_v29 = vsub.f32 1.0, %v1020_v25  ;;  %v1286_v49 = vor.u32 1.1754944e-38, %v1285_v33  ;;  %v1045_v50 = vand.u32 2147483648, %v4882_v23 }
 0x144   : > { %v804_v31 = vpop.f32.mrf.mxu0  ;;  %vm4919_vm8 = vcmp.eq.f32.partialorder %v1043_v41, 8.507059e+37 }
 0x145   : > { %v3764_v34 = vpop.eup %3763  ;;  %v3497_v35 = vmul.f32 -1.442695, %v4886_v28  ;;  %v4896_v36 = vadd.f32 %v4856_v62, %v804_v31  ;;  %v1022_v37 = vmul.f32 %v3762_v22, %v1021_v29  ;;  %v1046_v63 = vor.u32 1.1754944e-38, %v1045_v50 }
 0x146   : > { %v3766_v38 = vpop.eup %3765  ;;  %v4898_v39 = vadd.f32 1.0, %v3764_v34 }
 0x147   : > { %v3768_v42 = vpop.eup %3767  ;;  %3771 = vpow2.f32 %v3497_v35  ;;  %v3481_v43 = vmul.f32 -1.442695, %v4896_v36  ;;  %v1023_v44 = vadd.f32 %v3762_v22, %v1022_v37  ;;  %v1275_v45 = vmul.f32 %v3766_v38, %v4878_v19 }
 0x148   : > { %v3770_v47 = vpop.eup %3769  ;;  %3773 = vrcp.f32 %v4898_v39  ;;  %v4910_v48 = vadd.f32 1.0, %v3768_v42  ;;  %vm1280_vm7 = vweird.f32 %v3766_v38  ;;  %v1298_v0 = vand.u32 2147483647, %v4898_v39 }
 0x149   : > { %3775 = vpow2.f32 %v3481_v43  ;;  %v1027_v51 = vsel %vm1026_vm6, %v3762_v22, %v1023_v44  ;;  %v1276_v52 = vsub.f32 1.0, %v1275_v45  ;;  %v1035_v53 = vmul.f32 %v3770_v47, %v4882_v23  ;;  %vm1281_vm10 = vmor %vm1279_vm3, %vm1280_vm7 }
 0x14a   : > { %3777 = vrcp.f32 %v4910_v48  ;;  %v855_v54 = vpop.f32.mrf.mxu2  ;;  %v1032_v55 = vsel %vm4889_vm1, %v1031_v40, %v1027_v51  ;;  %vm1040_vm9 = vweird.f32 %v3770_v47  ;;  %v1300_v1 = vand.u32 2147483648, %v4898_v39 }
 0x14b   : > { %v4924_v57 = vadd.f32 %v4856_v62, %v855_v54  ;;  %v1499_v58 = vmul.f32 %v1032_v55, %v4860_v3  ;;  %v1277_v59 = vmul.f32 %v3766_v38, %v1276_v52  ;;  %v1036_v60 = vsub.f32 1.0, %v1035_v53  ;;  %vm1041_vm12 = vmor %vm1039_vm5, %vm1040_vm9 }
 0x14c   : > { %v807_v61 = vpop.f32.mrf.mxu0  ;;  %vm1294_vm11 = vweird.f32 %v4898_v39  ;;  %v1301_v11 = vor.u32 1.1754944e-38, %v1300_v1  ;;  %v1058_v12 = vand.u32 2147483647, %v4910_v48  ;;  %vm4955_vm13 = vcmp.eq.f32.partialorder %v1298_v0, 8.507059e+37 }
 0x14d   : > { %v3772_v2 = vpop.eup %3771  ;;  %v3498_v4 = vmul.f32 -1.442695, %v4924_v57  ;;  %v4931_v5 = vadd.f32 %v4856_v62, %v807_v61  ;;  %1567 = vmatmul.f32.vlgmr.msra.gmra.mxu1 %v1499_v58  ;;  %v1278_v7 = vadd.f32 %v3766_v38, %v1277_v59  ;;  %v1037_v8 = vmul.f32 %v3770_v47, %v1036_v60 }
 0x14e   : > { %v4933_v10 = vpop.eup %3773  ;;  %v4935_v3 = vadd.f32 1.0, %v3772_v2  ;;  %vm1054_vm14 = vweird.f32 %v4910_v48  ;;  %v1060_v27 = vand.u32 2147483648, %v4910_v48  ;;  %vm4972_vm0 = vcmp.eq.f32.partialorder %v1058_v12, 8.507059e+37 }
 0x14f   : > { %v3776_v13 = vpop.eup %3775  ;;  %3779 = vpow2.f32 %v3498_v4  ;;  %v3482_v15 = vmul.f32 -1.442695, %v4931_v5  ;;  %v1282_v16 = vsel %vm1281_vm10, %v3766_v38, %v1278_v7  ;;  %v1038_v17 = vadd.f32 %v3770_v47, %v1037_v8 }
 0x150   : > { %v4943_v20 = vpop.eup %3777  ;;  %3781 = vrcp.f32 %v4935_v3  ;;  %v4946_v21 = vadd.f32 1.0, %v3776_v13  ;;  %v1287_v19 = vsel %vm4904_vm4, %v1286_v49, %v1282_v16  ;;  %v1290_v22 = vmul.f32 %v4933_v10, %v4898_v39 }
 0x151   : > { %3783 = vpow2.f32 %v3482_v15  ;;  %v1516_v25 = vmul.f32 %v1287_v19, %v4864_v6  ;;  %v1042_v26 = vsel %vm1041_vm12, %v3770_v47, %v1038_v17  ;;  %v1050_v31 = vmul.f32 %v4943_v20, %v4910_v48 }
 0x152   : > { %3785 = vrcp.f32 %v4946_v21  ;;  %v858_v29 = vpop.f32.mrf.mxu2  ;;  %v1047_v23 = vsel %vm4919_vm8, %v1046_v63, %v1042_v26  ;;  %v1291_v30 = vsub.f32 1.0, %v1290_v22  ;;  %vm1295_vm15 = vweird.f32 %v4933_v10 }
 0x153   : > { %v4968_v32 = vadd.f32 %v4856_v62, %v858_v29  ;;  %1618 = vmatmul.f32.vlgmr.msra.gmra.mxu3 %v1516_v25  ;;  %v1500_v33 = vmul.f32 %v1047_v23, %v4868_v9  ;;  %v1051_v37 = vsub.f32 1.0, %v1050_v31  ;;  %vm1055_vm1 = vweird.f32 %v4943_v20  ;;  %vm1296_vm3 = vmor %vm1294_vm11, %vm1295_vm15 }
 0x154   : > { %v810_v34 = vpop.f32.mrf.mxu0  ;;  %v1292_v35 = vmul.f32 %v4933_v10, %v1291_v30  ;;  %v1313_v38 = vand.u32 2147483647, %v4935_v3  ;;  %v1061_v9 = vor.u32 1.1754944e-38, %v1060_v27  ;;  %vm1309_vm2 = vweird.f32 %v4935_v3  ;;  %vm1056_vm6 = vmor %vm1054_vm14, %vm1055_vm1 }
 0x155   : > { %v3780_v40 = vpop.eup %3779  ;;  %v3499_v41 = vmul.f32 -1.442695, %v4968_v32  ;;  %v4981_v42 = vadd.f32 %v4856_v62, %v810_v34  ;;  %1570 = vmatmul.f32.gmra.mxu1 %v1500_v33  ;;  %v1052_v46 = vmul.f32 %v4943_v20, %v1051_v37  ;;  %v1315_v47 = vand.u32 2147483648, %v4935_v3 }
 0x156   : > { %v3782_v43 = vpop.eup %3781  ;;  %v4984_v44 = vadd.f32 1.0, %v3780_v40  ;;  %v1293_v45 = vadd.f32 %v4933_v10, %v1292_v35  ;;  %vm4995_vm4 = vcmp.eq.f32.partialorder %v1313_v38, 8.507059e+37  ;;  %vm1069_vm5 = vweird.f32 %v4946_v21 }
 0x157   : > { %v3784_v49 = vpop.eup %3783  ;;  %3787 = vpow2.f32 %v3499_v41  ;;  %v3483_v50 = vmul.f32 -1.442695, %v4981_v42  ;;  %v1305_v51 = vmul.f32 %v3782_v43, %v4935_v3  ;;  %v1053_v56 = vadd.f32 %v4943_v20, %v1052_v46 }
 0x158   : > { %v3786_v53 = vpop.eup %3785  ;;  %3789 = vrcp.f32 %v4984_v44  ;;  %v5000_v54 = vadd.f32 1.0, %v3784_v49  ;;  %v1297_v55 = vsel %vm1296_vm3, %v4933_v10, %v1293_v45  ;;  %vm1310_vm7 = vweird.f32 %v3782_v43 }
 0x159   : > { %3791 = vpow2.f32 %v3483_v50  ;;  %v1302_v39 = vsel %vm4955_vm13, %v1301_v11, %v1297_v55  ;;  %v1306_v58 = vsub.f32 1.0, %v1305_v51  ;;  %v1057_v61 = vsel %vm1056_vm6, %v4943_v20, %v1053_v56  ;;  %vm1311_vm9 = vmor %vm1309_vm2, %vm1310_vm7 }
 0x15a   : > { %3793 = vrcp.f32 %v5000_v54  ;;  %v861_v59 = vpop.f32.mrf.mxu2  ;;  %v1517_v60 = vmul.f32 %v1302_v39, %v4872_v14  ;;  %v1065_v63 = vmul.f32 %v3786_v53, %v4946_v21  ;;  %v1062_v1 = vsel %vm4972_vm0, %v1061_v9, %v1057_v61 }
 0x15b   : > { %v5016_v0 = vadd.f32 %v4856_v62, %v861_v59  ;;  %v1307_v2 = vmul.f32 %v3782_v43, %v1306_v58  ;;  %v1316_v48 = vor.u32 1.1754944e-38, %v1315_v47  ;;  %v1501_v7 = vmul.f32 %v1062_v1, %v4876_v18 }
 0x15c   : > { %1621 = vmatmul.f32.gmra.mxu3 %v1517_v60  ;;  %v813_v4 = vpop.f32.mrf.mxu0  ;;  %v1066_v8 = vsub.f32 1.0, %v1065_v63  ;;  %v1073_v10 = vand.u32 2147483647, %v4946_v21  ;;  %v1075_v14 = vand.u32 2147483648, %v4946_v21  ;;  %vm1070_vm8 = vweird.f32 %v3786_v53 }
 0x15d   : > { %v3788_v11 = vpop.eup %3787  ;;  %v3500_v12 = vmul.f32 -1.442695, %v5016_v0  ;;  %v5025_v13 = vadd.f32 %v4856_v62, %v813_v4  ;;  %v1308_v15 = vadd.f32 %v3782_v43, %v1307_v2  ;;  %1573 = vmatmul.f32.gmra.mxu1 %v1501_v7  ;;  %vm1071_vm11 = vmor %vm1069_vm5, %vm1070_vm8  ;;  %v1328_v34 = vand.u32 2147483647, %v4984_v44 }
 0x15e   : > { %v3790_v16 = vpop.eup %3789  ;;  %v5027_v17 = vadd.f32 1.0, %v3788_v11  ;;  %v1067_v18 = vmul.f32 %v3786_v53, %v1066_v8  ;;  %vm5032_vm10 = vcmp.eq.f32.partialorder %v1073_v10, 8.507059e+37  ;;  %v1076_v19 = vor.u32 1.1754944e-38, %v1075_v14 }
 0x15f   : > { %v3792_v22 = vpop.eup %3791  ;;  %3795 = vpow2.f32 %v3500_v12  ;;  %v3484_v24 = vmul.f32 -1.442695, %v5025_v13  ;;  %v1312_v25 = vsel %vm1311_vm9, %v3782_v43, %v1308_v15  ;;  %v1320_v26 = vmul.f32 %v3790_v16, %v4984_v44 }
 0x160   : > { %v5038_v27 = vpop.eup %3793  ;;  %3797 = vrcp.f32 %v5027_v17  ;;  %v5041_v29 = vadd.f32 1.0, %v3792_v22  ;;  %v1317_v3 = vsel %vm4995_vm4, %v1316_v48, %v1312_v25  ;;  %v1068_v23 = vadd.f32 %v3786_v53, %v1067_v18 }
 0x161   : > { %3799 = vpow2.f32 %v3484_v24  ;;  %v1518_v30 = vmul.f32 %v1317_v3, %v4886_v28  ;;  %v1321_v31 = vsub.f32 1.0, %v1320_v26  ;;  %vm1325_vm12 = vweird.f32 %v3790_v16 }
 0x162   : > { %3801 = vrcp.f32 %v5041_v29  ;;  %v864_v33 = vpop.f32.mrf.mxu2  ;;  %v1072_v6 = vsel %vm1071_vm11, %v3786_v53, %v1068_v23  ;;  %v1330_v35 = vand.u32 2147483648, %v4984_v44  ;;  %v1080_v21 = vmul.f32 %v5038_v27, %v5000_v54 }
 0x163   : > { %v5053_v37 = vadd.f32 %v4856_v62, %v864_v33  ;;  %v1077_v28 = vsel %vm5032_vm10, %v1076_v19, %v1072_v6  ;;  %v1322_v38 = vmul.f32 %v3790_v16, %v1321_v31  ;;  %vm1324_vm13 = vweird.f32 %v4984_v44 }
 0x164   : > { %1624 = vmatmul.f32.gmra.mxu3 %v1518_v30  ;;  %v816_v40 = vpop.f32.mrf.mxu0  ;;  %v1502_v41 = vmul.f32 %v1077_v28, %v4896_v36  ;;  %vm5061_vm14 = vcmp.eq.f32.partialorder %v1328_v34, 8.507059e+37  ;;  %v1331_v43 = vor.u32 1.1754944e-38, %v1330_v35  ;;  %v1081_v50 = vsub.f32 1.0, %v1080_v21  ;;  %vm1326_vm15 = vmor %vm1324_vm13, %vm1325_vm12 }
 0x165   : > { %v3796_v45 = vpop.eup %3795  ;;  %v3501_v46 = vmul.f32 -1.442695, %v5053_v37  ;;  %v5067_v47 = vadd.f32 %v4856_v62, %v816_v40  ;;  %v1323_v49 = vadd.f32 %v3790_v16, %v1322_v38  ;;  %vm1085_vm0 = vweird.f32 %v5038_v27 }
 0x166   : > { %v5069_v51 = vpop.eup %3797  ;;  %v5071_v52 = vadd.f32 1.0, %v3796_v45  ;;  %1576 = vmatmul.f32.gmra.mxu1 %v1502_v41  ;;  %v1088_v36 = vand.u32 2147483647, %v5000_v54  ;;  %v1090_v44 = vand.u32 2147483648, %v5000_v54  ;;  %v1082_v39 = vmul.f32 %v5038_v27, %v1081_v50 }
 0x167   : > { %v3800_v53 = vpop.eup %3799  ;;  %3803 = vpow2.f32 %v3501_v46  ;;  %v3485_v55 = vmul.f32 -1.442695, %v5067_v47  ;;  %v1327_v56 = vsel %vm1326_vm15, %v3790_v16, %v1323_v49  ;;  %vm1084_vm1 = vweird.f32 %v5000_v54 }
 0x168   : > { %v5079_v58 = vpop.eup %3801  ;;  %3805 = vrcp.f32 %v5071_v52  ;;  %v5082_v59 = vadd.f32 1.0, %v3800_v53  ;;  %v1332_v60 = vsel %vm5061_vm14, %v1331_v43, %v1327_v56  ;;  %v1083_v63 = vadd.f32 %v5038_v27, %v1082_v39  ;;  %vm1086_vm3 = vmor %vm1084_vm1, %vm1085_vm0 }
 0x169   : > { %3807 = vpow2.f32 %v3485_v55  ;;  %v1519_v61 = vmul.f32 %v1332_v60, %v4924_v57  ;;  %vm1089_vm2 = vcmp.eq.f32.partialorder %v1088_v36, 8.507059e+37  ;;  %v1091_v2 = vor.u32 1.1754944e-38, %v1090_v44 }
 0x16a   : > { %3809 = vrcp.f32 %v5082_v59  ;;  %v867_v1 = vpop.f32.mrf.mxu2  ;;  %v1335_v48 = vmul.f32 %v5069_v51, %v5027_v17  ;;  %vm1339_vm4 = vweird.f32 %v5027_v17  ;;  %v1087_v57 = vsel %vm1086_vm3, %v5038_v27, %v1083_v63 }
 0x16b   : > { %v5096_v54 = vadd.f32 %v4856_v62, %v867_v1  ;;  %vm1340_vm5 = vweird.f32 %v5069_v51  ;;  %v1343_v4 = vand.u32 2147483647, %v5027_v17  ;;  %v1092_v8 = vsel %vm1089_vm2, %v1091_v2, %v1087_v57 }
 0x16c   : > { %1627 = vmatmul.f32.gmra.mxu3 %v1519_v61  ;;  %v819_v7 = vpop.f32.mrf.mxu0  ;;  %v1336_v10 = vsub.f32 1.0, %v1335_v48  ;;  %v1345_v14 = vand.u32 2147483648, %v5027_v17  ;;  %v1095_v11 = vmul.f32 %v5079_v58, %v5041_v29  ;;  %v1503_v18 = vmul.f32 %v1092_v8, %v4931_v5  ;;  %vm1341_vm9 = vmor %vm1339_vm4, %vm1340_vm5 }
 0x16d   : > { %v3804_v12 = vpop.eup %3803  ;;  %v3502_v15 = vmul.f32 -1.442695, %v5096_v54  ;;  %v5106_v16 = vadd.f32 %v4856_v62, %v819_v7  ;;  %vm1099_vm6 = vweird.f32 %v5041_v29  ;;  %vm5115_vm7 = vcmp.eq.f32.partialorder %v1343_v4, 8.507059e+37 }
 0x16e   : > { %v5110_v20 = vpop.eup %3805  ;;  %v5112_v19 = vadd.f32 1.0, %v3804_v12  ;;  %v1337_v22 = vmul.f32 %v5069_v51, %v1336_v10  ;;  %v1096_v25 = vsub.f32 1.0, %v1095_v11  ;;  %1579 = vmatmul.f32.gmra.mxu1 %v1503_v18  ;;  %vm1100_vm8 = vweird.f32 %v5079_v58 }
 0x16f   : > { %v3808_v26 = vpop.eup %3807  ;;  %3811 = vpow2.f32 %v3502_v15  ;;  %v3486_v27 = vmul.f32 -1.442695, %v5106_v16  ;;  %v1103_v5 = vand.u32 2147483647, %v5041_v29  ;;  %v1346_v33 = vor.u32 1.1754944e-38, %v1345_v14  ;;  %vm1101_vm11 = vmor %vm1099_vm6, %vm1100_vm8 }
 0x170   : > { %v5122_v3 = vpop.eup %3809  ;;  %3813 = vrcp.f32 %v5112_v19  ;;  %v5125_v23 = vadd.f32 1.0, %v3808_v26  ;;  %v1338_v30 = vadd.f32 %v5069_v51, %v1337_v22  ;;  %v1097_v31 = vmul.f32 %v5079_v58, %v1096_v25 }
 0x171   : > { %3815 = vpow2.f32 %v3486_v27  ;;  %v1105_v6 = vand.u32 2147483648, %v5041_v29  ;;  %v1350_v34 = vmul.f32 %v5110_v20, %v5071_v52  ;;  %vm1104_vm10 = vcmp.eq.f32.partialorder %v1103_v5, 8.507059e+37 }
 0x172   : > { %3817 = vrcp.f32 %v5125_v23  ;;  %v870_v35 = vpop.f32.mrf.mxu2  ;;  %v1342_v28 = vsel %vm1341_vm9, %v5069_v51, %v1338_v30  ;;  %v1098_v38 = vadd.f32 %v5079_v58, %v1097_v31  ;;  %vm1355_vm12 = vweird.f32 %v5110_v20 }
 0x173   : > { %v5140_v21 = vadd.f32 %v4856_v62, %v870_v35  ;;  %v1347_v17 = vsel %vm5115_vm7, %v1346_v33, %v1342_v28  ;;  %v1106_v40 = vor.u32 1.1754944e-38, %v1105_v6  ;;  %v1351_v41 = vsub.f32 1.0, %v1350_v34 }
 0x174   : > { %v1520_v9 = vmul.f32 %v1347_v17, %v4968_v32  ;;  %v822_v43 = vpop.f32.mrf.mxu0  ;;  %v1102_v45 = vsel %vm1101_vm11, %v5079_v58, %v1098_v38  ;;  %v1358_v46 = vand.u32 2147483647, %v5071_v52  ;;  %vm1354_vm13 = vweird.f32 %v5071_v52 }
 0x175   : > { %v3812_v49 = vpop.eup %3811  ;;  %v3503_v50 = vmul.f32 -1.442695, %v5140_v21  ;;  %v5154_v51 = vadd.f32 %v4856_v62, %v822_v43  ;;  %v1107_v36 = vsel %vm1104_vm10, %v1106_v40, %v1102_v45  ;;  %v1352_v29 = vmul.f32 %v5110_v20, %v1351_v41  ;;  %vm1356_vm14 = vmor %vm1354_vm13, %vm1355_vm12 }
 0x176   : > { %v5157_v44 = vpop.eup %3813  ;;  %v5159_v53 = vadd.f32 1.0, %v3812_v49  ;;  %1630 = vmatmul.f32.gmra.mxu3 %v1520_v9  ;;  %v1504_v32 = vmul.f32 %v1107_v36, %v4981_v42  ;;  %v1360_v55 = vand.u32 2147483648, %v5071_v52  ;;  %v1110_v60 = vmul.f32 %v5122_v3, %v5082_v59 }
 0x177   : > { %v3816_v56 = vpop.eup %3815  ;;  %3819 = vpow2.f32 %v3503_v50  ;;  %v3487_v39 = vmul.f32 -1.442695, %v5154_v51  ;;  %v1353_v58 = vadd.f32 %v5110_v20, %v1352_v29  ;;  %vm1359_vm15 = vcmp.eq.f32.partialorder %v1358_v46, 8.507059e+37 }
 0x178   : > { %v5168_v61 = vpop.eup %3817  ;;  %3821 = vrcp.f32 %v5159_v53  ;;  %v5171_v63 = vadd.f32 1.0, %v3816_v56  ;;  %1582 = vmatmul.f32.gmra.mxu1 %v1504_v32  ;;  %v1361_v42 = vor.u32 1.1754944e-38, %v1360_v55  ;;  %v1111_v1 = vsub.f32 1.0, %v1110_v60 }
 0x179   : > { %3823 = vpow2.f32 %v3487_v39  ;;  %v1357_v52 = vsel %vm1356_vm14, %v5110_v20, %v1353_v58  ;;  %vm1114_vm0 = vweird.f32 %v5082_v59  ;;  %vm1115_vm1 = vweird.f32 %v5122_v3 }
 0x17a   : > { %v873_v2 = vpop.f32.mrf.mxu2  ;;  %v1362_v48 = vsel %vm1359_vm15, %v1361_v42, %v1357_v52  ;;  %v1118_v57 = vand.u32 2147483647, %v5082_v59  ;;  %v1120_v4 = vand.u32 2147483648, %v5082_v59  ;;  %v1112_v10 = vmul.f32 %v5122_v3, %v1111_v1  ;;  %vm1116_vm4 = vmor %vm1114_vm0, %vm1115_vm1 }
 0x17b   : > { %v5181_v7 = vadd.f32 %v4856_v62, %v873_v2  ;;  %v1521_v8 = vmul.f32 %v1362_v48, %v5016_v0  ;;  %v1365_v14 = vmul.f32 %v5157_v44, %v5112_v19  ;;  %3825 = vrcp.f32 %v5171_v63 }
 0x17c   : > { %v825_v11 = vpop.f32.mrf.mxu0  ;;  %vm5188_vm2 = vcmp.eq.f32.partialorder %v1118_v57, 8.507059e+37  ;;  %v1121_v15 = vor.u32 1.1754944e-38, %v1120_v4  ;;  %vm1370_vm3 = vweird.f32 %v5157_v44  ;;  %v1113_v22 = vadd.f32 %v5122_v3, %v1112_v10 }
 0x17d   : > { %v3820_v18 = vpop.eup %3819  ;;  %v3504_v20 = vmul.f32 -1.442695, %v5181_v7  ;;  %v5195_v0 = vadd.f32 %v4856_v62, %v825_v11  ;;  %v1366_v24 = vsub.f32 1.0, %v1365_v14  ;;  %v1373_v27 = vand.u32 2147483647, %v5112_v19 }
 0x17e   : > { %v5198_v25 = vpop.eup %3821  ;;  %v5200_v26 = vadd.f32 1.0, %v3820_v18  ;;  %1633 = vmatmul.f32.gmra.mxu3 %v1521_v8  ;;  %v1375_v5 = vand.u32 2147483648, %v5112_v19  ;;  %v1125_v30 = vmul.f32 %v5168_v61, %v5125_v23  ;;  %v1117_v6 = vsel %vm1116_vm4, %v5122_v3, %v1113_v22 }
 0x17f   : > { %v3824_v31 = vpop.eup %3823  ;;  %3827 = vpow2.f32 %v3504_v20  ;;  %v3488_v33 = vmul.f32 -1.442695, %v5195_v0  ;;  %v1367_v34 = vmul.f32 %v5157_v44, %v1366_v24  ;;  %v1122_v59 = vsel %vm5188_vm2, %v1121_v15, %v1117_v6 }
 0x180   : > { %3829 = vrcp.f32 %v5200_v26  ;;  %v5214_v35 = vadd.f32 1.0, %v3824_v31  ;;  %vm1369_vm5 = vweird.f32 %v5112_v19  ;;  %v1505_v28 = vmul.f32 %v1122_v59, %v5025_v13 }
 0x181   : > { %3831 = vpow2.f32 %v3488_v33  ;;  %v1368_v38 = vadd.f32 %v5157_v44, %v1367_v34  ;;  %vm1374_vm6 = vcmp.eq.f32.partialorder %v1373_v27, 8.507059e+37  ;;  %v5221_v17 = vpop.eup %3825  ;;  %vm1371_vm7 = vmor %vm1369_vm5, %vm1370_vm3  ;;  %v1376_v40 = vor.u32 1.1754944e-38, %v1375_v5 }
 0x182   : > { %3833 = vrcp.f32 %v5214_v35  ;;  %v876_v3 = vpop.f32.mrf.mxu2  ;;  %v1126_v41 = vsub.f32 1.0, %v1125_v30  ;;  %vm1129_vm8 = vweird.f32 %v5125_v23  ;;  %1585 = vmatmul.f32.gmra.mxu1 %v1505_v28  ;;  %v1133_v9 = vand.u32 2147483647, %v5125_v23 }
 0x183   : > { %v5228_v19 = vadd.f32 %v4856_v62, %v876_v3  ;;  %v1372_v13 = vsel %vm1371_vm7, %v5157_v44, %v1368_v38  ;;  %v1135_v43 = vand.u32 2147483648, %v5125_v23  ;;  %vm1130_vm9 = vweird.f32 %v5168_v61 }
 0x184   : > { %v1377_v45 = vsel %vm1374_vm6, %v1376_v40, %v1372_v13  ;;  %v828_v46 = vpop.f32.mrf.mxu0  ;;  %v1127_v49 = vmul.f32 %v5168_v61, %v1126_v41  ;;  %v1380_v50 = vmul.f32 %v5198_v25, %v5159_v53  ;;  %vm5242_vm10 = vcmp.eq.f32.partialorder %v1133_v9, 8.507059e+37  ;;  %vm1131_vm11 = vmor %vm1129_vm8, %vm1130_vm9 }
 0x185   : > { %v3828_v36 = vpop.eup %3827  ;;  %v3505_v29 = vmul.f32 -1.442695, %v5228_v19  ;;  %v1522_v32 = vmul.f32 %v1377_v45, %v5053_v37  ;;  %v5240_v44 = vadd.f32 %v4856_v62, %v828_v46  ;;  %v1136_v60 = vor.u32 1.1754944e-38, %v1135_v43 }
 0x186   : > { %v5246_v56 = vpop.eup %3829  ;;  %v5248_v39 = vadd.f32 1.0, %v3828_v36  ;;  %v1128_v58 = vadd.f32 %v5168_v61, %v1127_v49  ;;  %v1381_v42 = vsub.f32 1.0, %v1380_v50  ;;  %vm1385_vm12 = vweird.f32 %v5198_v25 }
 0x187   : > { %v3832_v52 = vpop.eup %3831  ;;  %3835 = vpow2.f32 %v3505_v29  ;;  %1636 = vmatmul.f32.gmra.mxu3 %v1522_v32  ;;  %v3489_v37 = vmul.f32 -1.442695, %v5240_v44  ;;  %v1388_v1 = vand.u32 2147483647, %v5159_v53  ;;  %vm1384_vm13 = vweird.f32 %v5159_v53 }
 0x188   : > { %v5258_v2 = vpop.eup %3833  ;;  %3837 = vrcp.f32 %v5248_v39  ;;  %v5261_v48 = vadd.f32 1.0, %v3832_v52  ;;  %v1132_v57 = vsel %vm1131_vm11, %v5168_v61, %v1128_v58  ;;  %v1382_v4 = vmul.f32 %v5198_v25, %v1381_v42  ;;  %vm1386_vm15 = vmor %vm1384_vm13, %vm1385_vm12 }
 0x189   : > { %3839 = vpow2.f32 %v3489_v37  ;;  %v1137_v8 = vsel %vm5242_vm10, %v1136_v60, %v1132_v57  ;;  %v1390_v23 = vand.u32 2147483648, %v5159_v53  ;;  %vm1389_vm14 = vcmp.eq.f32.partialorder %v1388_v1, 8.507059e+37 }
 0x18a   : > { %v1506_v10 = vmul.f32 %v1137_v8, %v5067_v47  ;;  %v879_v14 = vpop.f32.mrf.mxu2  ;;  %v1383_v11 = vadd.f32 %v5198_v25, %v1382_v4  ;;  %v1140_v12 = vmul.f32 %v5221_v17, %v5171_v63  ;;  %3841 = vrcp.f32 %v5261_v48 }
 0x18b   : > { %v5275_v61 = vadd.f32 %v4856_v62, %v879_v14  ;;  %v1391_v15 = vor.u32 1.1754944e-38, %v1390_v23  ;;  %vm1144_vm0 = vweird.f32 %v5171_v63  ;;  %v1148_v20 = vand.u32 2147483647, %v5171_v63 }
 0x18c   : > { %1588 = vmatmul.f32.gmra.mxu1 %v1506_v10  ;;  %v1387_v47 = vsel %vm1386_vm15, %v5198_v25, %v1383_v11  ;;  %v831_v53 = vpop.f32.mrf.mxu0  ;;  %v1141_v18 = vsub.f32 1.0, %v1140_v12  ;;  %v1150_v22 = vand.u32 2147483648, %v5171_v63  ;;  %v1395_v31 = vmul.f32 %v5246_v56, %v5200_v26 }
 0x18d   : > { %v3836_v24 = vpop.eup %3835  ;;  %v3506_v27 = vmul.f32 -1.442695, %v5275_v61  ;;  %v1392_v5 = vsel %vm1389_vm14, %v1391_v15, %v1387_v47  ;;  %v5285_v30 = vadd.f32 %v4856_v62, %v831_v53  ;;  %vm1145_vm1 = vweird.f32 %v5221_v17 }
 0x18e   : > { %v5289_v33 = vpop.eup %3837  ;;  %v5291_v6 = vadd.f32 1.0, %v3836_v24  ;;  %v1523_v25 = vmul.f32 %v1392_v5, %v5096_v54  ;;  %v1142_v34 = vmul.f32 %v5221_v17, %v1141_v18  ;;  %vm5297_vm2 = vcmp.eq.f32.partialorder %v1148_v20, 8.507059e+37  ;;  %vm1146_vm3 = vmor %vm1144_vm0, %vm1145_vm1 }
 0x18f   : > { %v3840_v59 = vpop.eup %3839  ;;  %3843 = vpow2.f32 %v3506_v27  ;;  %v3490_v28 = vmul.f32 -1.442695, %v5285_v30  ;;  %v1396_v3 = vsub.f32 1.0, %v1395_v31  ;;  %v1151_v41 = vor.u32 1.1754944e-38, %v1150_v22 }
 0x190   : > { %3845 = vrcp.f32 %v5291_v6  ;;  %v5302_v40 = vadd.f32 1.0, %v3840_v59  ;;  %1639 = vmatmul.f32.gmra.mxu3 %v1523_v25  ;;  %v1143_v54 = vadd.f32 %v5221_v17, %v1142_v34  ;;  %v5305_v13 = vpop.eup %3841  ;;  %vm1400_vm4 = vweird.f32 %v5246_v56 }
 0x191   : > { %3847 = vpow2.f32 %v3490_v28  ;;  %v1397_v9 = vmul.f32 %v5246_v56, %v1396_v3  ;;  %v1403_v43 = vand.u32 2147483647, %v5200_v26  ;;  %vm1399_vm5 = vweird.f32 %v5200_v26 }
 0x192   : > { %v1147_v45 = vsel %vm1146_vm3, %v5221_v17, %v1143_v54  ;;  %v882_v46 = vpop.f32.mrf.mxu2  ;;  %v1405_v49 = vand.u32 2147483648, %v5200_v26  ;;  %v1155_v50 = vmul.f32 %v5258_v2, %v5214_v35  ;;  %3849 = vrcp.f32 %v5302_v40  ;;  %vm1401_vm6 = vmor %vm1399_vm5, %vm1400_vm4 }
 0x193   : > { %v1152_v63 = vsel %vm5297_vm2, %v1151_v41, %v1147_v45  ;;  %v5321_v36 = vadd.f32 %v4856_v62, %v882_v46  ;;  %v1398_v29 = vadd.f32 %v5246_v56, %v1397_v9  ;;  %vm1404_vm7 = vcmp.eq.f32.partialorder %v1403_v43, 8.507059e+37 }
 0x194   : > { %v1507_v17 = vmul.f32 %v1152_v63, %v5106_v16  ;;  %v1406_v32 = vor.u32 1.1754944e-38, %v1405_v49  ;;  %v834_v55 = vpop.f32.mrf.mxu0  ;;  %v1156_v26 = vsub.f32 1.0, %v1155_v50  ;;  %vm1160_vm8 = vweird.f32 %v5258_v2 }
 0x195   : > { %v3844_v58 = vpop.eup %3843  ;;  %v3507_v60 = vmul.f32 -1.442695, %v5321_v36  ;;  %v1402_v42 = vsel %vm1401_vm6, %v5246_v56, %v1398_v29  ;;  %v5328_v52 = vadd.f32 %v4856_v62, %v834_v55  ;;  %v1163_v4 = vand.u32 2147483647, %v5214_v35 }
 0x196   : > { %v5331_v37 = vpop.eup %3845  ;;  %v5333_v1 = vadd.f32 1.0, %v3844_v58  ;;  %1591 = vmatmul.f32.gmra.mxu1 %v1507_v17  ;;  %v1407_v16 = vsel %vm1404_vm7, %v1406_v32, %v1402_v42  ;;  %v1157_v57 = vmul.f32 %v5258_v2, %v1156_v26  ;;  %v1165_v10 = vand.u32 2147483648, %v5214_v35 }
 0x197   : > { %v3848_v8 = vpop.eup %3847  ;;  %3851 = vpow2.f32 %v3507_v60  ;;  %v1524_v23 = vmul.f32 %v1407_v16, %v5140_v21  ;;  %v3491_v56 = vmul.f32 -1.442695, %v5328_v52  ;;  %vm1159_vm9 = vweird.f32 %v5214_v35 }
 0x198   : > { %3853 = vrcp.f32 %v5333_v1  ;;  %v5341_v14 = vadd.f32 1.0, %v3848_v8  ;;  %v1158_v11 = vadd.f32 %v5258_v2, %v1157_v57  ;;  %v5345_v12 = vpop.eup %3849  ;;  %vm1161_vm10 = vmor %vm1159_vm9, %vm1160_vm8  ;;  %v1166_v21 = vor.u32 1.1754944e-38, %v1165_v10 }
 0x199   : > { %1642 = vmatmul.f32.gmra.mxu3 %v1524_v23  ;;  %3855 = vpow2.f32 %v3491_v56  ;;  %v1410_v15 = vmul.f32 %v5289_v33, %v5248_v39  ;;  %vm1164_vm11 = vcmp.eq.f32.partialorder %v1163_v4, 8.507059e+37  ;;  %vm1414_vm12 = vweird.f32 %v5248_v39 }
 0x19a   : > { %v1162_v47 = vsel %vm1161_vm10, %v5258_v2, %v1158_v11  ;;  %v885_v53 = vpop.f32.mrf.mxu2  ;;  %v1418_v18 = vand.u32 2147483647, %v5248_v39  ;;  %3857 = vrcp.f32 %v5341_v14  ;;  %vm1415_vm13 = vweird.f32 %v5289_v33 }
 0x19b   : > { %v1167_v35 = vsel %vm1164_vm11, %v1166_v21, %v1162_v47  ;;  %v5356_v20 = vadd.f32 %v4856_v62, %v885_v53  ;;  %v1411_v22 = vsub.f32 1.0, %v1410_v15  ;;  %v1420_v27 = vand.u32 2147483648, %v5248_v39  ;;  %v5372_v62 = vld [vmem:[%s7366_s8] ss:$0 sm:$0xff]  ;;  %vm1416_vm0 = vmor %vm1414_vm12, %vm1415_vm13 }
 0x19c   : > { %v1508_v24 = vmul.f32 %v1167_v35, %v5154_v51  ;;  %v837_v2 = vpop.f32.mrf.mxu0  ;;  %v1170_v5 = vmul.f32 %v5305_v13, %v5261_v48  ;;  %vm5365_vm14 = vcmp.eq.f32.partialorder %v1418_v18, 8.507059e+37  ;;  %vm1174_vm15 = vweird.f32 %v5261_v48 }
 0x19d   : > { %v3852_v31 = vpop.eup %3851  ;;  %v3508_v25 = vmul.f32 -1.442695, %v5356_v20  ;;  %v1412_v34 = vmul.f32 %v5289_v33, %v1411_v22  ;;  %v5375_v51 = vadd.f32 %v5372_v62, %v837_v2  ;;  %v1178_v54 = vand.u32 2147483647, %v5261_v48 }
 0x19e   : > { %v5377_v28 = vpop.eup %3853  ;;  %v5379_v38 = vadd.f32 1.0, %v3852_v31  ;;  %1594 = vmatmul.f32.gmra.mxu1 %v1508_v24  ;;  %v1171_v3 = vsub.f32 1.0, %v1170_v5  ;;  %v1180_v45 = vand.u32 2147483648, %v5261_v48  ;;  %v1421_v46 = vor.u32 1.1754944e-38, %v1420_v27 }
 0x19f   : > { %v3856_v41 = vpop.eup %3855  ;;  %3859 = vpow2.f32 %v3508_v25  ;;  %v1413_v9 = vadd.f32 %v5289_v33, %v1412_v34  ;;  %v3492_v43 = vmul.f32 -1.442695, %v5375_v51  ;;  %vm1175_vm1 = vweird.f32 %v5305_v13 }
 0x1a0   : > { %3861 = vrcp.f32 %v5379_v38  ;;  %v1172_v49 = vmul.f32 %v5305_v13, %v1171_v3  ;;  %v5393_v50 = vpop.eup %3857  ;;  %v5395_v63 = vadd.f32 1.0, %v3856_v41  ;;  %v1425_v17 = vmul.f32 %v5331_v37, %v5291_v6  ;;  %vm1176_vm3 = vmor %vm1174_vm15, %vm1175_vm1 }
 0x1a1   : > { %v1417_v29 = vsel %vm1416_vm0, %v5289_v33, %v1413_v9  ;;  %3863 = vpow2.f32 %v3492_v43  ;;  %vm1179_vm2 = vcmp.eq.f32.partialorder %v1178_v54, 8.507059e+37  ;;  %v1181_v55 = vor.u32 1.1754944e-38, %v1180_v45 }
 0x1a2   : > { %v1422_v32 = vsel %vm5365_vm14, %v1421_v46, %v1417_v29  ;;  %v1173_v39 = vadd.f32 %v5305_v13, %v1172_v49  ;;  %v888_v26 = vpop.f32.mrf.mxu2  ;;  %v1426_v33 = vsub.f32 1.0, %v1425_v17  ;;  %vm1430_vm4 = vweird.f32 %v5331_v37 }
 0x1a3   : > { %v1525_v58 = vmul.f32 %v1422_v32, %v5181_v7  ;;  %v5407_v60 = vadd.f32 %v5372_v62, %v888_v26  ;;  %v1433_v16 = vand.u32 2147483647, %v5291_v6  ;;  %v1435_v57 = vand.u32 2147483648, %v5291_v6 }
 0x1a4   : > { %v1177_v42 = vsel %vm1176_vm3, %v5305_v13, %v1173_v39  ;;  %v840_v4 = vpop.f32.mrf.mxu0  ;;  %v1185_v8 = vmul.f32 %v5345_v12, %v5302_v40  ;;  %v1427_v56 = vmul.f32 %v5331_v37, %v1426_v33  ;;  %3865 = vrcp.f32 %v5395_v63 }
 0x1a5   : > { %v3860_v7 = vpop.eup %3859  ;;  %1645 = vmatmul.f32.gmra.mxu3 %v1525_v58  ;;  %v1182_v48 = vsel %vm1179_vm2, %v1181_v55, %v1177_v42  ;;  %v3509_v23 = vmul.f32 -1.442695, %v5407_v60  ;;  %v5418_v10 = vadd.f32 %v5372_v62, %v840_v4  ;;  %vm1429_vm5 = vweird.f32 %v5291_v6 }
 0x1a6   : > { %v5420_v11 = vpop.eup %3861  ;;  %v5423_v13 = vadd.f32 1.0, %v3860_v7  ;;  %v1509_v21 = vmul.f32 %v1182_v48, %v5195_v0  ;;  %v1428_v47 = vadd.f32 %v5331_v37, %v1427_v56  ;;  %v1186_v18 = vsub.f32 1.0, %v1185_v8  ;;  %vm1431_vm6 = vmor %vm1429_vm5, %vm1430_vm4 }
 0x1a7   : > { %v3864_v15 = vpop.eup %3863  ;;  %3867 = vpow2.f32 %v3509_v23  ;;  %v3493_v53 = vmul.f32 -1.442695, %v5418_v10  ;;  %vm1434_vm7 = vcmp.eq.f32.partialorder %v1433_v16, 8.507059e+37  ;;  %v1436_v22 = vor.u32 1.1754944e-38, %v1435_v57 }
 0x1a8   : > { %v5429_v35 = vadd.f32 1.0, %v3864_v15  ;;  %1597 = vmatmul.f32.gmra.mxu1 %v1509_v21  ;;  %vm1190_vm8 = vweird.f32 %v5345_v12  ;;  %v1432_v0 = vsel %vm1431_vm6, %v5331_v37, %v1428_v47  ;;  %v1187_v6 = vmul.f32 %v5345_v12, %v1186_v18 }
 0x1a9   : > { %3869 = vpow2.f32 %v3493_v53  ;;  %v1193_v24 = vand.u32 2147483647, %v5302_v40  ;;  %v1437_v27 = vsel %vm1434_vm7, %v1436_v22, %v1432_v0  ;;  %v1195_v2 = vand.u32 2147483648, %v5302_v40 }
 0x1aa   : > { %3871 = vrcp.f32 %v5423_v13  ;;  %v1440_v5 = vmul.f32 %v5377_v28, %v5333_v1  ;;  %v1526_v31 = vmul.f32 %v1437_v27, %v5228_v19  ;;  %v1188_v25 = vadd.f32 %v5345_v12, %v1187_v6  ;;  %v5445_v37 = vpop.eup %3865 }
 0x1ab   : > { %3873 = vrcp.f32 %v5429_v35  ;;  %vm1189_vm9 = vweird.f32 %v5302_v40  ;;  %vm1194_vm11 = vcmp.eq.f32.partialorder %v1193_v24, 8.507059e+37  ;;  %v1196_v34 = vor.u32 1.1754944e-38, %v1195_v2 }
 0x1ac   : > { %vm1191_vm10 = vmor %vm1189_vm9, %vm1190_vm8  ;;  %v1441_v59 = vsub.f32 1.0, %v1440_v5  ;;  %vm1444_vm12 = vweird.f32 %v5333_v1  ;;  %vm1445_vm13 = vweird.f32 %v5377_v28  ;;  %v1450_v19 = vand.u32 2147483648, %v5333_v1 }
 0x1ad   : > { %v3868_v3 = vpop.eup %3867  ;;  %1648 = vmatmul.f32.gmra.mxu3 %v1526_v31  ;;  %v1192_v54 = vsel %vm1191_vm10, %v5345_v12, %v1188_v25  ;;  %v1200_v41 = vmul.f32 %v5393_v50, %v5341_v14  ;;  %v1448_v45 = vand.u32 2147483647, %v5333_v1  ;;  %vm1204_vm14 = vweird.f32 %v5341_v14  ;;  %vm1446_vm0 = vmor %vm1444_vm12, %vm1445_vm13 }
 0x1ae   : > { %v5453_v40 = vadd.f32 1.0, %v3868_v3  ;;  %v1197_v9 = vsel %vm1194_vm11, %v1196_v34, %v1192_v54  ;;  %v1442_v43 = vmul.f32 %v5377_v28, %v1441_v59  ;;  %v1451_v29 = vor.u32 1.1754944e-38, %v1450_v19 }
 0x1af   : > { %v3870_v46 = vpop.eup %3869  ;;  %v1510_v49 = vmul.f32 %v1197_v9, %v5240_v44  ;;  %v1201_v17 = vsub.f32 1.0, %v1200_v41  ;;  %vm1205_vm15 = vweird.f32 %v5393_v50  ;;  %v1208_v26 = vand.u32 2147483647, %v5341_v14 }
 0x1b0   : > { %v5459_v12 = vpop.eup %3871  ;;  %3875 = vrcp.f32 %v5453_v40  ;;  %v5462_v32 = vadd.f32 1.0, %v3870_v46  ;;  %v1443_v39 = vadd.f32 %v5377_v28, %v1442_v43  ;;  %v1210_v58 = vand.u32 2147483648, %v5341_v14  ;;  %vm1206_vm3 = vmor %vm1204_vm14, %vm1205_vm15 }
 0x1b1   : > { %v5466_v55 = vpop.eup %3873  ;;  %1600 = vmatmul.f32.gmra.mxu1 %v1510_v49  ;;  %v1202_v44 = vmul.f32 %v5393_v50, %v1201_v17  ;;  %v1455_v33 = vmul.f32 %v5420_v11, %v5379_v38  ;;  %vm1449_vm1 = vcmp.eq.f32.partialorder %v1448_v45, 8.507059e+37  ;;  %vm1459_vm2 = vweird.f32 %v5379_v38  ;;  %v843_v45 = vpop.f32.mrf.mxu0 }
 0x1b2   : > { %3877 = vrcp.f32 %v5462_v32  ;;  %v1447_v42 = vsel %vm1446_vm0, %v5377_v28, %v1443_v39  ;;  %v1211_v57 = vor.u32 1.1754944e-38, %v1210_v58  ;;  %v1463_v7 = vand.u32 2147483647, %v5379_v38 }
 0x1b3   : > { %v1452_v16 = vsel %vm1449_vm1, %v1451_v29, %v1447_v42  ;;  %v1203_v1 = vadd.f32 %v5393_v50, %v1202_v44  ;;  %v1456_v4 = vsub.f32 1.0, %v1455_v33  ;;  %v1465_v48 = vand.u32 2147483648, %v5379_v38 }
 0x1b4   : > { %v1527_v8 = vmul.f32 %v1452_v16, %v5275_v61  ;;  %v1215_v28 = vmul.f32 %v5445_v37, %v5395_v63  ;;  %vm1209_vm4 = vcmp.eq.f32.partialorder %v1208_v26, 8.507059e+37  ;;  %vm1460_vm5 = vweird.f32 %v5420_v11 }
 0x1b5   : > { %v1207_v23 = vsel %vm1206_vm3, %v5393_v50, %v1203_v1  ;;  %v1457_v56 = vmul.f32 %v5420_v11, %v1456_v4  ;;  %vm1219_vm6 = vweird.f32 %v5395_v63  ;;  %vm1220_vm7 = vweird.f32 %v5445_v37  ;;  %vm1461_vm8 = vmor %vm1459_vm2, %vm1460_vm5 }
 0x1b6   : > { %v5493_v61 = vpop.eup %3875  ;;  %1651 = vmatmul.f32.gmra.mxu3 %v1527_v8  ;;  %v1212_v21 = vsel %vm1209_vm4, %v1211_v57, %v1207_v23  ;;  %v1216_v14 = vsub.f32 1.0, %v1215_v28  ;;  %v1223_v50 = vand.u32 2147483647, %v5395_v63  ;;  %v1225_v53 = vand.u32 2147483648, %v5395_v63  ;;  %vm1221_vm12 = vmor %vm1219_vm6, %vm1220_vm7 }
 0x1b7   : > { %v1511_v15 = vmul.f32 %v1212_v21, %v5285_v30  ;;  %v1458_v47 = vadd.f32 %v5420_v11, %v1457_v56  ;;  %vm1464_vm9 = vcmp.eq.f32.partialorder %v1463_v7, 8.507059e+37  ;;  %v1466_v22 = vor.u32 1.1754944e-38, %v1465_v48 }
 0x1b8   : > { %v5501_v18 = vpop.eup %3877  ;;  %v1217_v0 = vmul.f32 %v5445_v37, %v1216_v14  ;;  %v1470_v6 = vmul.f32 %v5459_v12, %v5423_v13  ;;  %vm1474_vm10 = vweird.f32 %v5423_v13  ;;  %vm1475_vm11 = vweird.f32 %v5459_v12 }
 0x1b9   : > { %1603 = vmatmul.f32.gmra.mxu1 %v1511_v15  ;;  %v1462_v30 = vsel %vm1461_vm8, %v5420_v11, %v1458_v47  ;;  %v1478_v24 = vand.u32 2147483647, %v5423_v13  ;;  %v1480_v5 = vand.u32 2147483648, %v5423_v13  ;;  %vm1224_vm13 = vcmp.eq.f32.partialorder %v1223_v50, 8.507059e+37  ;;  %vm1476_vm0 = vmor %vm1474_vm10, %vm1475_vm11 }
 0x1ba   : > { %v1467_v27 = vsel %vm1464_vm9, %v1466_v22, %v1462_v30  ;;  %v1218_v38 = vadd.f32 %v5445_v37, %v1217_v0  ;;  %v1471_v2 = vsub.f32 1.0, %v1470_v6  ;;  %v1226_v11 = vor.u32 1.1754944e-38, %v1225_v53 }
 0x1bb   : > { %v1528_v31 = vmul.f32 %v1467_v27, %v5321_v36  ;;  %v1230_v25 = vmul.f32 %v5466_v55, %v5429_v35  ;;  %vm5523_vm14 = vcmp.eq.f32.partialorder %v1478_v24, 8.507059e+37  ;;  %vm1234_vm15 = vweird.f32 %v5429_v35 }
 0x1bc   : > { %v1222_v34 = vsel %vm1221_vm12, %v5445_v37, %v1218_v38  ;;  %v1472_v59 = vmul.f32 %v5459_v12, %v1471_v2  ;;  %v1238_v63 = vand.u32 2147483647, %v5429_v35  ;;  %v1240_v19 = vand.u32 2147483648, %v5429_v35 }
 0x1bd   : > { %v1227_v36 = vsel %vm1224_vm13, %v1226_v11, %v1222_v34  ;;  %v1231_v54 = vsub.f32 1.0, %v1230_v25  ;;  %v1481_v37 = vor.u32 1.1754944e-38, %v1480_v5  ;;  %v1485_v43 = vmul.f32 %v5493_v61, %v5453_v40  ;;  %v5579_v25 = vld [vmem:[%s7368_s10] ss:$0 sm:$0xff] }
 0x1be   : > { %1654 = vmatmul.f32.gmra.mxu3 %v1528_v31  ;;  %v1512_v41 = vmul.f32 %v1227_v36, %v5328_v52  ;;  %v1473_v9 = vadd.f32 %v5459_v12, %v1472_v59  ;;  %vm1235_vm1 = vweird.f32 %v5466_v55  ;;  %vm5540_vm2 = vcmp.eq.f32.partialorder %v1238_v63, 8.507059e+37 }
 0x1bf   : > { %v1232_v46 = vmul.f32 %v5466_v55, %v1231_v54  ;;  %vm1489_vm3 = vweird.f32 %v5453_v40  ;;  %v1241_v29 = vor.u32 1.1754944e-38, %v1240_v19  ;;  %v1486_v17 = vsub.f32 1.0, %v1485_v43  ;;  %vm1236_vm4 = vmor %vm1234_vm15, %vm1235_vm1 }
 0x1c0   : > { %v1477_v52 = vsel %vm1476_vm0, %v5459_v12, %v1473_v9  ;;  %v1495_v39 = vand.u32 2147483648, %v5453_v40  ;;  %v844_v26 = vadd.f32 %v5372_v62, %v843_v45  ;;  %v1245_v58 = vmul.f32 %v5501_v18, %v5462_v32 }
 0x1c1   : > { %1606 = vmatmul.f32.gmra.mxu1 %v1512_v41  ;;  %v1482_v13 = vsel %vm5523_vm14, %v1481_v37, %v1477_v52  ;;  %v1233_v44 = vadd.f32 %v5466_v55, %v1232_v46  ;;  %v1487_v12 = vmul.f32 %v5493_v61, %v1486_v17  ;;  %vm1490_vm5 = vweird.f32 %v5493_v61 }
 0x1c2   : > { %v1529_v33 = vmul.f32 %v1482_v13, %v5356_v20  ;;  %v1493_v42 = vand.u32 2147483647, %v5453_v40  ;;  %v1496_v1 = vor.u32 1.1754944e-38, %v1495_v39  ;;  %v3494_v57 = vmul.f32 -1.442695, %v844_v26  ;;  %vm1491_vm7 = vmor %vm1489_vm3, %vm1490_vm5 }
 0x1c3   : > { %v1237_v16 = vsel %vm1236_vm4, %v5466_v55, %v1233_v44  ;;  %v1246_v4 = vsub.f32 1.0, %v1245_v58  ;;  %v1488_v8 = vadd.f32 %v5493_v61, %v1487_v12  ;;  %vm1250_vm6 = vweird.f32 %v5501_v18 }
 0x1c4   : > { %v1242_v62 = vsel %vm5540_vm2, %v1241_v29, %v1237_v16  ;;  %v1253_v20 = vand.u32 2147483647, %v5462_v32  ;;  %3879 = vpow2.f32 %v3494_v57  ;;  %v1255_v7 = vand.u32 2147483648, %v5462_v32 }
 0x1c5   : > { %v1513_v35 = vmul.f32 %v1242_v62, %v5375_v51  ;;  %v1247_v55 = vmul.f32 %v5501_v18, %v1246_v4  ;;  %v1492_v48 = vsel %vm1491_vm7, %v5493_v61, %v1488_v8  ;;  %vm1494_vm8 = vcmp.eq.f32.partialorder %v1493_v42, 8.507059e+37 }
 0x1c6   : > { %1657 = vmatmul.f32.gmra.mxu3 %v1529_v33  ;;  %v1497_v28 = vsel %vm1494_vm8, %v1496_v1, %v1492_v48  ;;  %vm1249_vm9 = vweird.f32 %v5462_v32  ;;  %v1256_v56 = vor.u32 1.1754944e-38, %v1255_v7  ;;  %vm1254_vm11 = vcmp.eq.f32.partialorder %v1253_v20, 8.507059e+37 }
 0x1c7   : > { %v1248_v23 = vadd.f32 %v5501_v18, %v1247_v55  ;;  %vm1251_vm10 = vmor %vm1249_vm9, %vm1250_vm6  ;;  %v1530_v40 = vmul.f32 %v1497_v28, %v5407_v60 }
 0x1c9   : > { %1609 = vmatmul.f32.gmra.mxu1 %v1513_v35  ;;  %v1252_v51 = vsel %vm1251_vm10, %v5501_v18, %v1248_v23 }
 0x1ca   : > { %v1257_v21 = vsel %vm1254_vm11, %v1256_v56, %v1252_v51  ;;  %v1568_v14 = vpop.f32.mrf.mxu1  ;;  %v3880_v15 = vpop.eup %3879 }
 0x1cb   : > { %v1003_v47 = vadd.f32 1.0, %v3880_v15  ;;  %v1514_v61 = vmul.f32 %v1257_v21, %v5418_v10  ;;  %v5588_v54 = vadd.f32 %v5579_v25, %v1568_v14 }
 0x1cd   : > { %3881 = vrcp.f32 %v1003_v47  ;;  %v1270_v0 = vand.u32 2147483648, %v1003_v47  ;;  %vm1264_vm12 = vweird.f32 %v1003_v47  ;;  %v1268_v18 = vand.u32 2147483647, %v1003_v47  ;;  %7529 = vst [vmem:[#allocation37_spill] sm:$0xff] %v5588_v54 }
 0x1ce   : > { %1660 = vmatmul.f32.gmra.mxu3 %v1530_v40  ;;  %v3510_v9 = vmul.f32 -1.442695, %v5588_v54 }
 0x1cf   : > { %v1271_v60 = vor.u32 1.1754944e-38, %v1270_v0  ;;  %vm1269_vm15 = vcmp.eq.f32.partialorder %v1268_v18, 8.507059e+37 }
 0x1d1   : > { %1612 = vmatmul.f32.gmra.mxu1 %v1514_v61 }
 0x1d2   : > { %v1571_v50 = vpop.f32.mrf.mxu1 }
 0x1d3   : > { %v3882_v53 = vpop.eup %3881  ;;  %v5592_v19 = vadd.f32 %v5579_v25, %v1571_v50 }
 0x1d4   : > { %v1260_v32 = vmul.f32 %v3882_v53, %v1003_v47  ;;  %vm1265_vm13 = vweird.f32 %v3882_v53 }
 0x1d5   : > { %vm1266_vm14 = vmor %vm1264_vm12, %vm1265_vm13  ;;  %7530 = vst [vmem:[#allocation38_spill] sm:$0xff] %v5592_v19  ;;  %v3511_v49 = vmul.f32 -1.442695, %v5592_v19 }
 0x1d6   : > { %v1619_v22 = vpop.f32.mrf.mxu3  ;;  %v1261_v6 = vsub.f32 1.0, %v1260_v32 }
 0x1d7   : > { %v5582_v59 = vadd.f32 %v5579_v25, %v1619_v22 }
 0x1d8   : > { %v1262_v30 = vmul.f32 %v3882_v53, %v1261_v6 }
 0x1d9   : > { %7527 = vst [vmem:[#allocation35_spill] sm:$0xff] %v5582_v59  ;;  %v3527_v63 = vmul.f32 -1.442695, %v5582_v59 }
 0x1da   : > { %v1574_v24 = vpop.f32.mrf.mxu1  ;;  %v1263_v27 = vadd.f32 %v3882_v53, %v1262_v30 }
 0x1db   : > { %v5585_v36 = vadd.f32 %v5579_v25, %v1574_v24  ;;  %3883 = vpow2.f32 %v3527_v63 }
 0x1dc   : > { %v1267_v38 = vsel %vm1266_vm14, %v3882_v53, %v1263_v27 }
 0x1dd   : > { %v1272_v10 = vsel %vm1269_vm15, %v1271_v60, %v1267_v38  ;;  %7528 = vst [vmem:[#allocation36_spill] sm:$0xff] %v5585_v36  ;;  %v3512_v41 = vmul.f32 -1.442695, %v5585_v36 }
 0x1de   : > { %v1515_v5 = vmul.f32 %v1272_v10, %v844_v26 }
 0x1df   : > { %v1622_v2 = vpop.f32.mrf.mxu3  ;;  %3885 = vpow2.f32 %v3512_v41 }
 0x1e0   : > { %1615 = vmatmul.f32.gmra.mxu1 %v1515_v5  ;;  %v5597_v37 = vadd.f32 %v5579_v25, %v1622_v2  ;;  %3887 = vpow2.f32 %v3510_v9 }
 0x1e1   : > { %v3884_v26 = vpop.eup %3883  ;;  %3889 = vpow2.f32 %v3511_v49 }
 0x1e2   : > { %7531 = vst [vmem:[#allocation39_spill] sm:$0xff] %v5597_v37  ;;  %v3528_v29 = vmul.f32 -1.442695, %v5597_v37  ;;  %v5620_v1 = vadd.f32 1.0, %v3884_v26 }
 0x1e3   : > { %v1577_v31 = vpop.f32.mrf.mxu1 }
 0x1e4   : > { %v5600_v45 = vadd.f32 %v5579_v25, %v1577_v31  ;;  %3891 = vpow2.f32 %v3528_v29 }
 0x1e5   : > { %v3886_v42 = vpop.eup %3885 }
 0x1e6   : > { %7532 = vst [vmem:[#allocation40_spill] sm:$0xff] %v5600_v45  ;;  %v3513_v44 = vmul.f32 -1.442695, %v5600_v45  ;;  %v3888_v16 = vpop.eup %3887  ;;  %v5623_v62 = vadd.f32 1.0, %v3886_v42 }
 0x1e7   : > { %v1625_v11 = vpop.f32.mrf.mxu3  ;;  %v3890_v20 = vpop.eup %3889  ;;  %v5625_v35 = vadd.f32 1.0, %v3888_v16 }
 0x1e8   : > { %v5607_v52 = vadd.f32 %v5579_v25, %v1625_v11  ;;  %v5639_v21 = vadd.f32 1.0, %v3890_v20 }
 0x1e9   : > { %7535 = vst [vmem:[#allocation43_spill] sm:$0xff] %v5625_v35 }
 0x1ea   : > { %7533 = vst [vmem:[#allocation41_spill] sm:$0xff] %v5607_v52  ;;  %v3529_v58 = vmul.f32 -1.442695, %v5607_v52  ;;  %v3892_v48 = vpop.eup %3891 }
 0x1eb   : > { %v1580_v34 = vpop.f32.mrf.mxu1  ;;  %7536 = vst [vmem:[#allocation44_spill] sm:$0xff] %v5639_v21  ;;  %v5642_v47 = vadd.f32 1.0, %v3892_v48 }
 0x1ec   : > { %v5611_v17 = vadd.f32 %v5579_v25, %v1580_v34 }
 0x1ed   : > { %7537 = vst [vmem:[#allocation45_spill] sm:$0xff] %v5642_v47 }
 0x1ee   : > { %7534 = vst [vmem:[#allocation42_spill] sm:$0xff] %v5611_v17  ;;  %v3514_v12 = vmul.f32 -1.442695, %v5611_v17 }
 0x1ef   : > { %v1628_v3 = vpop.f32.mrf.mxu3 }
 0x1f0   : > { %v5617_v33 = vadd.f32 %v5579_v25, %v1628_v3 }
 0x1f2   : > { %v3530_v57 = vmul.f32 -1.442695, %v5617_v33 }
 0x1f5   : > { %v1583_v43 = vpop.f32.mrf.mxu1 }
 0x1f6   : > { %v5603_v46 = vadd.f32 %v5579_v25, %v1583_v43 }
 0x1f8   : > { %v3515_v13 = vmul.f32 -1.442695, %v5603_v46 }
 0x1f9   : > { %v1631_v39 = vpop.f32.mrf.mxu3 }
 0x1fa   : > { %3893 = vpow2.f32 %v3515_v13  ;;  %v5672_v2 = vadd.f32 %v5579_v25, %v1631_v39 }
 0x1fb   : > { %3895 = vpow2.f32 %v3513_v44  ;;  %v2058_v44 = vand.u32 2147483648, %v5620_v1 }
 0x1fc   : > { %3897 = vpow2.f32 %v3529_v58  ;;  %7541 = vst [vmem:[#allocation49_spill] sm:$0xff] %v5672_v2  ;;  %v3531_v26 = vmul.f32 -1.442695, %v5672_v2 }
 0x1fd   : > { %3899 = vpow2.f32 %v3514_v12 }
 0x1fe   : > { %3901 = vrcp.f32 %v5620_v1 }
 0x1ff   : > { %v1586_v4 = vpop.f32.mrf.mxu1  ;;  %3903 = vpow2.f32 %v3530_v57 }
 0x200   : > { %v5628_v55 = vadd.f32 %v5579_v25, %v1586_v4  ;;  %v3894_v28 = vpop.eup %3893  ;;  %3905 = vrcp.f32 %v5623_v62 }
 0x201   : > { %v1634_v8 = vpop.f32.mrf.mxu3  ;;  %v3896_v23 = vpop.eup %3895  ;;  %v5635_v56 = vadd.f32 1.0, %v3894_v28  ;;  %3907 = vrcp.f32 %v5625_v35 }
 0x202   : > { %v5631_v7 = vadd.f32 %v5579_v25, %v1634_v8  ;;  %v3516_v51 = vmul.f32 -1.442695, %v5628_v55  ;;  %v3898_v40 = vpop.eup %3897  ;;  %v5645_v61 = vadd.f32 1.0, %v3896_v23 }
 0x203   : > { %v3900_v15 = vpop.eup %3899  ;;  %3909 = vrcp.f32 %v5635_v56  ;;  %v5649_v53 = vadd.f32 1.0, %v3898_v40  ;;  %v1878_v16 = vand.u32 2147483648, %v5635_v56  ;;  %vm1872_vm1 = vweird.f32 %v5635_v56 }
 0x204   : > { %v3532_v14 = vmul.f32 -1.442695, %v5631_v7  ;;  %7538 = vst [vmem:[#allocation46_spill] sm:$0xff] %v5645_v61  ;;  %3911 = vpow2.f32 %v3516_v51  ;;  %v5647_v50 = vpop.eup %3901  ;;  %v5652_v0 = vadd.f32 1.0, %v3900_v15  ;;  %v1876_v48 = vand.u32 2147483647, %v5635_v56 }
 0x205   : > { %7539 = vst [vmem:[#allocation47_spill] sm:$0xff] %v5649_v53  ;;  %v3904_v22 = vpop.eup %3903  ;;  %v2048_v24 = vmul.f32 %v5647_v50, %v5620_v1 }
 0x206   : > { %3913 = vpow2.f32 %v3532_v14  ;;  %v5654_v18 = vpop.eup %3905  ;;  %v5669_v10 = vadd.f32 1.0, %v3904_v22  ;;  %v1833_v22 = vand.u32 2147483648, %v5623_v62  ;;  %vm1877_vm3 = vcmp.eq.f32.partialorder %v1876_v48, 8.507059e+37 }
 0x207   : > { %3915 = vrcp.f32 %v5639_v21  ;;  %v5660_v60 = vpop.eup %3907  ;;  %v1823_v11 = vmul.f32 %v5654_v18, %v5623_v62  ;;  %v2049_v13 = vsub.f32 1.0, %v2048_v24 }
 0x208   : > { %3917 = vrcp.f32 %v5642_v47  ;;  %7540 = vst [vmem:[#allocation48_spill] sm:$0xff] %v5660_v60 }
 0x209   : > { %v1589_v32 = vpop.f32.mrf.mxu1  ;;  %3919 = vrcp.f32 %v5645_v61  ;;  %v3910_v38 = vpop.eup %3909  ;;  %v1824_v12 = vsub.f32 1.0, %v1823_v11  ;;  %v2050_v15 = vmul.f32 %v5647_v50, %v2049_v13 }
 0x20a   : > { %v1637_v6 = vpop.f32.mrf.mxu3  ;;  %v5658_v30 = vadd.f32 %v5579_v25, %v1589_v32  ;;  %3921 = vrcp.f32 %v5649_v53  ;;  %v3912_v31 = vpop.eup %3911  ;;  %v1868_v3 = vmul.f32 %v3910_v38, %v5635_v56  ;;  %vm1873_vm0 = vweird.f32 %v3910_v38 }
 0x20b   : > { %v5666_v27 = vadd.f32 %v5579_v25, %v1637_v6  ;;  %3923 = vrcp.f32 %v5652_v0  ;;  %v5680_v41 = vadd.f32 1.0, %v3912_v31  ;;  %v5714_v32 = vor.u32 1.1754944e-38, %v2058_v44  ;;  %vm1874_vm2 = vmor %vm1872_vm1, %vm1873_vm0 }
 0x20c   : > { %v3517_v5 = vmul.f32 -1.442695, %v5658_v30  ;;  %v3914_v63 = vpop.eup %3913  ;;  %v1869_v29 = vsub.f32 1.0, %v1868_v3  ;;  %v1825_v6 = vmul.f32 %v5654_v18, %v1824_v12  ;;  %v1879_v31 = vor.u32 1.1754944e-38, %v1878_v16 }
 0x20d   : > { %v3533_v34 = vmul.f32 -1.442695, %v5666_v27  ;;  %v5682_v9 = vpop.eup %3915  ;;  %v5685_v49 = vadd.f32 1.0, %v3914_v63  ;;  %7546 = vst [vmem:[#allocation54_spill] sm:$0xff] %v5714_v32  ;;  %v1891_v45 = vand.u32 2147483647, %v5680_v41  ;;  %vm1887_vm4 = vweird.f32 %v5680_v41 }
 0x20e   : > { %3925 = vpow2.f32 %v3517_v5  ;;  %7542 = vst [vmem:[#allocation50_spill] sm:$0xff] %v5682_v9  ;;  %v5687_v39 = vpop.eup %3917  ;;  %v1870_v42 = vmul.f32 %v3910_v38, %v1869_v29  ;;  %v5699_v4 = vmul.f32 %v5682_v9, %v5639_v21 }
 0x20f   : > { %3927 = vpow2.f32 %v3533_v34  ;;  %7543 = vst [vmem:[#allocation51_spill] sm:$0xff] %v5687_v39  ;;  %v5692_v58 = vpop.eup %3919  ;;  %vm5821_vm8 = vcmp.eq.f32.partialorder %v1891_v45, 8.507059e+37  ;;  %vm2127_vm12 = vweird.f32 %v5685_v49 }
 0x210   : > { %3929 = vrcp.f32 %v5669_v10  ;;  %7544 = vst [vmem:[#allocation52_spill] sm:$0xff] %v5692_v58  ;;  %v5695_v57 = vpop.eup %3921  ;;  %v1871_v40 = vadd.f32 %v3910_v38, %v1870_v42  ;;  %v5739_v42 = vor.u32 1.1754944e-38, %v1833_v22  ;;  %v1893_v22 = vand.u32 2147483648, %v5680_v41 }
 0x211   : > { %7545 = vst [vmem:[#allocation53_spill] sm:$0xff] %v5699_v4  ;;  %3931 = vrcp.f32 %v5680_v41  ;;  %v5704_v28 = vpop.eup %3923  ;;  %v5725_v34 = vmul.f32 %v5695_v57, %v5649_v53 }
 0x212   : > { %3933 = vrcp.f32 %v5685_v49  ;;  %v1875_v5 = vsel %vm1874_vm2, %v3910_v38, %v1871_v40  ;;  %7548 = vst [vmem:[#allocation56_spill] sm:$0xff] %v5739_v42  ;;  %v5753_v48 = vmul.f32 %v5704_v28, %v5652_v0 }
 0x213   : > { %v1592_v8 = vpop.f32.mrf.mxu1  ;;  %v1640_v20 = vpop.f32.mrf.mxu3  ;;  %3935 = vpow2.f32 %v3531_v26  ;;  %v1880_v44 = vsel %vm1877_vm3, %v1879_v31, %v1875_v5  ;;  %v5736_v26 = vadd.f32 %v5647_v50, %v2050_v15  ;;  %v5767_v5 = vld [vmem:[%s7550_s23] ss:$0 sm:$0xff] }
 0x214   : > { %v5708_v23 = vadd.f32 %v5579_v25, %v1592_v8  ;;  %v5711_v51 = vadd.f32 %v5579_v25, %v1640_v20  ;;  %v3926_v14 = vpop.eup %3925  ;;  %v5745_v8 = vadd.f32 %v5654_v18, %v1825_v6  ;;  %v5749_v20 = vmul.f32 %v5692_v58, %v5645_v61 }
 0x215   : > { %v3928_v56 = vpop.eup %3927  ;;  %v5719_v24 = vadd.f32 1.0, %v3926_v14  ;;  %7547 = vst [vmem:[#allocation55_spill] sm:$0xff] %v5736_v26  ;;  %v5762_v6 = vmul.f32 %v1880_v44, %v5603_v46  ;;  %v2131_v61 = vand.u32 2147483647, %v5685_v49 }
 0x216   : > { %v5721_v11 = vpop.eup %3929  ;;  %v5727_v3 = vadd.f32 1.0, %v3928_v56  ;;  %v3518_v63 = vmul.f32 -1.442695, %v5708_v23  ;;  %v3534_v13 = vmul.f32 -1.442695, %v5711_v51 }
 0x217   : > { %3937 = vrcp.f32 %v5719_v24  ;;  %v5733_v38 = vpop.eup %3931  ;;  %v5757_v40 = vmul.f32 %v5721_v11, %v5669_v10  ;;  %7549 = vst [vmem:[#allocation57_spill] sm:$0xff] %v5762_v6  ;;  %v2313_v46 = vmul.f32 %v5767_v5, %v5762_v6  ;;  %v1906_v52 = vand.u32 2147483647, %v5719_v24 }
 0x218   : > { %3939 = vrcp.f32 %v5727_v3  ;;  %v5742_v16 = vpop.eup %3933  ;;  %v1883_v43 = vmul.f32 %v5733_v38, %v5680_v41  ;;  %v1908_v21 = vand.u32 2147483648, %v5719_v24  ;;  %v2146_v35 = vand.u32 2147483647, %v5727_v3 }
 0x219   : > { %v3936_v14 = vpop.eup %3935  ;;  %3941 = vpow2.f32 %v3518_v63  ;;  %2350 = vadd.xlane.f32.xlu2 %v2313_v46  ;;  %vm1902_vm5 = vweird.f32 %v5719_v24  ;;  %vm2142_vm6 = vweird.f32 %v5727_v3  ;;  %vm5816_vm7 = vcmp.eq.f32.partialorder %v1906_v52, 8.507059e+37 }
 0x21a   : > { %3943 = vpow2.f32 %v3534_v13  ;;  %v2123_v13 = vmul.f32 %v5742_v16, %v5685_v49  ;;  %v5787_v54 = vadd.f32 1.0, %v3936_v14  ;;  %v1884_v19 = vsub.f32 1.0, %v1883_v43 }
 0x21b   : > { %v1595_v56 = vpop.f32.mrf.mxu1  ;;  %v5799_v14 = vor.u32 1.1754944e-38, %v1893_v22  ;;  %vm5828_vm10 = vcmp.eq.f32.partialorder %v2146_v35, 8.507059e+37  ;;  %vm1888_vm11 = vweird.f32 %v5733_v38  ;;  %vm2128_vm14 = vweird.f32 %v5742_v16 }
 0x21c   : > { %v5770_v31 = vadd.f32 %v5579_v25, %v1595_v56  ;;  %v1643_v29 = vpop.f32.mrf.mxu3  ;;  %v2124_v46 = vsub.f32 1.0, %v2123_v13  ;;  %v2148_v13 = vand.u32 2147483648, %v5727_v3  ;;  %vm5853_vm0 = vcmp.eq.f32.partialorder %v2131_v61, 8.507059e+37  ;;  %vm5869_vm1 = vmor %vm1887_vm4, %vm1888_vm11 }
 0x21d   : > { %v5779_v44 = vadd.f32 %v5579_v25, %v1643_v29  ;;  %v5783_v15 = vpop.eup %3937 }
 0x21e   : > { %v3519_v37 = vmul.f32 -1.442695, %v5770_v31  ;;  %v5790_v63 = vpop.eup %3939  ;;  %v1898_v6 = vmul.f32 %v5783_v15, %v5719_v24  ;;  %vm1903_vm9 = vweird.f32 %v5783_v15  ;;  %v2149_v35 = vor.u32 1.1754944e-38, %v2148_v13 }
 0x21f   : > { %v3535_v29 = vmul.f32 -1.442695, %v5779_v44  ;;  %v2138_v56 = vmul.f32 %v5790_v63, %v5727_v3  ;;  %v3942_v12 = vpop.eup %3941  ;;  %vm2143_vm13 = vweird.f32 %v5790_v63  ;;  %vm5846_vm15 = vmor %vm1902_vm5, %vm1903_vm9 }
 0x220   : > { %3945 = vpow2.f32 %v3519_v37  ;;  %v1899_v59 = vsub.f32 1.0, %v1898_v6  ;;  %v3944_v60 = vpop.eup %3943  ;;  %v5804_v2 = vadd.f32 1.0, %v3942_v12  ;;  %v1885_v6 = vmul.f32 %v5733_v38, %v1884_v19  ;;  %vm5879_vm2 = vmor %vm2142_vm6, %vm2143_vm13 }
 0x221   : > { %3947 = vpow2.f32 %v3535_v29  ;;  %v2139_v43 = vsub.f32 1.0, %v2138_v56  ;;  %v5809_v22 = vadd.f32 1.0, %v3944_v60  ;;  %v1909_v56 = vor.u32 1.1754944e-38, %v1908_v21 }
 0x222   : > { %v1900_v37 = vmul.f32 %v5783_v15, %v1899_v59  ;;  %3949 = vrcp.f32 %v5804_v2  ;;  %v2125_v19 = vmul.f32 %v5742_v16, %v2124_v46  ;;  %v2133_v21 = vand.u32 2147483648, %v5685_v49 }
 0x223   : > { %v2140_v29 = vmul.f32 %v5790_v63, %v2139_v43  ;;  %3951 = vrcp.f32 %v5809_v22  ;;  %v1886_v4 = vadd.f32 %v5733_v38, %v1885_v6  ;;  %v1923_v6 = vand.u32 2147483648, %v5804_v2 }
 0x224   : > { %v1901_v32 = vadd.f32 %v5783_v15, %v1900_v37  ;;  %v2161_v17 = vand.u32 2147483647, %v5809_v22  ;;  %v2134_v61 = vor.u32 1.1754944e-38, %v2133_v21  ;;  %v2163_v41 = vand.u32 2147483648, %v5809_v22 }
 0x225   : > { %v1598_v59 = vpop.f32.mrf.mxu1  ;;  %v2141_v46 = vadd.f32 %v5790_v63, %v2140_v29  ;;  %v1890_v21 = vsel %vm5869_vm1, %v5733_v38, %v1886_v4  ;;  %v1921_v3 = vand.u32 2147483647, %v5804_v2  ;;  %vm2157_vm3 = vweird.f32 %v5809_v22 }
 0x226   : > { %v3946_v43 = vpop.eup %3945  ;;  %v5836_v45 = vadd.f32 %v5579_v25, %v1598_v59  ;;  %v2126_v59 = vadd.f32 %v5742_v16, %v2125_v19  ;;  %v1905_v24 = vsel %vm5846_vm15, %v5783_v15, %v1901_v32  ;;  %v5899_v42 = vor.u32 1.1754944e-38, %v1923_v6 }
 0x227   : > { %v3948_v26 = vpop.eup %3947  ;;  %v5833_v9 = vadd.f32 1.0, %v3946_v43  ;;  %v2145_v43 = vsel %vm5879_vm2, %v5790_v63, %v2141_v46  ;;  %v1910_v39 = vsel %vm5816_vm7, %v1909_v56, %v1905_v24  ;;  %vm5902_vm4 = vcmp.eq.f32.partialorder %v2161_v17, 8.507059e+37  ;;  %vm2129_vm7 = vmor %vm2127_vm12, %vm2128_vm14 }
 0x228   : > { %v1646_v37 = vpop.f32.mrf.mxu3  ;;  %v5857_v13 = vpop.eup %3949  ;;  %v5863_v58 = vadd.f32 1.0, %v3948_v26  ;;  %v3520_v15 = vmul.f32 -1.442695, %v5836_v45  ;;  %v1895_v63 = vsel %vm5821_vm8, %v5799_v14, %v1890_v21  ;;  %v2150_v12 = vsel %vm5828_vm10, %v2149_v35, %v2145_v43 }
 0x229   : > { %3953 = vrcp.f32 %v5833_v9  ;;  %v5873_v36 = vpop.eup %3951  ;;  %v1913_v26 = vmul.f32 %v5857_v13, %v5804_v2  ;;  %vm1917_vm5 = vweird.f32 %v5804_v2  ;;  %v2164_v56 = vor.u32 1.1754944e-38, %v2163_v41 }
 0x22a   : > { %v2153_v53 = vmul.f32 %v5873_v36, %v5809_v22  ;;  %3955 = vrcp.f32 %v5863_v58  ;;  %v5918_v17 = vadd.f32 %v5579_v25, %v1646_v37  ;;  %v5921_v6 = vmul.f32 %v1910_v39, %v5658_v30 }
 0x22b   : > { %v1914_v47 = vsub.f32 1.0, %v1913_v26  ;;  %3957 = vpow2.f32 %v3520_v15  ;;  %vm2158_vm6 = vweird.f32 %v5873_v36  ;;  %vm1932_vm8 = vweird.f32 %v5833_v9 }
 0x22c   : > { %v2154_v4 = vsub.f32 1.0, %v2153_v53  ;;  %v5915_v53 = vmul.f32 %v1895_v63, %v5628_v55  ;;  %v3536_v39 = vmul.f32 -1.442695, %v5918_v17  ;;  %v2130_v35 = vsel %vm2129_vm7, %v5742_v16, %v2126_v59  ;;  %vm5952_vm11 = vmor %vm2157_vm3, %vm2158_vm6 }
 0x22d   : > { %v1915_v52 = vmul.f32 %v5857_v13, %v1914_v47  ;;  %v5938_v37 = vmul.f32 %v2150_v12, %v5666_v27  ;;  %v2135_v49 = vsel %vm5853_vm0, %v2134_v61, %v2130_v35  ;;  %vm1918_vm9 = vweird.f32 %v5857_v13 }
 0x22e   : > { %v1601_v46 = vpop.f32.mrf.mxu1  ;;  %7567 = vst [vmem:[#allocation58_spill] sm:$0xff] %v5915_v53  ;;  %v2155_v14 = vmul.f32 %v5873_v36, %v2154_v4  ;;  %v2314_v30 = vmul.f32 %v5767_v5, %v5915_v53  ;;  %vm5944_vm10 = vcmp.eq.f32.partialorder %v1921_v3, 8.507059e+37  ;;  %3959 = vpow2.f32 %v3536_v39  ;;  %vm5987_vm14 = vmor %vm1917_vm5, %vm1918_vm9 }
 0x22f   : > { %v5909_v19 = vpop.eup %3953  ;;  %7568 = vst [vmem:[#allocation59_spill] sm:$0xff] %v5938_v37  ;;  %v5957_v16 = vmul.f32 %v2135_v49, %v5631_v7  ;;  %v5960_v59 = vadd.f32 %v5579_v25, %v1601_v46  ;;  %v1916_v21 = vadd.f32 %v5857_v13, %v1915_v52  ;;  %v2176_v7 = vand.u32 2147483647, %v5863_v58 }
 0x230   : > { %v1928_v60 = vmul.f32 %v5909_v19, %v5833_v9  ;;  %v1649_v55 = vpop.f32.mrf.mxu3  ;;  %v2156_v24 = vadd.f32 %v5873_v36, %v2155_v14  ;;  %v3956_v26 = vpop.eup %3955  ;;  %2352 = vadd.xlane.f32.xlu0 %v2314_v30  ;;  %v2178_v43 = vand.u32 2147483648, %v5863_v58  ;;  %v1936_v4 = vand.u32 2147483647, %v5833_v9 }
 0x231   : > { %7573 = vst [vmem:[#allocation60_spill] sm:$0xff] %v5957_v16  ;;  %v3958_v29 = vpop.eup %3957  ;;  %v2168_v22 = vmul.f32 %v3956_v26, %v5863_v58  ;;  %v5968_v15 = vadd.f32 %v5579_v25, %v1649_v55  ;;  %v1938_v63 = vand.u32 2147483648, %v5833_v9  ;;  %v2330_v46 = vmul.f32 %v5767_v5, %v5957_v16 }
 0x232   : > { %v1929_v32 = vsub.f32 1.0, %v1928_v60  ;;  %v2160_v61 = vsel %vm5952_vm11, %v5873_v36, %v2156_v24  ;;  %v5973_v3 = vadd.f32 1.0, %v3958_v29  ;;  %vm1933_vm12 = vweird.f32 %v5909_v19 }
 0x233   : > { %v2169_v36 = vsub.f32 1.0, %v2168_v22  ;;  %v2165_v14 = vsel %vm5902_vm4, %v2164_v56, %v2160_v61  ;;  %vm2173_vm13 = vweird.f32 %v3956_v26  ;;  %2384 = vadd.xlane.f32.xlu1 %v2330_v46  ;;  %v3521_v38 = vmul.f32 -1.442695, %v5960_v59  ;;  %vm6009_vm1 = vmor %vm1932_vm8, %vm1933_vm12 }
 0x234   : > { %v1930_v41 = vmul.f32 %v5909_v19, %v1929_v32  ;;  %3961 = vrcp.f32 %v5973_v3  ;;  %v3537_v56 = vmul.f32 -1.442695, %v5968_v15  ;;  %v3960_v30 = vpop.eup %3959  ;;  %v1920_v39 = vsel %vm5987_vm14, %v5857_v13, %v1916_v21 }
 0x235   : > { %v2170_v52 = vmul.f32 %v3956_v26, %v2169_v36  ;;  %vm2172_vm15 = vweird.f32 %v5863_v58  ;;  %vm5998_vm0 = vcmp.eq.f32.partialorder %v2176_v7, 8.507059e+37  ;;  %v2179_v35 = vor.u32 1.1754944e-38, %v2178_v43 }
 0x236   : > { %v1604_v12 = vpop.f32.mrf.mxu1  ;;  %v1931_v55 = vadd.f32 %v5909_v19, %v1930_v41  ;;  %v6003_v32 = vmul.f32 %v2165_v14, %v5711_v51  ;;  %v6013_v27 = vadd.f32 1.0, %v3960_v30  ;;  %3963 = vpow2.f32 %v3521_v38  ;;  %vm2174_vm2 = vmor %vm2172_vm15, %vm2173_vm13 }
 0x237   : > { %v2171_v13 = vadd.f32 %v3956_v26, %v2170_v52  ;;  %3965 = vpow2.f32 %v3537_v56  ;;  %v2331_v58 = vmul.f32 %v5767_v5, %v5938_v37  ;;  %v6019_v51 = vadd.f32 %v5579_v25, %v1604_v12 }
 0x238   : > { %7578 = vst [vmem:[#allocation61_spill] sm:$0xff] %v6003_v32  ;;  %v1925_v9 = vsel %vm5944_vm10, %v5899_v42, %v1920_v39  ;;  %v1935_v61 = vsel %vm6009_vm1, %v5909_v19, %v1931_v55  ;;  %3967 = vrcp.f32 %v6013_v27  ;;  %v1939_v21 = vor.u32 1.1754944e-38, %v1938_v63 }
 0x239   : > { %v1652_v24 = vpop.f32.mrf.mxu3  ;;  %v2175_v41 = vsel %vm2174_vm2, %v3956_v26, %v2171_v13  ;;  %2386 = vadd.xlane.f32.xlu2 %v2331_v58  ;;  %v3522_v43 = vmul.f32 -1.442695, %v6019_v51  ;;  %3969 = vrcp.f32 %v5787_v54  ;;  %vm1937_vm3 = vcmp.eq.f32.partialorder %v1936_v4, 8.507059e+37 }
 0x23a   : > { %v6022_v29 = vadd.f32 %v5579_v25, %v1652_v24  ;;  %v6031_v22 = vpop.eup %3961  ;;  %v2180_v7 = vsel %vm5998_vm0, %v2179_v35, %v2175_v41  ;;  %v2315_v19 = vmul.f32 %v5767_v5, %v5921_v6  ;;  %v6043_v47 = vmul.f32 %v1925_v9, %v5708_v23 }
 0x23b   : > { %v1943_v42 = vmul.f32 %v6031_v22, %v5973_v3  ;;  %v1940_v63 = vsel %vm1937_vm3, %v1939_v21, %v1935_v61  ;;  %3971 = vpow2.f32 %v3522_v43  ;;  %v2332_v46 = vmul.f32 %v5767_v5, %v6003_v32 }
 0x23c   : > { %v3538_v36 = vmul.f32 -1.442695, %v6022_v29  ;;  %v3964_v12 = vpop.eup %3963  ;;  %v7581_v14 = vsub.f32 1.0, %v5757_v40  ;;  %v6053_v60 = vmul.f32 %v2180_v7, %v5779_v44  ;;  %2354 = vadd.xlane.f32.xlu1 %v2315_v19  ;;  %v1951_v23 = vand.u32 2147483647, %v5973_v3 }
 0x23d   : > { %v1944_v55 = vsub.f32 1.0, %v1943_v42  ;;  %v3966_v52 = vpop.eup %3965  ;;  %v1953_v38 = vand.u32 2147483648, %v5973_v3  ;;  %v6057_v56 = vadd.f32 1.0, %v3964_v12  ;;  %2388 = vadd.xlane.f32.xlu0 %v2332_v46  ;;  %v6065_v39 = vmul.f32 %v1940_v63, %v5770_v31 }
 0x23e   : > { %v1607_v26 = vpop.f32.mrf.mxu1  ;;  %v6050_v4 = vmul.f32 %v5721_v11, %v7581_v14  ;;  %7582 = vst [vmem:[#allocation62_spill] sm:$0xff] %v6053_v60  ;;  %3973 = vpow2.f32 %v3538_v36  ;;  %v6062_v40 = vpop.eup %3967  ;;  %v2191_v2 = vand.u32 2147483647, %v6013_v27  ;;  %v6069_v35 = vadd.f32 1.0, %v3966_v52 }
 0x23f   : > { %v6060_v30 = vadd.f32 %v5579_v25, %v1607_v26  ;;  %v1945_v44 = vmul.f32 %v6031_v22, %v1944_v55  ;;  %vm1948_vm4 = vweird.f32 %v6031_v22  ;;  %v2183_v49 = vmul.f32 %v6062_v40, %v6013_v27  ;;  %v6077_v58 = vpop.eup %3969 }
 0x240   : > { %3975 = vrcp.f32 %v6057_v56  ;;  %v2316_v13 = vmul.f32 %v5767_v5, %v6043_v47  ;;  %vm1947_vm5 = vweird.f32 %v5973_v3  ;;  %v2333_v9 = vmul.f32 %v5767_v5, %v6053_v60 }
 0x241   : > { %v1655_v24 = vpop.f32.mrf.mxu3  ;;  %v1946_v31 = vadd.f32 %v6031_v22, %v1945_v44  ;;  %3977 = vrcp.f32 %v6069_v35  ;;  %v3972_v61 = vpop.eup %3971  ;;  %vm6084_vm6 = vcmp.eq.f32.partialorder %v1951_v23, 8.507059e+37  ;;  %v1954_v21 = vor.u32 1.1754944e-38, %v1953_v38  ;;  %vm6091_vm7 = vmor %vm1947_vm5, %vm1948_vm4 }
 0x242   : > { %v2184_v7 = vsub.f32 1.0, %v2183_v49  ;;  %2356 = vadd.xlane.f32.xlu2 %v2316_v13  ;;  %v3523_v43 = vmul.f32 -1.442695, %v6060_v30  ;;  %vm2187_vm8 = vweird.f32 %v6013_v27  ;;  %v2193_v42 = vand.u32 2147483648, %v6013_v27 }
 0x243   : > { %v6097_v19 = vadd.f32 1.0, %v3972_v61  ;;  %v6100_v26 = vadd.f32 %v5579_v25, %v1655_v24  ;;  %v1950_v63 = vsel %vm6091_vm7, %v6031_v22, %v1946_v31  ;;  %vm6106_vm9 = vcmp.eq.f32.partialorder %v2191_v2, 8.507059e+37 }
 0x244   : > { %v3974_v36 = vpop.eup %3973  ;;  %v2185_v46 = vmul.f32 %v6062_v40, %v2184_v7  ;;  %v2317_v14 = vmul.f32 %v5767_v5, %v6065_v39  ;;  %vm2188_vm10 = vweird.f32 %v6062_v40  ;;  %v1966_v55 = vand.u32 2147483647, %v6057_v56  ;;  %2390 = vadd.xlane.f32.xlu1 %v2333_v9 }
 0x245   : > { %v1968_v52 = vand.u32 2147483648, %v6057_v56  ;;  %3979 = vrcp.f32 %v6097_v19  ;;  %v2206_v38 = vand.u32 2147483647, %v6069_v35  ;;  %v6120_v44 = vadd.f32 1.0, %v3974_v36  ;;  %vm6131_vm11 = vmor %vm2187_vm8, %vm2188_vm10 }
 0x246   : > { %v6116_v23 = vpop.eup %3975  ;;  %v2186_v22 = vadd.f32 %v6062_v40, %v2185_v46  ;;  %3981 = vpow2.f32 %v3523_v43  ;;  %2358 = vadd.xlane.f32.xlu0 %v2317_v14  ;;  %v1610_v2 = vpop.f32.mrf.mxu1  ;;  %v1955_v49 = vsel %vm6084_vm6, %v1954_v21, %v1950_v63  ;;  %v2194_v13 = vor.u32 1.1754944e-38, %v2193_v42 }
 0x247   : > { %v3978_v24 = vpop.eup %3977  ;;  %v1958_v31 = vmul.f32 %v6116_v23, %v6057_v56  ;;  %v3539_v9 = vmul.f32 -1.442695, %v6100_v26  ;;  %vm1962_vm12 = vweird.f32 %v6057_v56  ;;  %vm2202_vm13 = vweird.f32 %v6069_v35 }
 0x248   : > { %v2198_v7 = vmul.f32 %v3978_v24, %v6069_v35  ;;  %v2208_v41 = vand.u32 2147483648, %v6069_v35  ;;  %v2190_v21 = vsel %vm6131_vm11, %v6062_v40, %v2186_v22  ;;  %vm6142_vm14 = vcmp.eq.f32.partialorder %v1966_v55, 8.507059e+37 }
 0x249   : > { %v1959_v43 = vsub.f32 1.0, %v1958_v31  ;;  %v1969_v27 = vor.u32 1.1754944e-38, %v1968_v52  ;;  %3983 = vrcp.f32 %v6120_v44  ;;  %v1658_v3 = vpop.f32.mrf.mxu3  ;;  %v6148_v42 = vmul.f32 %v1955_v49, %v5836_v45 }
 0x24a   : > { %vm1963_vm15 = vweird.f32 %v6116_v23  ;;  %v2199_v63 = vsub.f32 1.0, %v2198_v7  ;;  %vm6151_vm0 = vcmp.eq.f32.partialorder %v2206_v38, 8.507059e+37  ;;  %vm2203_vm1 = vweird.f32 %v3978_v24 }
 0x24b   : > { %v6155_v40 = vpop.eup %3979  ;;  %v1960_v14 = vmul.f32 %v6116_v23, %v1959_v43  ;;  %3985 = vpow2.f32 %v3539_v9  ;;  %v6159_v55 = vadd.f32 %v5579_v25, %v1610_v2  ;;  %v2195_v45 = vsel %vm6106_vm9, %v2194_v13, %v2190_v21  ;;  %vm6176_vm3 = vmor %vm1962_vm12, %vm1963_vm15 }
 0x24c   : > { %v3982_v52 = vpop.eup %3981  ;;  %v2200_v22 = vmul.f32 %v3978_v24, %v2199_v63  ;;  %v1973_v38 = vmul.f32 %v6155_v40, %v6097_v19  ;;  %v6166_v49 = vadd.f32 %v5579_v25, %v1658_v3  ;;  %v2209_v61 = vor.u32 1.1754944e-38, %v2208_v41  ;;  %vm2204_vm4 = vmor %vm2202_vm13, %vm2203_vm1 }
 0x24d   : > { %v1961_v31 = vadd.f32 %v6116_v23, %v1960_v14  ;;  %vm1977_vm2 = vweird.f32 %v6097_v19  ;;  %v6170_v9 = vadd.f32 1.0, %v3982_v52  ;;  %v1981_v7 = vand.u32 2147483647, %v6097_v19 }
 0x24e   : > { %v2201_v2 = vadd.f32 %v3978_v24, %v2200_v22  ;;  %v1974_v13 = vsub.f32 1.0, %v1973_v38  ;;  %v2318_v21 = vmul.f32 %v5767_v5, %v6148_v42  ;;  %v6184_v43 = vmul.f32 %v2195_v45, %v5918_v17  ;;  %v1613_v45 = vpop.f32.mrf.mxu1 }
 0x24f   : > { %v3984_v41 = vpop.eup %3983  ;;  %v1965_v3 = vsel %vm6176_vm3, %v6116_v23, %v1961_v31  ;;  %3987 = vrcp.f32 %v6170_v9  ;;  %v3524_v56 = vmul.f32 -1.442695, %v6159_v55  ;;  %v3540_v17 = vmul.f32 -1.442695, %v6166_v49 }
 0x250   : > { %7597 = vst [vmem:[#allocation63_spill] sm:$0xff] %v6184_v43  ;;  %v2205_v63 = vsel %vm2204_vm4, %v3978_v24, %v2201_v2  ;;  %v1975_v14 = vmul.f32 %v6155_v40, %v1974_v13  ;;  %v2213_v52 = vmul.f32 %v3984_v41, %v6120_v44  ;;  %2360 = vadd.xlane.f32.xlu1 %v2318_v21  ;;  %v1983_v35 = vand.u32 2147483648, %v6097_v19 }
 0x251   : > { %v3986_v22 = vpop.eup %3985  ;;  %v2210_v23 = vsel %vm6151_vm0, %v2209_v61, %v2205_v63  ;;  %v2221_v38 = vand.u32 2147483647, %v6120_v44  ;;  %v2223_v31 = vand.u32 2147483648, %v6120_v44  ;;  %v1970_v24 = vsel %vm6142_vm14, %v1969_v27, %v1965_v3  ;;  %v1661_v36 = vpop.f32.mrf.mxu3 }
 0x252   : > { %v1976_v12 = vadd.f32 %v6155_v40, %v1975_v14  ;;  %vm1978_vm5 = vweird.f32 %v6155_v40  ;;  %v2214_v2 = vsub.f32 1.0, %v2213_v52  ;;  %v6206_v13 = vadd.f32 1.0, %v3986_v22 }
 0x253   : > { %3989 = vpow2.f32 %v3524_v56  ;;  %v2334_v46 = vmul.f32 %v5767_v5, %v6184_v43  ;;  %v6211_v61 = vadd.f32 %v5579_v25, %v1613_v45  ;;  %v6214_v21 = vmul.f32 %v2210_v23, %v5968_v15  ;;  %vm6218_vm7 = vmor %vm1977_vm2, %vm1978_vm5 }
 0x254   : > { %v2215_v63 = vmul.f32 %v3984_v41, %v2214_v2  ;;  %vm2218_vm6 = vweird.f32 %v3984_v41  ;;  %3991 = vpow2.f32 %v3540_v17  ;;  %vm6222_vm8 = vcmp.eq.f32.partialorder %v1981_v7, 8.507059e+37 }
 0x255   : > { %7598 = vst [vmem:[#allocation64_spill] sm:$0xff] %v6214_v21  ;;  %v3988_v27 = vpop.eup %3987  ;;  %v1984_v14 = vor.u32 1.1754944e-38, %v1983_v35  ;;  %vm2217_vm9 = vweird.f32 %v6120_v44  ;;  %3993 = vrcp.f32 %v6206_v13  ;;  %2392 = vadd.xlane.f32.xlu2 %v2334_v46  ;;  %v1980_v15 = vsel %vm6218_vm7, %v6155_v40, %v1976_v12 }
 0x256   : > { %v2216_v52 = vadd.f32 %v3984_v41, %v2215_v63  ;;  %vm6231_vm10 = vcmp.eq.f32.partialorder %v2221_v38, 8.507059e+37  ;;  %v1988_v7 = vmul.f32 %v3988_v27, %v6170_v9  ;;  %v6237_v17 = vmul.f32 %v1970_v24, %v5960_v59  ;;  %vm6240_vm11 = vmor %vm2217_vm9, %vm2218_vm6 }
 0x257   : > { %v2224_v45 = vor.u32 1.1754944e-38, %v2223_v31  ;;  %v3525_v22 = vmul.f32 -1.442695, %v6211_v61  ;;  %v6246_v40 = vadd.f32 %v5579_v25, %v1661_v36  ;;  %vm1992_vm12 = vweird.f32 %v6170_v9 }
 0x258   : > { %v2220_v23 = vsel %vm6240_vm11, %v3984_v41, %v2216_v52  ;;  %v1989_v35 = vsub.f32 1.0, %v1988_v7  ;;  %v2335_v59 = vmul.f32 %v5767_v5, %v6214_v21  ;;  %v1985_v24 = vsel %vm6222_vm8, %v1984_v14, %v1980_v15 }
 0x259   : > { %v3990_v38 = vpop.eup %3989  ;;  %v1998_v31 = vand.u32 2147483648, %v6170_v9  ;;  %3995 = vpow2.f32 %v3525_v22  ;;  %v3541_v12 = vmul.f32 -1.442695, %v6246_v40  ;;  %vm2097_vm13 = vweird.f32 %v5669_v10 }
 0x25a   : > { %v3992_v25 = vpop.eup %3991  ;;  %v2225_v41 = vsel %vm6231_vm10, %v2224_v45, %v2220_v23  ;;  %v1990_v2 = vmul.f32 %v3988_v27, %v1989_v35  ;;  %vm1993_vm14 = vweird.f32 %v3988_v27  ;;  %v6260_v46 = vadd.f32 1.0, %v3990_v38  ;;  %2394 = vadd.xlane.f32.xlu0 %v2335_v59 }
 0x25b   : > { %v6262_v63 = vpop.eup %3993  ;;  %v1996_v36 = vand.u32 2147483647, %v6170_v9  ;;  %v6265_v3 = vadd.f32 1.0, %v3992_v25  ;;  %3997 = vpow2.f32 %v3541_v12  ;;  %v2319_v56 = vmul.f32 %v5767_v5, %v6237_v17  ;;  %vm1994_vm15 = vmor %vm1992_vm12, %vm1993_vm14 }
 0x25c   : > { %v6270_v14 = vmul.f32 %v1985_v24, %v6019_v51  ;;  %v1991_v15 = vadd.f32 %v3988_v27, %v1990_v2  ;;  %v2228_v52 = vmul.f32 %v6262_v63, %v6206_v13  ;;  %3999 = vrcp.f32 %v6260_v46 }
 0x25d   : > { %v7607_v19 = vsub.f32 1.0, %v5753_v48  ;;  %v2103_v44 = vand.u32 2147483648, %v5669_v10  ;;  %v6280_v45 = vmul.f32 %v2225_v41, %v6022_v29  ;;  %4001 = vrcp.f32 %v6265_v3  ;;  %2362 = vadd.xlane.f32.xlu2 %v2319_v56 }
 0x25e   : > { %vm2098_vm0 = vweird.f32 %v5721_v11  ;;  %v1995_v51 = vsel %vm1994_vm15, %v3988_v27, %v1991_v15  ;;  %v1999_v22 = vor.u32 1.1754944e-38, %v1998_v31  ;;  %v2229_v23 = vsub.f32 1.0, %v2228_v52  ;;  %v1616_v31 = vpop.f32.mrf.mxu1 }
 0x25f   : > { %v1855_v7 = vmul.f32 %v5704_v28, %v7607_v19  ;;  %v3996_v48 = vpop.eup %3995  ;;  %v6289_v35 = vadd.f32 %v5721_v11, %v6050_v4  ;;  %v6293_v29 = vmul.f32 %v6077_v58, %v5787_v54  ;;  %vm1997_vm1 = vcmp.eq.f32.partialorder %v1996_v36, 8.507059e+37  ;;  %vm6317_vm4 = vmor %vm2097_vm13, %vm2098_vm0 }
 0x260   : > { %v2236_v9 = vand.u32 2147483647, %v6206_v13  ;;  %v2000_v59 = vsel %vm1997_vm1, %v1999_v22, %v1995_v51  ;;  %v2230_v38 = vmul.f32 %v6262_v63, %v2229_v23  ;;  %v6297_v24 = vadd.f32 1.0, %v3996_v48  ;;  %v4140_v23 = vld [vmem:[%s7368_s10] ss:$0 sm:$0xff] }
 0x261   : > { %v2320_v27 = vmul.f32 %v5767_v5, %v6270_v14  ;;  %v3998_v12 = vpop.eup %3997  ;;  %v6302_v4 = vadd.f32 %v5704_v28, %v1855_v7  ;;  %v2104_v25 = vor.u32 1.1754944e-38, %v2103_v44  ;;  %vm2233_vm2 = vweird.f32 %v6262_v63 }
 0x262   : > { %v2336_v41 = vmul.f32 %v5767_v5, %v6280_v45  ;;  %v4000_v2 = vpop.eup %3999  ;;  %v2231_v36 = vadd.f32 %v6262_v63, %v2230_v38  ;;  %vm2232_vm3 = vweird.f32 %v6206_v13  ;;  %v2238_v56 = vand.u32 2147483648, %v6206_v13 }
 0x263   : > { %4003 = vrcp.f32 %v6297_v24  ;;  %2364 = vadd.xlane.f32.xlu0 %v2320_v27  ;;  %v6311_v15 = vpop.eup %4001  ;;  %v7610_v19 = vand.u32 2147483647, %v5669_v10  ;;  %v6328_v44 = vmul.f32 %v2000_v59, %v6060_v30  ;;  %v2003_v51 = vmul.f32 %v4000_v2, %v6260_v46  ;;  %vm6347_vm6 = vmor %vm2232_vm3, %vm2233_vm2 }
 0x264   : > { %v6331_v22 = vadd.f32 1.0, %v3998_v12  ;;  %2396 = vadd.xlane.f32.xlu1 %v2336_v41  ;;  %v6336_v48 = vadd.f32 %v4140_v23, %v1616_v31  ;;  %v2100_v10 = vsel %vm6317_vm4, %v5721_v11, %v6289_v35  ;;  %v2109_v38 = vsub.f32 1.0, %v6293_v29 }
 0x265   : > { %vm6323_vm5 = vcmp.eq.f32.partialorder %v7610_v19, 8.507059e+37  ;;  %vm6351_vm7 = vcmp.eq.f32.partialorder %v2236_v9, 8.507059e+37  ;;  %v2243_v27 = vmul.f32 %v6311_v15, %v6265_v3  ;;  %v2235_v11 = vsel %vm6347_vm6, %v6262_v63, %v2231_v36 }
 0x266   : > { %v2004_v35 = vsub.f32 1.0, %v2003_v51  ;;  %v2011_v31 = vand.u32 2147483647, %v6260_v46  ;;  %4005 = vrcp.f32 %v6331_v22  ;;  %v2239_v13 = vor.u32 1.1754944e-38, %v2238_v56 }
 0x267   : > { %vm2007_vm8 = vweird.f32 %v6260_v46  ;;  %v2013_v9 = vand.u32 2147483648, %v6260_v46  ;;  %v2244_v12 = vsub.f32 1.0, %v2243_v27  ;;  %vm1828_vm9 = vweird.f32 %v5654_v18 }
 0x268   : > { %v2005_v41 = vmul.f32 %v4000_v2, %v2004_v35  ;;  %vm2008_vm10 = vweird.f32 %v4000_v2  ;;  %v2321_v52 = vmul.f32 %v5767_v5, %v6328_v44  ;;  %v3526_v63 = vmul.f32 -1.442695, %v6336_v48 }
 0x269   : > { %v4004_v36 = vpop.eup %4003  ;;  %v2240_v19 = vsel %vm6351_vm7, %v2239_v13, %v2235_v11  ;;  %v2245_v56 = vmul.f32 %v6311_v15, %v2244_v12  ;;  %vm2247_vm11 = vweird.f32 %v6265_v3  ;;  %v2251_v51 = vand.u32 2147483647, %v6265_v3  ;;  %vm2009_vm0 = vmor %vm2007_vm8, %vm2008_vm10 }
 0x26a   : > { %vm1827_vm12 = vweird.f32 %v5623_v62  ;;  %vm1858_vm13 = vweird.f32 %v5704_v28  ;;  %v2006_v23 = vadd.f32 %v4000_v2, %v2005_v41  ;;  %vm6375_vm14 = vcmp.eq.f32.partialorder %v2011_v31, 8.507059e+37  ;;  %2366 = vadd.xlane.f32.xlu2 %v2321_v52 }
 0x26b   : > { %vm2248_vm15 = vweird.f32 %v6311_v15  ;;  %v2018_v59 = vmul.f32 %v4004_v36, %v6297_v24  ;;  %v2014_v27 = vor.u32 1.1754944e-38, %v2013_v9  ;;  %v2246_v11 = vadd.f32 %v6311_v15, %v2245_v56 }
 0x26c   : > { %v2253_v35 = vand.u32 2147483648, %v6265_v3  ;;  %4007 = vpow2.f32 %v3526_v63  ;;  %v4006_v13 = vpop.eup %4005  ;;  %vm1857_vm1 = vweird.f32 %v5652_v0  ;;  %v6388_v31 = vmul.f32 %v2240_v19, %v6100_v26  ;;  %vm6399_vm2 = vmor %vm2247_vm11, %vm2248_vm15 }
 0x26d   : > { %v2010_v12 = vsel %vm2009_vm0, %v4000_v2, %v2006_v23  ;;  %v2019_v41 = vsub.f32 1.0, %v2018_v59  ;;  %v2028_v52 = vand.u32 2147483648, %v6297_v24  ;;  %v2105_v46 = vsel %vm6323_vm5, %v2104_v25, %v2100_v10  ;;  %vm6432_vm15 = vmor %vm1827_vm12, %vm1828_vm9  ;;  %v7635_v23 = vld [vmem:[#allocation45_spill] sm:$0xff] }
 0x26e   : > { %v2015_v9 = vsel %vm6375_vm14, %v2014_v27, %v2010_v12  ;;  %v2026_v26 = vand.u32 2147483647, %v6297_v24  ;;  %v2258_v2 = vmul.f32 %v4006_v13, %v6331_v22  ;;  %v2250_v25 = vsel %vm6399_vm2, %v6311_v15, %v2246_v11  ;;  %vm6459_vm12 = vmor %vm1857_vm1, %vm1858_vm13 }
 0x26f   : > { %v6406_v19 = vmul.f32 %v2015_v9, %v6159_v55  ;;  %v2020_v7 = vmul.f32 %v4004_v36, %v2019_v41  ;;  %vm2023_vm3 = vweird.f32 %v4004_v36  ;;  %vm2252_vm4 = vcmp.eq.f32.partialorder %v2251_v51, 8.507059e+37 }
 0x270   : > { %v2254_v10 = vor.u32 1.1754944e-38, %v2253_v35  ;;  %vm2022_vm5 = vweird.f32 %v6297_v24  ;;  %v2259_v3 = vsub.f32 1.0, %v2258_v2  ;;  %v7621_v56 = vand.u32 2147483647, %v5623_v62 }
 0x271   : > { %v2021_v30 = vadd.f32 %v4004_v36, %v2020_v7  ;;  %v2029_v55 = vor.u32 1.1754944e-38, %v2028_v52  ;;  %v2322_v59 = vmul.f32 %v5767_v5, %v6406_v19  ;;  %v2337_v15 = vmul.f32 %v5767_v5, %v6388_v31  ;;  %vm2024_vm8 = vmor %vm2022_vm5, %vm2023_vm3  ;;  %v7642_v52 = vld [vmem:[#allocation36_spill] sm:$0xff] }
 0x272   : > { %vm6414_vm6 = vcmp.eq.f32.partialorder %v7621_v56, 8.507059e+37  ;;  %v4008_v27 = vpop.eup %4007  ;;  %vm2053_vm7 = vweird.f32 %v5647_v50  ;;  %v2255_v51 = vsel %vm2252_vm4, %v2254_v10, %v2250_v25  ;;  %v2260_v24 = vmul.f32 %v4006_v13, %v2259_v3 }
 0x273   : > { %vm2263_vm10 = vweird.f32 %v4006_v13  ;;  %v2268_v11 = vand.u32 2147483648, %v6331_v22  ;;  %v2025_v35 = vsel %vm2024_vm8, %v4004_v36, %v2021_v30  ;;  %vm2027_vm11 = vcmp.eq.f32.partialorder %v2026_v26, 8.507059e+37  ;;  %2368 = vadd.xlane.f32.xlu1 %v2322_v59  ;;  %2398 = vadd.xlane.f32.xlu2 %v2337_v15 }
 0x274   : > { %v2266_v12 = vand.u32 2147483647, %v6331_v22  ;;  %v6425_v41 = vadd.f32 1.0, %v4008_v27  ;;  %vm2052_vm14 = vweird.f32 %v5620_v1  ;;  %v1863_v9 = vand.u32 2147483648, %v5652_v0 }
 0x275   : > { %v2030_v36 = vsel %vm2027_vm11, %v2029_v55, %v2025_v35  ;;  %v2261_v63 = vadd.f32 %v4006_v13, %v2260_v24  ;;  %vm2262_vm0 = vweird.f32 %v6331_v22  ;;  %v6439_v26 = vmul.f32 %v2105_v46, %v5617_v33 }
 0x276   : > { %v2110_v2 = vmul.f32 %v6077_v58, %v2109_v38  ;;  %v6445_v25 = vmul.f32 %v2255_v51, %v6166_v49  ;;  %v6448_v62 = vmul.f32 %v2030_v36, %v6211_v61  ;;  %vm2264_vm9 = vmor %vm2262_vm0, %vm2263_vm10  ;;  %v1830_v22 = vsel %vm6432_vm15, %v5654_v18, %v5745_v8  ;;  %v7636_v51 = vld [vmem:[#allocation51_spill] sm:$0xff]  ;;  %v7644_v36 = vld [vmem:[#allocation52_spill] sm:$0xff] }
 0x277   : > { %7626 = vst [vmem:[#allocation65_spill] sm:$0xff] %v6439_v26  ;;  %v2265_v49 = vsel %vm2264_vm9, %v4006_v13, %v2261_v63  ;;  %v2269_v29 = vor.u32 1.1754944e-38, %v2268_v11  ;;  %4009 = vrcp.f32 %v6425_v41  ;;  %v7629_v61 = vsub.f32 1.0, %v5725_v34  ;;  %v7637_v11 = vld [vmem:[#allocation47_spill] sm:$0xff]  ;;  %vm6516_vm10 = vmor %vm2052_vm14, %vm2053_vm7 }
 0x278   : > { %v1860_v18 = vsel %vm6459_vm12, %v5704_v28, %v6302_v4  ;;  %vm2267_vm2 = vcmp.eq.f32.partialorder %v2266_v12, 8.507059e+37  ;;  %v2323_v8 = vmul.f32 %v5767_v5, %v6448_v62  ;;  %v1839_v46 = vsub.f32 1.0, %v5749_v20  ;;  %v7634_v20 = vld [vmem:[#allocation56_spill] sm:$0xff] }
 0x279   : > { %v2080_v38 = vmul.f32 %v5695_v57, %v7629_v61  ;;  %v7630_v13 = vand.u32 2147483647, %v5652_v0  ;;  %v1864_v7 = vor.u32 1.1754944e-38, %v1863_v9  ;;  %v2270_v10 = vsel %vm2267_vm2, %v2269_v29, %v2265_v49  ;;  %v7647_v49 = vld [vmem:[#allocation53_spill] sm:$0xff]  ;;  %v7649_v61 = vld [vmem:[#allocation50_spill] sm:$0xff] }
 0x27a   : > { %v7631_v34 = vand.u32 2147483647, %v5620_v1  ;;  %v2111_v56 = vadd.f32 %v6077_v58, %v2110_v2  ;;  %vm2113_vm3 = vweird.f32 %v6077_v58  ;;  %v2338_v28 = vmul.f32 %v5767_v5, %v6445_v25  ;;  %2370 = vadd.xlane.f32.xlu0 %v2323_v8  ;;  %v7645_v2 = vld [vmem:[#allocation42_spill] sm:$0xff] }
 0x27b   : > { %vm1862_vm13 = vcmp.eq.f32.partialorder %v7630_v13, 8.507059e+37  ;;  %v2328_v0 = vmul.f32 %v5767_v5, %v6439_v26  ;;  %v1835_v4 = vsel %vm6414_vm6, %v7634_v20, %v1830_v22  ;;  %vm2083_vm4 = vweird.f32 %v5695_v57 }
 0x27c   : > { %vm6478_vm1 = vcmp.eq.f32.partialorder %v7631_v34, 8.507059e+37  ;;  %v1865_v30 = vsel %vm1862_vm13, %v1864_v7, %v1860_v18  ;;  %v2118_v55 = vand.u32 2147483648, %v5787_v54  ;;  %v2081_v59 = vadd.f32 %v5695_v57, %v2080_v38  ;;  %2400 = vadd.xlane.f32.xlu1 %v2338_v28  ;;  %v7650_v38 = vld [vmem:[#allocation55_spill] sm:$0xff]  ;;  %v6552_v7 = vld [vmem:[%s7550_s23] ss:$0 sm:$0xff] }
 0x27d   : > { %vm2112_vm5 = vweird.f32 %v5787_v54  ;;  %v2116_v15 = vand.u32 2147483647, %v5787_v54  ;;  %v6497_v27 = vmul.f32 %v2270_v10, %v6246_v40  ;;  %2380 = vadd.xlane.f32.xlu2 %v2328_v0  ;;  %v6499_v5 = vpop.eup %4009  ;;  %v2063_v24 = vmul.f32 %v7636_v51, %v7635_v23  ;;  %v7657_v54 = vld [vmem:[#allocation43_spill] sm:$0xff]  ;;  %v7658_v40 = vld [vmem:[#allocation48_spill] sm:$0xff] }
 0x27e   : > { %vm2082_vm6 = vweird.f32 %v7637_v11  ;;  %v2086_v35 = vand.u32 2147483647, %v7637_v11  ;;  %v2088_v12 = vand.u32 2147483648, %v7637_v11  ;;  %vm6508_vm8 = vmor %vm2112_vm5, %vm2113_vm3  ;;  %v6521_v9 = vmul.f32 %v1835_v4, %v7642_v52  ;;  %v7653_v4 = vld [vmem:[#allocation54_spill] sm:$0xff]  ;;  %v7655_v11 = vld [vmem:[#allocation49_spill] sm:$0xff] }
 0x27f   : > { %v1840_v63 = vmul.f32 %v7644_v36, %v1839_v46  ;;  %v6525_v22 = vmul.f32 %v1865_v30, %v7645_v2  ;;  %v2115_v33 = vsel %vm6508_vm8, %v6077_v58, %v2111_v56  ;;  %v7648_v29 = vsub.f32 1.0, %v7647_v49  ;;  %vm6540_vm11 = vmor %vm2082_vm6, %vm2083_vm4 }
 0x280   : > { %7643 = vst [vmem:[#allocation56_spill] sm:$0xff] %v6521_v9  ;;  %vm1813_vm7 = vweird.f32 %v7649_v61  ;;  %v2055_v18 = vsel %vm6516_vm10, %v5647_v50, %v7650_v38  ;;  %v2119_v46 = vor.u32 1.1754944e-38, %v2118_v55  ;;  %v2085_v58 = vsel %vm6540_vm11, %v5695_v57, %v2081_v59  ;;  %v7654_v55 = vld [vmem:[#allocation46_spill] sm:$0xff]  ;;  %v7662_v38 = vld [vmem:[#allocation41_spill] sm:$0xff] }
 0x281   : > { %7646 = vst [vmem:[#allocation45_spill] sm:$0xff] %v6525_v22  ;;  %v1810_v1 = vmul.f32 %v7649_v61, %v7648_v29  ;;  %vm2117_vm14 = vcmp.eq.f32.partialorder %v2116_v15, 8.507059e+37  ;;  %v2033_v13 = vmul.f32 %v6499_v5, %v6425_v41  ;;  %v2339_v50 = vmul.f32 %v6552_v7, %v6497_v27 }
 0x282   : > { %v2064_v10 = vsub.f32 1.0, %v2063_v24  ;;  %vm2087_vm15 = vcmp.eq.f32.partialorder %v2086_v35, 8.507059e+37  ;;  %v2089_v34 = vor.u32 1.1754944e-38, %v2088_v12  ;;  %v2120_v56 = vsel %vm2117_vm14, %v2119_v46, %v2115_v33  ;;  %v7660_v33 = vld [vmem:[#allocation35_spill] sm:$0xff] }
 0x283   : > { %v1841_v28 = vadd.f32 %v7644_v36, %v1840_v63  ;;  %vm1843_vm0 = vweird.f32 %v7644_v36  ;;  %2402 = vadd.xlane.f32.xlu0 %v2339_v50  ;;  %v2312_v57 = vmul.f32 %v6552_v7, %v6525_v22  ;;  %v2310_v0 = vmul.f32 %v6552_v7, %v6521_v9  ;;  %v7659_v63 = vld [vmem:[#allocation44_spill] sm:$0xff] }
 0x284   : > { %v1811_v20 = vadd.f32 %v7649_v61, %v1810_v1  ;;  %v2060_v30 = vsel %vm6478_vm1, %v7653_v4, %v2055_v18  ;;  %v1848_v59 = vand.u32 2147483648, %v7654_v55  ;;  %v2090_v15 = vsel %vm2087_vm15, %v2089_v34, %v2085_v58  ;;  %v7666_v4 = vld [vmem:[#allocation40_spill] sm:$0xff] }
 0x285   : > { %vm1842_vm9 = vweird.f32 %v7654_v55  ;;  %v1846_v24 = vand.u32 2147483647, %v7654_v55  ;;  %v6570_v35 = vmul.f32 %v2120_v56, %v7655_v11  ;;  %v2034_v12 = vsub.f32 1.0, %v2033_v13  ;;  %2348 = vadd.xlane.f32.xlu1 %v2312_v57  ;;  %2344 = vadd.xlane.f32.xlu2 %v2310_v0 }
 0x286   : > { %v1793_v52 = vmul.f32 %v7658_v40, %v7657_v54  ;;  %vm1812_vm12 = vweird.f32 %v7659_v63  ;;  %v1816_v3 = vand.u32 2147483647, %v7659_v63  ;;  %v1818_v2 = vand.u32 2147483648, %v7659_v63  ;;  %vm1844_vm2 = vmor %vm1842_vm9, %vm1843_vm0 }
 0x287   : > { %7656 = vst [vmem:[#allocation51_spill] sm:$0xff] %v6570_v35  ;;  %v6580_v49 = vmul.f32 %v2060_v30, %v7660_v33  ;;  %v2065_v29 = vmul.f32 %v7636_v51, %v2064_v10  ;;  %v1845_v1 = vsel %vm1844_vm2, %v7644_v36, %v1841_v28  ;;  %v6585_v18 = vmul.f32 %v2090_v15, %v7662_v38  ;;  %vm6589_vm13 = vmor %vm1812_vm12, %vm1813_vm7  ;;  %v7670_v38 = vld [vmem:[#allocation39_spill] sm:$0xff] }
 0x288   : > { %v1849_v46 = vor.u32 1.1754944e-38, %v1848_v59  ;;  %v1815_v58 = vsel %vm6589_vm13, %v7649_v61, %v1811_v20  ;;  %vm1847_vm1 = vcmp.eq.f32.partialorder %v1846_v24, 8.507059e+37  ;;  %v2035_v13 = vmul.f32 %v6499_v5, %v2034_v12  ;;  %v7668_v24 = vld [vmem:[#allocation38_spill] sm:$0xff] }
 0x289   : > { %7661 = vst [vmem:[#allocation47_spill] sm:$0xff] %v6580_v49  ;;  %v2329_v36 = vmul.f32 %v6552_v7, %v6570_v35  ;;  %v1794_v50 = vsub.f32 1.0, %v1793_v52  ;;  %vm1817_vm3 = vcmp.eq.f32.partialorder %v1816_v3, 8.507059e+37  ;;  %v1819_v10 = vor.u32 1.1754944e-38, %v1818_v2 }
 0x28a   : > { %7663 = vst [vmem:[#allocation36_spill] sm:$0xff] %v6585_v18  ;;  %v1850_v34 = vsel %vm1847_vm1, %v1849_v46, %v1845_v1  ;;  %v2066_v56 = vadd.f32 %v7636_v51, %v2065_v29  ;;  %vm2068_vm4 = vweird.f32 %v7636_v51  ;;  %v2327_v28 = vmul.f32 %v6552_v7, %v6585_v18 }
 0x28b   : > { %2382 = vadd.xlane.f32.xlu0 %v2329_v36  ;;  %v2325_v61 = vmul.f32 %v6552_v7, %v6580_v49  ;;  %v1820_v57 = vsel %vm1817_vm3, %v1819_v10, %v1815_v58  ;;  %vm2067_vm5 = vweird.f32 %v7635_v23  ;;  %v2073_v0 = vand.u32 2147483648, %v7635_v23  ;;  %v7673_v10 = vld [vmem:[#allocation37_spill] sm:$0xff] }
 0x28c   : > { %v2071_v20 = vand.u32 2147483647, %v7635_v23  ;;  %v6609_v30 = vmul.f32 %v1850_v34, %v7666_v4  ;;  %v2036_v55 = vadd.f32 %v6499_v5, %v2035_v13  ;;  %vm2038_vm6 = vweird.f32 %v6499_v5  ;;  %vm2069_vm8 = vmor %vm2067_vm5, %vm2068_vm4 }
 0x28d   : > { %2378 = vadd.xlane.f32.xlu1 %v2327_v28  ;;  %2374 = vadd.xlane.f32.xlu2 %v2325_v61  ;;  %v1795_v59 = vmul.f32 %v7658_v40, %v1794_v50  ;;  %v2043_v15 = vand.u32 2147483648, %v6425_v41  ;;  %v6616_v11 = vmul.f32 %v1820_v57, %v7668_v24  ;;  %v2070_v12 = vsel %vm2069_vm8, %v7636_v51, %v2066_v56 }
 0x28e   : > { %7667 = vst [vmem:[#allocation52_spill] sm:$0xff] %v6609_v30  ;;  %vm2037_vm10 = vweird.f32 %v6425_v41  ;;  %v2041_v23 = vand.u32 2147483647, %v6425_v41  ;;  %v2074_v52 = vor.u32 1.1754944e-38, %v2073_v0  ;;  %vm2072_vm11 = vcmp.eq.f32.partialorder %v2071_v20, 8.507059e+37 }
 0x28f   : > { %7669 = vst [vmem:[#allocation42_spill] sm:$0xff] %v6616_v11  ;;  %vm2039_vm7 = vmor %vm2037_vm10, %vm2038_vm6  ;;  %v2311_v3 = vmul.f32 %v6552_v7, %v6609_v30  ;;  %v2044_v33 = vor.u32 1.1754944e-38, %v2043_v15  ;;  %v1796_v29 = vadd.f32 %v7658_v40, %v1795_v59  ;;  %vm1798_vm14 = vweird.f32 %v7658_v40 }
 0x290   : > { %v2040_v63 = vsel %vm2039_vm7, %v6499_v5, %v2036_v55  ;;  %v2075_v2 = vsel %vm2072_vm11, %v2074_v52, %v2070_v12  ;;  %vm2042_vm15 = vcmp.eq.f32.partialorder %v2041_v23, 8.507059e+37  ;;  %v2309_v51 = vmul.f32 %v6552_v7, %v6616_v11 }
 0x291   : > { %v1803_v41 = vand.u32 2147483648, %v7657_v54  ;;  %v2045_v1 = vsel %vm2042_vm15, %v2044_v33, %v2040_v63  ;;  %vm1797_vm0 = vweird.f32 %v7657_v54  ;;  %v1801_v5 = vand.u32 2147483647, %v7657_v54 }
 0x292   : > { %v6632_v8 = vmul.f32 %v2075_v2, %v7670_v38  ;;  %vm1799_vm9 = vmor %vm1797_vm0, %vm1798_vm14  ;;  %v6636_v58 = vmul.f32 %v2045_v1, %v6336_v48  ;;  %v2351_v48 = vpop.xlane.xlu2 %2350  ;;  %v6647_v0 = vstv %s2404_s22 }
 0x293   : > { %2346 = vadd.xlane.f32.xlu0 %v2311_v3  ;;  %v1800_v46 = vsel %vm1799_vm9, %v7658_v40, %v1796_v29  ;;  %v1804_v13 = vor.u32 1.1754944e-38, %v1803_v41  ;;  %vm1802_vm12 = vcmp.eq.f32.partialorder %v1801_v5, 8.507059e+37  ;;  %v2411_v4 = vadd.f32 %v6647_v0, %v2351_v48 }
 0x294   : > { %7671 = vst [vmem:[#allocation53_spill] sm:$0xff] %v6632_v8  ;;  %v2326_v36 = vmul.f32 %v6552_v7, %v6632_v8  ;;  %v2324_v54 = vmul.f32 %v6552_v7, %v6636_v58 }
 0x295   : > { %2342 = vadd.xlane.f32.xlu1 %v2309_v51  ;;  %7672 = vst [vmem:[#allocation50_spill] sm:$0xff] %v6636_v58  ;;  %v1805_v50 = vsel %vm1802_vm12, %v1804_v13, %v1800_v46  ;;  %v3547_v59 = vmul.f32 -1.442695, %v2411_v4 }
 0x296   : > { %v6643_v34 = vmul.f32 %v1805_v50, %v7673_v10 }
 0x297   : > { %4011 = vpow2.f32 %v3547_v59 }
 0x298   : > { %7674 = vst [vmem:[#allocation55_spill] sm:$0xff] %v6643_v34  ;;  %v2308_v40 = vmul.f32 %v6552_v7, %v6643_v34 }
 0x29b   : > { %2376 = vadd.xlane.f32.xlu0 %v2326_v36 }
 0x29d   : > { %2372 = vadd.xlane.f32.xlu1 %v2324_v54  ;;  %v4012_v1 = vpop.eup %4011 }
 0x29e   : > { %v6658_v36 = vadd.f32 1.0, %v4012_v1 }
 0x2a3   : > { %2340 = vadd.xlane.f32.xlu0 %v2308_v40  ;;  %v2353_v56 = vpop.xlane.xlu0 %2352 }
 0x2a4   : > { %v2412_v15 = vadd.f32 %v6647_v0, %v2353_v56 }
 0x2a6   : > { %v2385_v28 = vpop.xlane.xlu1 %2384  ;;  %v3548_v52 = vmul.f32 -1.442695, %v2412_v15 }
 0x2a7   : > { %v2428_v24 = vadd.f32 %v6647_v0, %v2385_v28 }
 0x2a8   : > { %4013 = vpow2.f32 %v3548_v52 }
 0x2a9   : > { %v3564_v3 = vmul.f32 -1.442695, %v2428_v24 }
 0x2ab   : > { %4015 = vpow2.f32 %v3564_v3 }
 0x2ac   : > { %v2387_v61 = vpop.xlane.xlu2 %2386 }
 0x2ad   : > { %v2429_v7 = vadd.f32 %v6647_v0, %v2387_v61 }
 0x2ae   : > { %v4014_v54 = vpop.eup %4013 }
 0x2af   : > { %v2355_v20 = vpop.xlane.xlu1 %2354  ;;  %v3565_v33 = vmul.f32 -1.442695, %v2429_v7 }
 0x2b0   : > { %v2389_v57 = vpop.xlane.xlu0 %2388  ;;  %v2413_v63 = vadd.f32 %v6647_v0, %v2355_v20  ;;  %v6662_v20 = vadd.f32 1.0, %v4014_v54 }
 0x2b1   : > { %v2430_v51 = vadd.f32 %v6647_v0, %v2389_v57  ;;  %4017 = vpow2.f32 %v3565_v33  ;;  %v4016_v40 = vpop.eup %4015 }
 0x2b2   : > { %v3549_v29 = vmul.f32 -1.442695, %v2413_v63 }
 0x2b3   : > { %v3566_v46 = vmul.f32 -1.442695, %v2430_v51 }
 0x2b4   : > { %4019 = vpow2.f32 %v3549_v29 }
 0x2b5   : > { %v2357_v55 = vpop.xlane.xlu2 %2356  ;;  %4021 = vpow2.f32 %v3566_v46 }
 0x2b6   : > { %v2414_v5 = vadd.f32 %v6647_v0, %v2357_v55  ;;  %4023 = vrcp.f32 %v6658_v36  ;;  %v6664_v55 = vadd.f32 1.0, %v4016_v40 }
 0x2b7   : > { %v2391_v23 = vpop.xlane.xlu1 %2390  ;;  %v4018_v28 = vpop.eup %4017 }
 0x2b8   : > { %v2431_v38 = vadd.f32 %v6647_v0, %v2391_v23  ;;  %v3550_v10 = vmul.f32 -1.442695, %v2414_v5  ;;  %7675 = vst [vmem:[#allocation54_spill] sm:$0xff] %v6664_v55  ;;  %v6667_v15 = vadd.f32 1.0, %v4018_v28 }
 0x2b9   : > { %v2359_v12 = vpop.xlane.xlu0 %2358 }
 0x2ba   : > { %v2415_v13 = vadd.f32 %v6647_v0, %v2359_v12  ;;  %v3567_v48 = vmul.f32 -1.442695, %v2431_v38  ;;  %v4020_v4 = vpop.eup %4019  ;;  %4025 = vpow2.f32 %v3550_v10  ;;  %7676 = vst [vmem:[#allocation46_spill] sm:$0xff] %v6667_v15 }
 0x2bb   : > { %v6672_v52 = vadd.f32 1.0, %v4020_v4  ;;  %v4022_v63 = vpop.eup %4021 }
 0x2bc   : > { %v3551_v61 = vmul.f32 -1.442695, %v2415_v13  ;;  %4027 = vpow2.f32 %v3567_v48  ;;  %v6676_v33 = vpop.eup %4023  ;;  %v6680_v46 = vadd.f32 1.0, %v4022_v63 }
 0x2bd   : > { %7677 = vst [vmem:[#allocation49_spill] sm:$0xff] %v6676_v33 }
 0x2be   : > { %4029 = vpow2.f32 %v3551_v61  ;;  %7678 = vst [vmem:[#allocation43_spill] sm:$0xff] %v6680_v46 }
 0x2bf   : > { %4031 = vrcp.f32 %v6662_v20 }
 0x2c0   : > { %4033 = vrcp.f32 %v6664_v55  ;;  %v4026_v1 = vpop.eup %4025 }
 0x2c1   : > { %4035 = vrcp.f32 %v6667_v15  ;;  %v6685_v40 = vadd.f32 1.0, %v4026_v1 }
 0x2c2   : > { %v4028_v38 = vpop.eup %4027 }
 0x2c3   : > { %v2361_v50 = vpop.xlane.xlu1 %2360  ;;  %v6690_v28 = vadd.f32 1.0, %v4028_v38 }
 0x2c4   : > { %v2416_v57 = vadd.f32 %v6647_v0, %v2361_v50  ;;  %v4030_v13 = vpop.eup %4029 }
 0x2c5   : > { %v6683_v10 = vpop.eup %4031  ;;  %7680 = vst [vmem:[#allocation44_spill] sm:$0xff] %v6690_v28 }
 0x2c6   : > { %v3552_v7 = vmul.f32 -1.442695, %v2416_v57  ;;  %v6695_v57 = vadd.f32 1.0, %v4030_v13 }
 0x2c8   : > { %v2393_v2 = vpop.xlane.xlu2 %2392  ;;  %4037 = vpow2.f32 %v3552_v7 }
 0x2c9   : > { %v2432_v59 = vadd.f32 %v6647_v0, %v2393_v2  ;;  %4039 = vrcp.f32 %v6672_v52 }
 0x2cb   : > { %v3568_v3 = vmul.f32 -1.442695, %v2432_v59 }
 0x2cd   : > { %v2395_v41 = vpop.xlane.xlu0 %2394  ;;  %4041 = vpow2.f32 %v3568_v3 }
 0x2ce   : > { %v2433_v24 = vadd.f32 %v6647_v0, %v2395_v41 }
 0x2d0   : > { %v2363_v56 = vpop.xlane.xlu2 %2362  ;;  %v3569_v29 = vmul.f32 -1.442695, %v2433_v24 }
 0x2d1   : > { %v2417_v23 = vadd.f32 %v6647_v0, %v2363_v56  ;;  %v6688_v56 = vpop.eup %4033 }
 0x2d2   : > { %4043 = vpow2.f32 %v3569_v29  ;;  %7679 = vst [vmem:[#allocation48_spill] sm:$0xff] %v6688_v56  ;;  %v6692_v61 = vpop.eup %4035 }
 0x2d3   : > { %v3553_v5 = vmul.f32 -1.442695, %v2417_v23  ;;  %7681 = vst [vmem:[#allocation35_spill] sm:$0xff] %v6692_v61  ;;  %v4038_v4 = vpop.eup %4037 }
 0x2d4   : > { %v6697_v24 = vpop.eup %4039 }
 0x2d5   : > { %4045 = vpow2.f32 %v3553_v5  ;;  %v4042_v63 = vpop.eup %4041 }
 0x2d6   : > { %v2365_v12 = vpop.xlane.xlu0 %2364  ;;  %4047 = vrcp.f32 %v6680_v46  ;;  %v6708_v13 = vadd.f32 1.0, %v4042_v63 }
 0x2d7   : > { %v2418_v2 = vadd.f32 %v6647_v0, %v2365_v12  ;;  %v2397_v51 = vpop.xlane.xlu1 %2396 }
 0x2d8   : > { %v2434_v50 = vadd.f32 %v6647_v0, %v2397_v51  ;;  %v4044_v29 = vpop.eup %4043  ;;  %v6704_v51 = vadd.f32 1.0, %v4038_v4 }
 0x2d9   : > { %v3554_v54 = vmul.f32 -1.442695, %v2418_v2 }
 0x2da   : > { %v3570_v59 = vmul.f32 -1.442695, %v2434_v50 }
 0x2db   : > { %4049 = vpow2.f32 %v3554_v54  ;;  %v6710_v54 = vadd.f32 1.0, %v4044_v29 }
 0x2dc   : > { %4051 = vrcp.f32 %v6685_v40 }
 0x2dd   : > { %v2367_v41 = vpop.xlane.xlu2 %2366  ;;  %4053 = vrcp.f32 %v6690_v28 }
 0x2de   : > { %v2419_v48 = vadd.f32 %v6647_v0, %v2367_v41  ;;  %4055 = vrcp.f32 %v6695_v57  ;;  %v4046_v41 = vpop.eup %4045 }
 0x2df   : > { %4057 = vpow2.f32 %v3570_v59  ;;  %v6706_v38 = vpop.eup %4047 }
 0x2e0   : > { %v3555_v12 = vmul.f32 -1.442695, %v2419_v48  ;;  %7682 = vst [vmem:[#allocation41_spill] sm:$0xff] %v6706_v38 }
 0x2e1   : > { %v4050_v50 = vpop.eup %4049 }
 0x2e2   : > { %4059 = vpow2.f32 %v3555_v12  ;;  %v6712_v48 = vpop.eup %4051  ;;  %v6723_v12 = vadd.f32 1.0, %v4050_v50 }
 0x2e4   : > { %vm2751_vm15 = vweird.f32 %v6723_v12 }
 0x2e6   : > { %v2369_v7 = vpop.xlane.xlu1 %2368  ;;  %v2399_v23 = vpop.xlane.xlu2 %2398 }
 0x2e7   : > { %v2420_v3 = vadd.f32 %v6647_v0, %v2369_v7  ;;  %v2435_v2 = vadd.f32 %v6647_v0, %v2399_v23  ;;  %v6715_v7 = vadd.f32 1.0, %v4046_v41  ;;  %v6717_v23 = vpop.eup %4053 }
 0x2e8   : > { %7683 = vst [vmem:[#allocation40_spill] sm:$0xff] %v6717_v23 }
 0x2e9   : > { %v3556_v1 = vmul.f32 -1.442695, %v2420_v3  ;;  %v3571_v5 = vmul.f32 -1.442695, %v2435_v2  ;;  %v6720_v3 = vpop.eup %4055 }
 0x2ea   : > { %v4058_v29 = vpop.eup %4057 }
 0x2eb   : > { %4061 = vpow2.f32 %v3556_v1  ;;  %v4060_v58 = vpop.eup %4059  ;;  %v6731_v50 = vadd.f32 1.0, %v4058_v29 }
 0x2ec   : > { %4063 = vrcp.f32 %v6704_v51 }
 0x2ed   : > { %v2371_v4 = vpop.xlane.xlu0 %2370  ;;  %4065 = vpow2.f32 %v3571_v5 }
 0x2ee   : > { %v2421_v59 = vadd.f32 %v6647_v0, %v2371_v4  ;;  %4067 = vrcp.f32 %v6708_v13 }
 0x2ef   : > { %v2401_v63 = vpop.xlane.xlu1 %2400  ;;  %4069 = vrcp.f32 %v6710_v54 }
 0x2f0   : > { %v2381_v2 = vpop.xlane.xlu2 %2380  ;;  %v2436_v41 = vadd.f32 %v6647_v0, %v2401_v63  ;;  %v3557_v1 = vmul.f32 -1.442695, %v2421_v59  ;;  %4071 = vrcp.f32 %v6715_v7  ;;  %v6736_v63 = vadd.f32 1.0, %v4060_v58 }
 0x2f1   : > { %v2426_v34 = vadd.f32 %v6647_v0, %v2381_v2  ;;  %v4062_v5 = vpop.eup %4061 }
 0x2f2   : > { %v3572_v4 = vmul.f32 -1.442695, %v2436_v41  ;;  %4073 = vpow2.f32 %v3557_v1  ;;  %v6729_v8 = vpop.eup %4063  ;;  %v6734_v18 = vadd.f32 1.0, %v4062_v5  ;;  %vm2766_vm8 = vweird.f32 %v6736_v63 }
 0x2f3   : > { %v3562_v49 = vmul.f32 -1.442695, %v2426_v34  ;;  %4075 = vrcp.f32 %v6723_v12  ;;  %v4066_v26 = vpop.eup %4065 }
 0x2f4   : > { %4077 = vpow2.f32 %v3572_v4  ;;  %v6738_v59 = vpop.eup %4067  ;;  %v6741_v2 = vadd.f32 1.0, %v4066_v26  ;;  %vm2781_vm2 = vweird.f32 %v6734_v18  ;;  %v2785_v38 = vand.u32 2147483647, %v6734_v18 }
 0x2f5   : > { %4079 = vrcp.f32 %v6734_v18  ;;  %v6743_v34 = vpop.eup %4069  ;;  %v2787_v46 = vand.u32 2147483648, %v6734_v18 }
 0x2f6   : > { %v2403_v41 = vpop.xlane.xlu0 %2402  ;;  %4081 = vpow2.f32 %v3562_v49  ;;  %v6746_v1 = vpop.eup %4071  ;;  %vm6797_vm5 = vcmp.eq.f32.partialorder %v2785_v38, 8.507059e+37 }
 0x2f7   : > { %v2437_v29 = vadd.f32 %v6647_v0, %v2403_v41  ;;  %4083 = vrcp.f32 %v6731_v50  ;;  %vm2737_vm12 = vweird.f32 %v6746_v1 }
 0x2f8   : > { %v2349_v5 = vpop.xlane.xlu1 %2348  ;;  %v2345_v58 = vpop.xlane.xlu2 %2344  ;;  %4085 = vrcp.f32 %v6736_v63 }
 0x2f9   : > { %v4074_v35 = vpop.eup %4073  ;;  %v3573_v4 = vmul.f32 -1.442695, %v2437_v29  ;;  %v2410_v11 = vadd.f32 %v6647_v0, %v2349_v5  ;;  %v2408_v26 = vadd.f32 %v6647_v0, %v2345_v58  ;;  %4087 = vrcp.f32 %v6741_v2 }
 0x2fa   : > { %v6752_v16 = vpop.eup %4075  ;;  %v6755_v49 = vadd.f32 1.0, %v4074_v35 }
 0x2fb   : > { %v4078_v41 = vpop.eup %4077  ;;  %4089 = vpow2.f32 %v3573_v4  ;;  %v3546_v9 = vmul.f32 -1.442695, %v2410_v11  ;;  %v3544_v37 = vmul.f32 -1.442695, %v2408_v26  ;;  %vm2752_vm0 = vweird.f32 %v6752_v16 }
 0x2fc   : > { %v6757_v56 = vpop.eup %4079  ;;  %v6759_v55 = vadd.f32 1.0, %v4078_v41  ;;  %4091 = vrcp.f32 %v6755_v49  ;;  %v2800_v4 = vand.u32 2147483647, %v6755_v49  ;;  %vm2796_vm13 = vweird.f32 %v6755_v49 }
 0x2fd   : > { %v4082_v29 = vpop.eup %4081  ;;  %4093 = vpow2.f32 %v3546_v9  ;;  %v2777_v26 = vmul.f32 %v6757_v56, %v6734_v18  ;;  %vm2782_vm1 = vweird.f32 %v6757_v56 }
 0x2fe   : > { %v6762_v5 = vpop.eup %4083  ;;  %4095 = vrcp.f32 %v6759_v55  ;;  %v6765_v58 = vadd.f32 1.0, %v4082_v29  ;;  %v2383_v35 = vpop.xlane.xlu0 %2382  ;;  %v2802_v29 = vand.u32 2147483648, %v6755_v49  ;;  %vm6787_vm3 = vcmp.eq.f32.partialorder %v2800_v4, 8.507059e+37  ;;  %vm6814_vm6 = vmor %vm2781_vm2, %vm2782_vm1 }
 0x2ff   : > { %v6767_v30 = vpop.eup %4085  ;;  %4097 = vpow2.f32 %v3544_v37  ;;  %v2427_v11 = vadd.f32 %v6647_v0, %v2383_v35  ;;  %vm2753_vm2 = vmor %vm2751_vm15, %vm2752_vm0  ;;  %vm3021_vm0 = vweird.f32 %v6759_v55 }
 0x300   : > { %7684 = vst [vmem:[#allocation38_spill] sm:$0xff] %v6765_v58  ;;  %v6773_v41 = vpop.eup %4087  ;;  %4099 = vrcp.f32 %v6765_v58  ;;  %v2379_v9 = vpop.xlane.xlu1 %2378  ;;  %v2778_v58 = vsub.f32 1.0, %v2777_v26  ;;  %v2803_v26 = vor.u32 1.1754944e-38, %v2802_v29  ;;  %vm2767_vm10 = vweird.f32 %v6767_v30 }
 0x301   : > { %v2375_v32 = vpop.xlane.xlu2 %2374  ;;  %v4090_v61 = vpop.eup %4089  ;;  %v3563_v15 = vmul.f32 -1.442695, %v2427_v11  ;;  %v2425_v37 = vadd.f32 %v6647_v0, %v2379_v9  ;;  %vm2768_vm11 = vmor %vm2766_vm8, %vm2767_vm10  ;;  %vm2722_vm10 = vweird.f32 %v6729_v8 }
 0x302   : > { %v2423_v35 = vadd.f32 %v6647_v0, %v2375_v32  ;;  %v4092_v22 = vpop.eup %4091  ;;  %v6782_v60 = vadd.f32 1.0, %v4090_v61  ;;  %v2779_v53 = vmul.f32 %v6757_v56, %v2778_v58  ;;  %v2762_v58 = vmul.f32 %v6767_v30, %v6736_v63 }
 0x303   : > { %v4094_v43 = vpop.eup %4093  ;;  %4101 = vpow2.f32 %v3563_v15  ;;  %v3561_v23 = vmul.f32 -1.442695, %v2425_v37  ;;  %v2792_v9 = vmul.f32 %v4092_v22, %v6755_v49  ;;  %vm2797_vm4 = vweird.f32 %v4092_v22 }
 0x304   : > { %v3559_v11 = vmul.f32 -1.442695, %v2423_v35  ;;  %v6791_v28 = vpop.eup %4095  ;;  %4103 = vrcp.f32 %v6782_v60  ;;  %v6794_v61 = vadd.f32 1.0, %v4094_v43  ;;  %v2780_v43 = vadd.f32 %v6757_v56, %v2779_v53  ;;  %vm2798_vm7 = vmor %vm2796_vm13, %vm2797_vm4 }
 0x305   : > { %v4098_v21 = vpop.eup %4097  ;;  %4105 = vpow2.f32 %v3561_v23  ;;  %v2793_v15 = vsub.f32 1.0, %v2792_v9  ;;  %vm2736_vm13 = vweird.f32 %v6715_v7  ;;  %vm3022_vm15 = vweird.f32 %v6791_v28 }
 0x306   : > { %7687 = vst [vmem:[#allocation39_spill] sm:$0xff] %v6794_v61  ;;  %v6801_v4 = vpop.eup %4099  ;;  %4107 = vrcp.f32 %v6794_v61  ;;  %v6804_v35 = vadd.f32 1.0, %v4098_v21  ;;  %v2347_v33 = vpop.xlane.xlu0 %2346  ;;  %v2788_v21 = vor.u32 1.1754944e-38, %v2787_v46  ;;  %v2784_v53 = vsel %vm6814_vm6, %v6757_v56, %v2780_v43 }
 0x307   : > { %7690 = vst [vmem:[#allocation37_spill] sm:$0xff] %v6801_v4  ;;  %4109 = vpow2.f32 %v3559_v11  ;;  %v2409_v23 = vadd.f32 %v6647_v0, %v2347_v33  ;;  %v2794_v29 = vmul.f32 %v4092_v22, %v2793_v15  ;;  %v2763_v11 = vsub.f32 1.0, %v2762_v58 }
 0x308   : > { %7691 = vst [vmem:[#allocation66_spill] sm:$0xff] %v6804_v35  ;;  %4111 = vrcp.f32 %v6804_v35  ;;  %v2343_v9 = vpop.xlane.xlu1 %2342  ;;  %v2789_v56 = vsel %vm6797_vm5, %v2788_v21, %v2784_v53  ;;  %v2770_v58 = vand.u32 2147483647, %v6736_v63  ;;  %vm3036_vm5 = vweird.f32 %v6782_v60 }
 0x309   : > { %v4102_v33 = vpop.eup %4101  ;;  %v3545_v15 = vmul.f32 -1.442695, %v2409_v23  ;;  %v2407_v4 = vadd.f32 %v6647_v0, %v2343_v9  ;;  %v2795_v18 = vadd.f32 %v4092_v22, %v2794_v29  ;;  %v2764_v43 = vmul.f32 %v6767_v30, %v2763_v11 }
 0x30a   : > { %v6825_v61 = vpop.eup %4103  ;;  %v6827_v46 = vadd.f32 1.0, %v4102_v33  ;;  %v2772_v9 = vand.u32 2147483648, %v6736_v63  ;;  %vm2771_vm14 = vcmp.eq.f32.partialorder %v2770_v58, 8.507059e+37 }
 0x30b   : > { %v4106_v23 = vpop.eup %4105  ;;  %4113 = vpow2.f32 %v3545_v15  ;;  %v3543_v29 = vmul.f32 -1.442695, %v2407_v4  ;;  %v2799_v38 = vsel %vm2798_vm7, %v4092_v22, %v2795_v18  ;;  %v2765_v37 = vadd.f32 %v6767_v30, %v2764_v43 }
 0x30c   : > { %v6837_v35 = vpop.eup %4107  ;;  %4115 = vrcp.f32 %v6827_v46  ;;  %v6840_v33 = vadd.f32 1.0, %v4106_v23  ;;  %v2804_v49 = vsel %vm6787_vm3, %v2803_v26, %v2799_v38  ;;  %v3060_v4 = vmul.f32 %v2789_v56, %v6406_v19  ;;  %vm2738_vm3 = vmor %vm2736_vm13, %vm2737_vm12 }
 0x30d   : > { %v4110_v21 = vpop.eup %4109  ;;  %4117 = vpow2.f32 %v3543_v29  ;;  %v3061_v53 = vmul.f32 %v2804_v49, %v6448_v62  ;;  %v2773_v22 = vor.u32 1.1754944e-38, %v2772_v9  ;;  %v2769_v26 = vsel %vm2768_vm11, %v6767_v30, %v2765_v37 }
 0x30e   : > { %v6851_v11 = vpop.eup %4111  ;;  %v6853_v15 = vadd.f32 1.0, %v4110_v21  ;;  %v2377_v32 = vpop.xlane.xlu0 %2376  ;;  %v2747_v18 = vmul.f32 %v6752_v16, %v6723_v12  ;;  %4119 = vrcp.f32 %v6840_v33  ;;  %v2755_v30 = vand.u32 2147483647, %v6723_v12 }
 0x30f   : > { %v2424_v19 = vadd.f32 %v6647_v0, %v2377_v32  ;;  %3093 = vmatpush.msrb.mxu2 %v3061_v53  ;;  %v2774_v62 = vsel %vm2771_vm14, %v2773_v22, %v2769_v26  ;;  %v2757_v38 = vand.u32 2147483648, %v6723_v12  ;;  %v2732_v9 = vmul.f32 %v6746_v1, %v6715_v7 }
 0x310   : > { %v2373_v63 = vpop.xlane.xlu1 %2372  ;;  %v3059_v56 = vmul.f32 %v2774_v62, %v6328_v44  ;;  %v2748_v43 = vsub.f32 1.0, %v2747_v18  ;;  %4121 = vrcp.f32 %v6853_v15  ;;  %vm6874_vm9 = vcmp.eq.f32.partialorder %v2755_v30, 8.507059e+37 }
 0x311   : > { %v4114_v58 = vpop.eup %4113  ;;  %v3560_v23 = vmul.f32 -1.442695, %v2424_v19  ;;  %v2422_v29 = vadd.f32 %v6647_v0, %v2373_v63  ;;  %3094 = vmatpush.msrb.mxu2 %v3060_v4  ;;  %v2758_v22 = vor.u32 1.1754944e-38, %v2757_v38  ;;  %v2733_v32 = vsub.f32 1.0, %v2732_v9 }
 0x312   : > { %v6868_v49 = vpop.eup %4115  ;;  %v6871_v44 = vadd.f32 1.0, %v4114_v58  ;;  %v2749_v37 = vmul.f32 %v6752_v16, %v2748_v43  ;;  %v2740_v63 = vand.u32 2147483647, %v6715_v7  ;;  %v3032_v58 = vmul.f32 %v6825_v61, %v6782_v60 }
 0x313   : > { %v4118_v53 = vpop.eup %4117  ;;  %4123 = vpow2.f32 %v3560_v23  ;;  %v3558_v4 = vmul.f32 -1.442695, %v2422_v29  ;;  %3095 = vmatpush.msrb.mxu2 %v3059_v56  ;;  %v2734_v62 = vmul.f32 %v6746_v1, %v2733_v32  ;;  %v2742_v56 = vand.u32 2147483648, %v6715_v7 }
 0x314   : > { %4125 = vrcp.f32 %v6871_v44  ;;  %v6879_v26 = vadd.f32 1.0, %v4118_v53  ;;  %v2750_v18 = vadd.f32 %v6752_v16, %v2749_v37  ;;  %v6883_v19 = vpop.eup %4119  ;;  %vm2741_vm1 = vcmp.eq.f32.partialorder %v2740_v63, 8.507059e+37 }
 0x315   : > { %4127 = vpow2.f32 %v3558_v4  ;;  %v2735_v29 = vadd.f32 %v6746_v1, %v2734_v62  ;;  %v3033_v7 = vsub.f32 1.0, %v3032_v58  ;;  %vm3037_vm4 = vweird.f32 %v6825_v61 }
 0x316   : > { %4129 = vrcp.f32 %v6879_v26  ;;  %v2754_v43 = vsel %vm2753_vm2, %v6752_v16, %v2750_v18  ;;  %v2341_v30 = vpop.xlane.xlu0 %2340  ;;  %v6901_v38 = vpop.eup %4121  ;;  %v2743_v16 = vor.u32 1.1754944e-38, %v2742_v56  ;;  %v3042_v4 = vand.u32 2147483648, %v6782_v60  ;;  %vm3038_vm8 = vmor %vm3036_vm5, %vm3037_vm4 }
 0x317   : > { %v2759_v12 = vsel %vm6874_vm9, %v2758_v22, %v2754_v43  ;;  %v2406_v23 = vadd.f32 %v6647_v0, %v2341_v30  ;;  %v2739_v21 = vsel %vm2738_vm3, %v6746_v1, %v2735_v29  ;;  %v3040_v0 = vand.u32 2147483647, %v6782_v60  ;;  %vm3023_vm2 = vmor %vm3021_vm0, %vm3022_vm15 }
 0x318   : > { %v3058_v9 = vmul.f32 %v2759_v12, %v6270_v14  ;;  %v2744_v14 = vsel %vm2741_vm1, %v2743_v16, %v2739_v21  ;;  %v3034_v18 = vmul.f32 %v6825_v61, %v3033_v7  ;;  %v2717_v62 = vmul.f32 %v6729_v8, %v6704_v51 }
 0x319   : > { %v4124_v37 = vpop.eup %4123  ;;  %v3542_v53 = vmul.f32 -1.442695, %v2406_v23  ;;  %v3057_v56 = vmul.f32 %v2744_v14, %v6237_v17  ;;  %vm3041_vm6 = vcmp.eq.f32.partialorder %v3040_v0, 8.507059e+37  ;;  %v3043_v12 = vor.u32 1.1754944e-38, %v3042_v4 }
 0x31a   : > { %v6910_v22 = vpop.eup %4125  ;;  %v6912_v32 = vadd.f32 1.0, %v4124_v37  ;;  %3096 = vmatpush.msrb.mxu2 %v3058_v9  ;;  %v3035_v30 = vadd.f32 %v6825_v61, %v3034_v18  ;;  %v2718_v58 = vsub.f32 1.0, %v2717_v62  ;;  %v2725_v23 = vand.u32 2147483647, %v6704_v51 }
 0x31b   : > { %v4128_v63 = vpop.eup %4127  ;;  %4131 = vpow2.f32 %v3542_v53  ;;  %v2727_v17 = vand.u32 2147483648, %v6704_v51  ;;  %v3017_v9 = vmul.f32 %v6791_v28, %v6759_v55  ;;  %vm2721_vm7 = vweird.f32 %v6704_v51 }
 0x31c   : > { %v6919_v1 = vpop.eup %4129  ;;  %v6921_v43 = vadd.f32 1.0, %v4128_v63  ;;  %4133 = vrcp.f32 %v6912_v32  ;;  %3097 = vmatpush.msrb.mxu2 %v3057_v56  ;;  %v3039_v60 = vsel %vm3038_vm8, %v6825_v61, %v3035_v30  ;;  %v2719_v29 = vmul.f32 %v6729_v8, %v2718_v58  ;;  %vm2723_vm14 = vmor %vm2721_vm7, %vm2722_vm10 }
 0x31d   : > { %v3044_v16 = vsel %vm3041_vm6, %v3043_v12, %v3039_v60  ;;  %vm2726_vm11 = vcmp.eq.f32.partialorder %v2725_v23, 8.507059e+37  ;;  %v3018_v53 = vsub.f32 1.0, %v3017_v9  ;;  %v2728_v61 = vor.u32 1.1754944e-38, %v2727_v17 }
 0x31e   : > { %4135 = vrcp.f32 %v6921_v43  ;;  %v3077_v7 = vmul.f32 %v3044_v16, %v6497_v27  ;;  %v2720_v37 = vadd.f32 %v6729_v8, %v2719_v29  ;;  %v3027_v0 = vand.u32 2147483648, %v6759_v55 }
 0x31f   : > { %v2702_v4 = vmul.f32 %v6720_v3, %v6695_v57  ;;  %v3019_v27 = vmul.f32 %v6791_v28, %v3018_v53  ;;  %v3025_v18 = vand.u32 2147483647, %v6759_v55  ;;  %vm2706_vm9 = vweird.f32 %v6695_v57 }
 0x320   : > { %3113 = vmatpush.msrb.mxu3 %v3077_v7  ;;  %v2724_v51 = vsel %vm2723_vm14, %v6729_v8, %v2720_v37  ;;  %v3028_v12 = vor.u32 1.1754944e-38, %v3027_v0  ;;  %vm2707_vm12 = vweird.f32 %v6720_v3  ;;  %v2710_v17 = vand.u32 2147483647, %v6695_v57 }
 0x321   : > { %v4132_v21 = vpop.eup %4131  ;;  %v2729_v63 = vsel %vm2726_vm11, %v2728_v61, %v2724_v51  ;;  %v2703_v56 = vsub.f32 1.0, %v2702_v4  ;;  %v3020_v58 = vadd.f32 %v6791_v28, %v3019_v27  ;;  %v2712_v55 = vand.u32 2147483648, %v6695_v57  ;;  %vm2708_vm3 = vmor %vm2706_vm9, %vm2707_vm12 }
 0x322   : > { %v6942_v14 = vadd.f32 1.0, %v4132_v21  ;;  %v6947_v62 = vpop.eup %4133  ;;  %v3056_v30 = vmul.f32 %v2729_v63, %v6148_v42  ;;  %v3002_v60 = vmul.f32 %v6773_v41, %v6741_v2  ;;  %vm3026_vm13 = vcmp.eq.f32.partialorder %v3025_v18, 8.507059e+37 }
 0x323   : > { %v2704_v23 = vmul.f32 %v6720_v3, %v2703_v56  ;;  %v3024_v42 = vsel %vm3023_vm2, %v6791_v28, %v3020_v58  ;;  %v3010_v29 = vand.u32 2147483647, %v6741_v2  ;;  %vm3006_vm1 = vweird.f32 %v6741_v2 }
 0x324   : > { %v6954_v8 = vpop.eup %4135  ;;  %4137 = vrcp.f32 %v6942_v14  ;;  %3098 = vmatpush.msrb.mxu2 %v3056_v30  ;;  %v3029_v9 = vsel %vm3026_vm13, %v3028_v12, %v3024_v42  ;;  %v3003_v7 = vsub.f32 1.0, %v3002_v60  ;;  %v2713_v53 = vor.u32 1.1754944e-38, %v2712_v55 }
 0x325   : > { %v2705_v16 = vadd.f32 %v6720_v3, %v2704_v23  ;;  %v3076_v37 = vmul.f32 %v3029_v9, %v6445_v25  ;;  %v3012_v21 = vand.u32 2147483648, %v6741_v2  ;;  %v2687_v28 = vmul.f32 %v6712_v48, %v6685_v40 }
 0x326   : > { %vm2711_vm4 = vcmp.eq.f32.partialorder %v2710_v17, 8.507059e+37  ;;  %v3004_v0 = vmul.f32 %v6773_v41, %v3003_v7  ;;  %vm3007_vm5 = vweird.f32 %v6773_v41  ;;  %vm6979_vm6 = vcmp.eq.f32.partialorder %v3010_v29, 8.507059e+37 }
 0x327   : > { %v2709_v61 = vsel %vm2708_vm3, %v6720_v3, %v2705_v16  ;;  %3114 = vmatpush.msrb.mxu3 %v3076_v37  ;;  %v2688_v57 = vsub.f32 1.0, %v2687_v28  ;;  %v2695_v51 = vand.u32 2147483647, %v6685_v40  ;;  %v2697_v3 = vand.u32 2147483648, %v6685_v40  ;;  %vm3008_vm8 = vmor %vm3006_vm1, %vm3007_vm5 }
 0x328   : > { %v2714_v25 = vsel %vm2711_vm4, %v2713_v53, %v2709_v61  ;;  %v3005_v18 = vadd.f32 %v6773_v41, %v3004_v0  ;;  %v2987_v63 = vmul.f32 %v6762_v5, %v6731_v50  ;;  %v3013_v30 = vor.u32 1.1754944e-38, %v3012_v21 }
 0x329   : > { %v3055_v27 = vmul.f32 %v2714_v25, %v6065_v39  ;;  %v2689_v58 = vmul.f32 %v6712_v48, %v2688_v57  ;;  %vm2691_vm10 = vweird.f32 %v6685_v40  ;;  %vm2692_vm7 = vweird.f32 %v6712_v48 }
 0x32a   : > { %v6989_v56 = vpop.eup %4137  ;;  %v3009_v39 = vsel %vm3008_vm8, %v6773_v41, %v3005_v18  ;;  %vm6997_vm11 = vcmp.eq.f32.partialorder %v2695_v51, 8.507059e+37  ;;  %v2988_v23 = vsub.f32 1.0, %v2987_v63  ;;  %vm2992_vm14 = vweird.f32 %v6762_v5  ;;  %vm2693_vm15 = vmor %vm2691_vm10, %vm2692_vm7 }
 0x32b   : > { %3099 = vmatpush.msrb.mxu2 %v3055_v27  ;;  %v3014_v2 = vsel %vm6979_vm6, %v3013_v30, %v3009_v39  ;;  %v2690_v17 = vadd.f32 %v6712_v48, %v2689_v58  ;;  %v2997_v55 = vand.u32 2147483648, %v6731_v50  ;;  %v2672_v40 = vmul.f32 %v6697_v24, %v6672_v52 }
 0x32c   : > { %v3075_v60 = vmul.f32 %v3014_v2, %v6388_v31  ;;  %v2698_v41 = vor.u32 1.1754944e-38, %v2697_v3  ;;  %v2989_v42 = vmul.f32 %v6762_v5, %v2988_v23  ;;  %v2995_v29 = vand.u32 2147483647, %v6731_v50 }
 0x32d   : > { %v2694_v9 = vsel %vm2693_vm15, %v6712_v48, %v2690_v17  ;;  %vm2991_vm0 = vweird.f32 %v6731_v50  ;;  %v2998_v16 = vor.u32 1.1754944e-38, %v2997_v55  ;;  %v2673_v7 = vsub.f32 1.0, %v2672_v40 }
 0x32e   : > { %3115 = vmatpush.msrb.mxu3 %v3075_v60  ;;  %v2699_v37 = vsel %vm6997_vm11, %v2698_v41, %v2694_v9  ;;  %v2990_v53 = vadd.f32 %v6762_v5, %v2989_v42  ;;  %vm2677_vm9 = vweird.f32 %v6697_v24  ;;  %v2682_v31 = vand.u32 2147483648, %v6672_v52  ;;  %vm2993_vm12 = vmor %vm2991_vm0, %vm2992_vm14  ;;  %v7702_v60 = vld [vmem:[#allocation49_spill] sm:$0xff]  ;;  %v7703_v42 = vld [vmem:[#allocation64_spill] sm:$0xff] }
 0x32f   : > { %v3054_v21 = vmul.f32 %v2699_v37, %v6043_v47  ;;  %v2674_v48 = vmul.f32 %v6697_v24, %v2673_v7  ;;  %v2680_v50 = vand.u32 2147483647, %v6672_v52  ;;  %v2972_v28 = vmul.f32 %v6743_v34, %v6710_v54 }
 0x330   : > { %v2994_v61 = vsel %vm2993_vm12, %v6762_v5, %v2990_v53  ;;  %vm2996_vm2 = vcmp.eq.f32.partialorder %v2995_v29, 8.507059e+37  ;;  %vm2676_vm13 = vweird.f32 %v6672_v52  ;;  %vm2976_vm1 = vweird.f32 %v6710_v54 }
 0x331   : > { %3100 = vmatpush.msrb.mxu2 %v3054_v21  ;;  %v2999_v0 = vsel %vm2996_vm2, %v2998_v16, %v2994_v61  ;;  %v2675_v47 = vadd.f32 %v6697_v24, %v2674_v48  ;;  %v2683_v25 = vor.u32 1.1754944e-38, %v2682_v31  ;;  %v2973_v4 = vsub.f32 1.0, %v2972_v28  ;;  %vm2678_vm3 = vmor %vm2676_vm13, %vm2677_vm9  ;;  %v7704_v48 = vld [vmem:[#allocation58_spill] sm:$0xff]  ;;  %v7705_v28 = vld [vmem:[#allocation44_spill] sm:$0xff] }
 0x332   : > { %v3074_v57 = vmul.f32 %v2999_v0, %v6280_v45  ;;  %v2980_v51 = vand.u32 2147483647, %v6710_v54  ;;  %v2982_v5 = vand.u32 2147483648, %v6710_v54  ;;  %v2657_v52 = vmul.f32 %v6683_v10, %v6662_v20  ;;  %v7706_v61 = vld [vmem:[#allocation40_spill] sm:$0xff] }
 0x333   : > { %v2679_v27 = vsel %vm2678_vm3, %v6697_v24, %v2675_v47  ;;  %vm2681_vm4 = vcmp.eq.f32.partialorder %v2680_v50, 8.507059e+37  ;;  %v2974_v18 = vmul.f32 %v6743_v34, %v2973_v4  ;;  %vm2977_vm5 = vweird.f32 %v6743_v34 }
 0x334   : > { %3116 = vmatpush.msrb.mxu3 %v3074_v57  ;;  %v2684_v3 = vsel %vm2681_vm4, %v2683_v25, %v2679_v27  ;;  %v2658_v45 = vsub.f32 1.0, %v2657_v52  ;;  %vm2661_vm6 = vweird.f32 %v6662_v20  ;;  %v2665_v63 = vand.u32 2147483647, %v6662_v20  ;;  %vm2978_vm8 = vmor %vm2976_vm1, %vm2977_vm5 }
 0x335   : > { %v3053_v30 = vmul.f32 %v2684_v3, %v5921_v6  ;;  %v2975_v58 = vadd.f32 %v6743_v34, %v2974_v18  ;;  %v2667_v39 = vand.u32 2147483648, %v6662_v20  ;;  %v2957_v24 = vmul.f32 %v6738_v59, %v6708_v13  ;;  %v7708_v18 = vld [vmem:[#allocation39_spill] sm:$0xff]  ;;  %v7711_v6 = vld [vmem:[#allocation41_spill] sm:$0xff] }
 0x336   : > { %vm2981_vm10 = vcmp.eq.f32.partialorder %v2980_v51, 8.507059e+37  ;;  %v2983_v12 = vor.u32 1.1754944e-38, %v2982_v5  ;;  %v2659_v23 = vmul.f32 %v6683_v10, %v2658_v45  ;;  %vm2662_vm7 = vweird.f32 %v6683_v10  ;;  %v7707_v5 = vld [vmem:[#allocation63_spill] sm:$0xff] }
 0x337   : > { %3101 = vmatpush.msrb.mxu2 %v3053_v30  ;;  %v2979_v2 = vsel %vm2978_vm8, %v6743_v34, %v2975_v58  ;;  %vm7051_vm11 = vcmp.eq.f32.partialorder %v2665_v63, 8.507059e+37  ;;  %v2958_v17 = vsub.f32 1.0, %v2957_v24  ;;  %vm2962_vm14 = vweird.f32 %v6738_v59  ;;  %vm2663_vm15 = vmor %vm2661_vm6, %vm2662_vm7 }
 0x338   : > { %v2984_v55 = vsel %vm2981_vm10, %v2983_v12, %v2979_v2  ;;  %v2660_v54 = vadd.f32 %v6683_v10, %v2659_v23  ;;  %v2967_v40 = vand.u32 2147483648, %v6708_v13  ;;  %v2642_v41 = vmul.f32 %v7702_v60, %v6658_v36  ;;  %v7710_v2 = vld [vmem:[#allocation43_spill] sm:$0xff] }
 0x339   : > { %v3073_v29 = vmul.f32 %v2984_v55, %v7703_v42  ;;  %v2668_v34 = vor.u32 1.1754944e-38, %v2667_v39  ;;  %v2959_v9 = vmul.f32 %v6738_v59, %v2958_v17  ;;  %v2965_v16 = vand.u32 2147483647, %v6708_v13  ;;  %v7709_v39 = vld [vmem:[#allocation57_spill] sm:$0xff] }
 0x33a   : > { %v2664_v7 = vsel %vm2663_vm15, %v6683_v10, %v2660_v54  ;;  %vm2961_vm0 = vweird.f32 %v6708_v13  ;;  %v2968_v37 = vor.u32 1.1754944e-38, %v2967_v40  ;;  %v2643_v53 = vsub.f32 1.0, %v2642_v41 }
 0x33b   : > { %3117 = vmatpush.msrb.mxu3 %v3073_v29  ;;  %v2669_v31 = vsel %vm7051_vm11, %v2668_v34, %v2664_v7  ;;  %v2960_v21 = vadd.f32 %v6738_v59, %v2959_v9  ;;  %vm2647_vm9 = vweird.f32 %v7702_v60  ;;  %v2652_v20 = vand.u32 2147483648, %v6658_v36  ;;  %vm2963_vm12 = vmor %vm2961_vm0, %vm2962_vm14 }
 0x33c   : > { %v3052_v50 = vmul.f32 %v2669_v31, %v7704_v48  ;;  %v2644_v10 = vmul.f32 %v7702_v60, %v2643_v53  ;;  %v2650_v13 = vand.u32 2147483647, %v6658_v36  ;;  %v2942_v0 = vmul.f32 %v7706_v61, %v7705_v28 }
 0x33d   : > { %v2964_v47 = vsel %vm2963_vm12, %v6738_v59, %v2960_v21  ;;  %vm2966_vm2 = vcmp.eq.f32.partialorder %v2965_v16, 8.507059e+37  ;;  %vm2646_vm13 = vweird.f32 %v6658_v36  ;;  %vm2946_vm1 = vweird.f32 %v7705_v28  ;;  %v7714_v16 = vld [vmem:[#allocation62_spill] sm:$0xff] }
 0x33e   : > { %3102 = vmatpush.msrb.mxu2 %v3052_v50  ;;  %v2969_v25 = vsel %vm2966_vm2, %v2968_v37, %v2964_v47  ;;  %v2645_v4 = vadd.f32 %v7702_v60, %v2644_v10  ;;  %v2653_v57 = vor.u32 1.1754944e-38, %v2652_v20  ;;  %v2943_v51 = vsub.f32 1.0, %v2942_v0  ;;  %vm2648_vm3 = vmor %vm2646_vm13, %vm2647_vm9  ;;  %v7716_v47 = vld [vmem:[#allocation46_spill] sm:$0xff] }
 0x33f   : > { %v3072_v52 = vmul.f32 %v2969_v25, %v7707_v5  ;;  %v2950_v27 = vand.u32 2147483647, %v7705_v28  ;;  %v2952_v59 = vand.u32 2147483648, %v7705_v28  ;;  %v2627_v36 = vmul.f32 %v6837_v35, %v7708_v18  ;;  %v7715_v28 = vld [vmem:[#allocation45_spill] sm:$0xff]  ;;  %v7717_v25 = vld [vmem:[#allocation35_spill] sm:$0xff] }
 0x340   : > { %v2649_v3 = vsel %vm2648_vm3, %v7702_v60, %v2645_v4  ;;  %vm2651_vm4 = vcmp.eq.f32.partialorder %v2650_v13, 8.507059e+37  ;;  %v2944_v45 = vmul.f32 %v7706_v61, %v2943_v51  ;;  %vm2947_vm5 = vweird.f32 %v7706_v61 }
 0x341   : > { %3118 = vmatpush.msrb.mxu3 %v3072_v52  ;;  %v2654_v63 = vsel %vm2651_vm4, %v2653_v57, %v2649_v3  ;;  %v2628_v30 = vsub.f32 1.0, %v2627_v36  ;;  %vm2631_vm6 = vweird.f32 %v7708_v18  ;;  %v2635_v58 = vand.u32 2147483647, %v7708_v18  ;;  %vm2948_vm8 = vmor %vm2946_vm1, %vm2947_vm5 }
 0x342   : > { %v3051_v24 = vmul.f32 %v2654_v63, %v7709_v39  ;;  %v2945_v12 = vadd.f32 %v7706_v61, %v2944_v45  ;;  %v2637_v23 = vand.u32 2147483648, %v7708_v18  ;;  %v2927_v17 = vmul.f32 %v7711_v6, %v7710_v2  ;;  %v7719_v45 = vld [vmem:[#allocation66_spill] sm:$0xff] }
 0x343   : > { %vm2951_vm10 = vcmp.eq.f32.partialorder %v2950_v27, 8.507059e+37  ;;  %v2953_v55 = vor.u32 1.1754944e-38, %v2952_v59  ;;  %v2629_v54 = vmul.f32 %v6837_v35, %v2628_v30  ;;  %vm2632_vm7 = vweird.f32 %v6837_v35  ;;  %v7718_v59 = vld [vmem:[#allocation61_spill] sm:$0xff] }
 0x344   : > { %3103 = vmatpush.msrb.mxu2 %v3051_v24  ;;  %v2949_v40 = vsel %vm2948_vm8, %v7706_v61, %v2945_v12  ;;  %vm7105_vm11 = vcmp.eq.f32.partialorder %v2635_v58, 8.507059e+37  ;;  %v2928_v41 = vsub.f32 1.0, %v2927_v17  ;;  %vm2932_vm14 = vweird.f32 %v7711_v6  ;;  %vm2633_vm15 = vmor %vm2631_vm6, %vm2632_vm7  ;;  %v7720_v12 = vld [vmem:[#allocation52_spill] sm:$0xff]  ;;  %v7721_v17 = vld [vmem:[#allocation54_spill] sm:$0xff] }
 0x345   : > { %v2954_v42 = vsel %vm2951_vm10, %v2953_v55, %v2949_v40  ;;  %v2630_v29 = vadd.f32 %v6837_v35, %v2629_v54  ;;  %v2937_v34 = vand.u32 2147483648, %v7710_v2  ;;  %v2612_v9 = vmul.f32 %v6910_v22, %v6871_v44 }
 0x346   : > { %v3071_v7 = vmul.f32 %v2954_v42, %v7714_v16  ;;  %v2638_v37 = vor.u32 1.1754944e-38, %v2637_v23  ;;  %v2929_v53 = vmul.f32 %v7711_v6, %v2928_v41  ;;  %v2935_v31 = vand.u32 2147483647, %v7710_v2  ;;  %v7733_v41 = vld [vmem:[#allocation51_spill] sm:$0xff] }
 0x347   : > { %v2634_v21 = vsel %vm2633_vm15, %v6837_v35, %v2630_v29  ;;  %vm2931_vm0 = vweird.f32 %v7710_v2  ;;  %v2938_v20 = vor.u32 1.1754944e-38, %v2937_v34  ;;  %v2613_v48 = vsub.f32 1.0, %v2612_v9 }
 0x348   : > { %3119 = vmatpush.msrb.mxu3 %v3071_v7  ;;  %v2639_v50 = vsel %vm7105_vm11, %v2638_v37, %v2634_v21  ;;  %v2930_v10 = vadd.f32 %v7711_v6, %v2929_v53  ;;  %vm2617_vm9 = vweird.f32 %v6910_v22  ;;  %v2622_v13 = vand.u32 2147483648, %v6871_v44  ;;  %vm2933_vm12 = vmor %vm2931_vm0, %vm2932_vm14  ;;  %v7725_v7 = vld [vmem:[#allocation59_spill] sm:$0xff] }
 0x349   : > { %v3050_v61 = vmul.f32 %v2639_v50, %v7715_v28  ;;  %v2614_v35 = vmul.f32 %v6910_v22, %v2613_v48  ;;  %v2620_v0 = vand.u32 2147483647, %v6871_v44  ;;  %v2912_v4 = vmul.f32 %v7717_v25, %v7716_v47 }
 0x34a   : > { %v2934_v57 = vsel %vm2933_vm12, %v7711_v6, %v2930_v10  ;;  %vm2936_vm2 = vcmp.eq.f32.partialorder %v2935_v31, 8.507059e+37  ;;  %vm2616_vm13 = vweird.f32 %v6871_v44  ;;  %vm2916_vm1 = vweird.f32 %v7716_v47 }
 0x34b   : > { %3104 = vmatpush.msrb.mxu2 %v3050_v61  ;;  %v2939_v51 = vsel %vm2936_vm2, %v2938_v20, %v2934_v57  ;;  %v2615_v5 = vadd.f32 %v6910_v22, %v2614_v35  ;;  %v2623_v52 = vor.u32 1.1754944e-38, %v2622_v13  ;;  %v2913_v27 = vsub.f32 1.0, %v2912_v4  ;;  %vm2618_vm3 = vmor %vm2616_vm13, %vm2617_vm9  ;;  %v7726_v61 = vld [vmem:[#allocation56_spill] sm:$0xff] }
 0x34c   : > { %v3070_v18 = vmul.f32 %v2939_v51, %v7718_v59  ;;  %v2920_v36 = vand.u32 2147483647, %v7716_v47  ;;  %v2922_v3 = vand.u32 2147483648, %v7716_v47  ;;  %v2597_v44 = vmul.f32 %v6851_v11, %v7719_v45 }
 0x34d   : > { %v2619_v63 = vsel %vm2618_vm3, %v6910_v22, %v2615_v5  ;;  %vm2621_vm4 = vcmp.eq.f32.partialorder %v2620_v0, 8.507059e+37  ;;  %v2914_v30 = vmul.f32 %v7717_v25, %v2913_v27  ;;  %vm2917_vm5 = vweird.f32 %v7717_v25  ;;  %v7722_v22 = vld [vmem:[#allocation48_spill] sm:$0xff] }
 0x34e   : > { %3120 = vmatpush.msrb.mxu3 %v3070_v18  ;;  %v2624_v58 = vsel %vm2621_vm4, %v2623_v52, %v2619_v63  ;;  %v2598_v39 = vsub.f32 1.0, %v2597_v44  ;;  %vm2601_vm6 = vweird.f32 %v7719_v45  ;;  %v2605_v24 = vand.u32 2147483647, %v7719_v45  ;;  %vm2918_vm8 = vmor %vm2916_vm1, %vm2917_vm5  ;;  %v7727_v52 = vld [vmem:[#allocation60_spill] sm:$0xff] }
 0x34f   : > { %v3049_v23 = vmul.f32 %v2624_v58, %v7720_v12  ;;  %v2915_v2 = vadd.f32 %v7717_v25, %v2914_v30  ;;  %v2607_v6 = vand.u32 2147483648, %v7719_v45  ;;  %v2897_v55 = vmul.f32 %v7722_v22, %v7721_v17 }
 0x350   : > { %vm2921_vm10 = vcmp.eq.f32.partialorder %v2920_v36, 8.507059e+37  ;;  %v2923_v54 = vor.u32 1.1754944e-38, %v2922_v3  ;;  %v2599_v40 = vmul.f32 %v6851_v11, %v2598_v39  ;;  %vm2602_vm7 = vweird.f32 %v6851_v11  ;;  %v7728_v36 = vld [vmem:[#allocation38_spill] sm:$0xff]  ;;  %v7729_v3 = vld [vmem:[#allocation37_spill] sm:$0xff] }
 0x351   : > { %3105 = vmatpush.msrb.mxu2 %v3049_v23  ;;  %v2919_v60 = vsel %vm2918_vm8, %v7717_v25, %v2915_v2  ;;  %vm7159_vm11 = vcmp.eq.f32.partialorder %v2605_v24, 8.507059e+37  ;;  %v2898_v42 = vsub.f32 1.0, %v2897_v55  ;;  %vm2902_vm14 = vweird.f32 %v7722_v22  ;;  %vm2603_vm15 = vmor %vm2601_vm6, %vm2602_vm7  ;;  %v7730_v39 = vld [vmem:[#allocation42_spill] sm:$0xff] }
 0x352   : > { %v2924_v29 = vsel %vm2921_vm10, %v2923_v54, %v2919_v60  ;;  %v2600_v34 = vadd.f32 %v6851_v11, %v2599_v40  ;;  %v2907_v9 = vand.u32 2147483648, %v7721_v17  ;;  %v2582_v16 = vmul.f32 %v6919_v1, %v6879_v26 }
 0x353   : > { %v3069_v37 = vmul.f32 %v2924_v29, %v7725_v7  ;;  %v2608_v53 = vor.u32 1.1754944e-38, %v2607_v6  ;;  %v2899_v31 = vmul.f32 %v7722_v22, %v2898_v42  ;;  %v2905_v21 = vand.u32 2147483647, %v7721_v17 }
 0x354   : > { %v2604_v20 = vsel %vm2603_vm15, %v6851_v11, %v2600_v34  ;;  %vm2901_vm0 = vweird.f32 %v7721_v17  ;;  %v2908_v48 = vor.u32 1.1754944e-38, %v2907_v9  ;;  %v2583_v50 = vsub.f32 1.0, %v2582_v16 }
 0x355   : > { %3121 = vmatpush.msrb.mxu3 %v3069_v37  ;;  %v2609_v10 = vsel %vm7159_vm11, %v2608_v53, %v2604_v20  ;;  %v2900_v13 = vadd.f32 %v7722_v22, %v2899_v31  ;;  %vm2587_vm9 = vweird.f32 %v6919_v1  ;;  %v2592_v28 = vand.u32 2147483648, %v6879_v26  ;;  %vm2903_vm12 = vmor %vm2901_vm0, %vm2902_vm14 }
 0x356   : > { %v3048_v35 = vmul.f32 %v2609_v10, %v7726_v61  ;;  %v2584_v11 = vmul.f32 %v6919_v1, %v2583_v50  ;;  %v2590_v0 = vand.u32 2147483647, %v6879_v26  ;;  %v2882_v47 = vmul.f32 %v6868_v49, %v6827_v46 }
 0x357   : > { %v2904_v25 = vsel %vm2903_vm12, %v7722_v22, %v2900_v13  ;;  %vm2906_vm2 = vcmp.eq.f32.partialorder %v2905_v21, 8.507059e+37  ;;  %vm2586_vm13 = vweird.f32 %v6879_v26  ;;  %vm2886_vm1 = vweird.f32 %v6827_v46  ;;  %v7734_v21 = vld [vmem:[#allocation65_spill] sm:$0xff] }
 0x358   : > { %3106 = vmatpush.msrb.mxu2 %v3048_v35  ;;  %v2909_v4 = vsel %vm2906_vm2, %v2908_v48, %v2904_v25  ;;  %v2585_v57 = vadd.f32 %v6919_v1, %v2584_v11  ;;  %v2593_v51 = vor.u32 1.1754944e-38, %v2592_v28  ;;  %v2883_v5 = vsub.f32 1.0, %v2882_v47  ;;  %vm2588_vm3 = vmor %vm2586_vm13, %vm2587_vm9  ;;  %v7735_v11 = vld [vmem:[#allocation36_spill] sm:$0xff] }
 0x359   : > { %v3068_v27 = vmul.f32 %v2909_v4, %v7727_v52  ;;  %v2890_v59 = vand.u32 2147483647, %v6827_v46  ;;  %v2892_v18 = vand.u32 2147483648, %v6827_v46  ;;  %v2867_v26 = vmul.f32 %v7729_v3, %v7728_v36  ;;  %v7738_v52 = vld [vmem:[#allocation53_spill] sm:$0xff] }
 0x35a   : > { %v2589_v45 = vsel %vm2588_vm3, %v6919_v1, %v2585_v57  ;;  %vm2591_vm4 = vcmp.eq.f32.partialorder %v2590_v0, 8.507059e+37  ;;  %v2884_v44 = vmul.f32 %v6868_v49, %v2883_v5  ;;  %vm2887_vm5 = vweird.f32 %v6868_v49 }
 0x35b   : > { %3122 = vmatpush.msrb.mxu3 %v3068_v27  ;;  %v2594_v63 = vsel %vm2591_vm4, %v2593_v51, %v2589_v45  ;;  %v2868_v30 = vsub.f32 1.0, %v2867_v26  ;;  %vm2871_vm6 = vweird.f32 %v7728_v36  ;;  %v2875_v58 = vand.u32 2147483647, %v7728_v36  ;;  %vm2888_vm8 = vmor %vm2886_vm1, %vm2887_vm5 }
 0x35c   : > { %v3047_v24 = vmul.f32 %v2594_v63, %v7730_v39  ;;  %v2885_v12 = vadd.f32 %v6868_v49, %v2884_v44  ;;  %v2877_v23 = vand.u32 2147483648, %v7728_v36  ;;  %v2852_v1 = vmul.f32 %v6883_v19, %v6840_v33 }
 0x35d   : > { %vm2891_vm10 = vcmp.eq.f32.partialorder %v2890_v59, 8.507059e+37  ;;  %v2893_v2 = vor.u32 1.1754944e-38, %v2892_v18  ;;  %v2869_v6 = vmul.f32 %v7729_v3, %v2868_v30  ;;  %vm2872_vm7 = vweird.f32 %v7729_v3 }
 0x35e   : > { %3107 = vmatpush.msrb.mxu2 %v3047_v24  ;;  %v2889_v17 = vsel %vm2888_vm8, %v6868_v49, %v2885_v12  ;;  %vm7213_vm11 = vcmp.eq.f32.partialorder %v2875_v58, 8.507059e+37  ;;  %v2853_v55 = vsub.f32 1.0, %v2852_v1  ;;  %vm2857_vm14 = vweird.f32 %v6883_v19  ;;  %vm2873_vm15 = vmor %vm2871_vm6, %vm2872_vm7  ;;  %v3083_v24 = vld [vmem:[%s686_s26] sm:$0x3]  ;;  %v7740_v12 = vld [vmem:[#allocation47_spill] sm:$0xff] }
 0x35f   : > { %v2894_v54 = vsel %vm2891_vm10, %v2893_v2, %v2889_v17  ;;  %v2870_v46 = vadd.f32 %v7729_v3, %v2869_v6  ;;  %v2862_v40 = vand.u32 2147483648, %v6840_v33  ;;  %v2837_v60 = vmul.f32 %v6947_v62, %v6912_v32 }
 0x360   : > { %v3067_v42 = vmul.f32 %v2894_v54, %v7733_v41  ;;  %v2878_v49 = vor.u32 1.1754944e-38, %v2877_v23  ;;  %v2854_v29 = vmul.f32 %v6883_v19, %v2853_v55  ;;  %v2860_v34 = vand.u32 2147483647, %v6840_v33 }
 0x361   : > { %v2874_v9 = vsel %vm2873_vm15, %v7729_v3, %v2870_v46  ;;  %vm2856_vm0 = vweird.f32 %v6840_v33  ;;  %v2863_v16 = vor.u32 1.1754944e-38, %v2862_v40  ;;  %v2838_v7 = vsub.f32 1.0, %v2837_v60  ;;  %v7741_v40 = vld [vmem:[#allocation50_spill] sm:$0xff] }
 0x362   : > { %3123 = vmatpush.msrb.mxu3 %v3067_v42  ;;  %v2879_v37 = vsel %vm7213_vm11, %v2878_v49, %v2874_v9  ;;  %v2855_v53 = vadd.f32 %v6883_v19, %v2854_v29  ;;  %vm2842_vm9 = vweird.f32 %v6947_v62  ;;  %v2847_v31 = vand.u32 2147483648, %v6912_v32  ;;  %vm2858_vm12 = vmor %vm2856_vm0, %vm2857_vm14 }
 0x363   : > { %v3066_v20 = vmul.f32 %v2879_v37, %v7734_v21  ;;  %v2839_v48 = vmul.f32 %v6947_v62, %v2838_v7  ;;  %v2845_v33 = vand.u32 2147483647, %v6912_v32  ;;  %v2822_v50 = vmul.f32 %v6901_v38, %v6853_v15 }
 0x364   : > { %v2859_v10 = vsel %vm2858_vm12, %v6883_v19, %v2855_v53  ;;  %vm2861_vm2 = vcmp.eq.f32.partialorder %v2860_v34, 8.507059e+37  ;;  %vm2841_vm13 = vweird.f32 %v6912_v32  ;;  %vm2826_vm1 = vweird.f32 %v6853_v15 }
 0x365   : > { %3124 = vmatpush.msrb.mxu3 %v3066_v20  ;;  %v2864_v13 = vsel %vm2861_vm2, %v2863_v16, %v2859_v10  ;;  %v2840_v28 = vadd.f32 %v6947_v62, %v2839_v48  ;;  %v2823_v61 = vsub.f32 1.0, %v2822_v50  ;;  %v2830_v35 = vand.u32 2147483647, %v6853_v15  ;;  %vm2843_vm3 = vmor %vm2841_vm13, %vm2842_vm9  ;;  %v3092_v16 = vld [vmem:[#allocation2] sm:$0xff] }
 0x366   : > { %v3065_v0 = vmul.f32 %v2864_v13, %v7735_v11  ;;  %v2848_v47 = vor.u32 1.1754944e-38, %v2847_v31  ;;  %v2832_v19 = vand.u32 2147483648, %v6853_v15  ;;  %v2807_v32 = vmul.f32 %v6954_v8, %v6921_v43 }
 0x367   : > { %v2844_v25 = vsel %vm2843_vm3, %v6947_v62, %v2840_v28  ;;  %vm2846_vm4 = vcmp.eq.f32.partialorder %v2845_v33, 8.507059e+37  ;;  %v2824_v4 = vmul.f32 %v6901_v38, %v2823_v61  ;;  %vm2827_vm5 = vweird.f32 %v6901_v38 }
 0x368   : > { %3125 = vmatpush.msrb.mxu3 %v3065_v0  ;;  %v2849_v57 = vsel %vm2846_vm4, %v2848_v47, %v2844_v25  ;;  %vm7255_vm6 = vcmp.eq.f32.partialorder %v2830_v35, 8.507059e+37  ;;  %v2808_v5 = vsub.f32 1.0, %v2807_v32  ;;  %vm2811_vm8 = vweird.f32 %v6921_v43  ;;  %vm2828_vm10 = vmor %vm2826_vm1, %vm2827_vm5 }
 0x369   : > { %v3064_v27 = vmul.f32 %v2849_v57, %v7738_v52  ;;  %v2825_v59 = vadd.f32 %v6901_v38, %v2824_v4  ;;  %v2817_v62 = vand.u32 2147483648, %v6921_v43  ;;  %v2567_v18 = vmul.f32 %v6989_v56, %v6942_v14 }
 0x36a   : > { %v2833_v36 = vor.u32 1.1754944e-38, %v2832_v19  ;;  %v2809_v3 = vmul.f32 %v6954_v8, %v2808_v5  ;;  %vm2812_vm7 = vweird.f32 %v6954_v8  ;;  %v2815_v26 = vand.u32 2147483647, %v6921_v43 }
 0x36b   : > { %3126 = vmatpush.msrb.mxu3 %v3064_v27  ;;  %v2829_v45 = vsel %vm2828_vm10, %v6901_v38, %v2825_v59  ;;  %v2818_v44 = vor.u32 1.1754944e-38, %v2817_v62  ;;  %v2568_v63 = vsub.f32 1.0, %v2567_v18  ;;  %vm2572_vm11 = vweird.f32 %v6989_v56  ;;  %vm2813_vm14 = vmor %vm2811_vm8, %vm2812_vm7 }
 0x36c   : > { %v2834_v15 = vsel %vm7255_vm6, %v2833_v36, %v2829_v45  ;;  %v2810_v30 = vadd.f32 %v6954_v8, %v2809_v3  ;;  %v2577_v58 = vand.u32 2147483648, %v6942_v14  ;;  %v3078_v39 = vlaneseq }
 0x36d   : > { %v3063_v23 = vmul.f32 %v2834_v15, %v7740_v12  ;;  %v2569_v38 = vmul.f32 %v6989_v56, %v2568_v63  ;;  %v2575_v1 = vand.u32 2147483647, %v6942_v14  ;;  %v3081_v2 = vstv %s3574_s24 }
 0x36e   : > { %v2814_v6 = vsel %vm2813_vm14, %v6954_v8, %v2810_v30  ;;  %vm2816_vm15 = vcmp.eq.f32.partialorder %v2815_v26, 8.507059e+37  ;;  %vm2571_vm0 = vweird.f32 %v6942_v14  ;;  %v3079_v17 = vshrl.u32 %v3078_v39, 7  ;;  %v7742_v14 = vld [vmem:[#allocation55_spill] sm:$0xff] }
 0x36f   : > { %3127 = vmatpush.msrb.mxu3 %v3063_v23  ;;  %v2819_v22 = vsel %vm2816_vm15, %v2818_v44, %v2814_v6  ;;  %v2570_v55 = vadd.f32 %v6989_v56, %v2569_v38  ;;  %v3084_v54 = vperm.slane %v3083_v24, 0  ;;  %v3085_v46 = vperm.slane %v3083_v24, 1  ;;  %vm2573_vm9 = vmor %vm2571_vm0, %vm2572_vm11 }
 0x370   : > { %v3062_v43 = vmul.f32 %v2819_v22, %v7741_v40  ;;  %v2578_v60 = vor.u32 1.1754944e-38, %v2577_v58  ;;  %v3082_v41 = vadd.s32 %v3081_v2, %v3079_v17  ;;  %vm2576_vm12 = vcmp.eq.f32.partialorder %v2575_v1, 8.507059e+37 }
 0x371   : > { %v2574_v42 = vsel %vm2573_vm9, %v6989_v56, %v2570_v55  ;;  %v4482_v29 = vmov 1.0  }
 0x372   : > { %3128 = vmatpush.msrb.mxu3 %v3062_v43  ;;  %v2579_v8 = vsel %vm2576_vm12, %v2578_v60, %v2574_v42  ;;  %vm3087_vm2 = vcmp.eq.s32.totalorder %v3082_v41, %v3085_v46  ;;  %vm3086_vm13 = vcmp.eq.s32.totalorder %v3082_v41, %v3084_v54 }
 0x373   : > { %v3046_v49 = vmul.f32 %v2579_v8, %v7742_v14  ;;  %3578 = vmatmul.msk.f32.vlgmr.msrb.gmra.mxu3 %vm3087_vm2, %v4482_v29 }
 0x375   : > { %3108 = vmatpush.msrb.mxu2 %v3046_v49 }
 0x376   : > { %3577 = vmatmul.msk.f32.vlgmr.msrb.gmra.mxu2 %vm3086_vm13, %v4482_v29 }
 0x3f6   : > { %v3130_v34 = vpop.f32.mrf.mxu3 }
 0x3f9   : > { %v3110_v9 = vpop.f32.mrf.mxu2 }
 0x3fa   : > { %v3131_v7 = vadd.f32 %v3130_v34, %v3110_v9 }
 0x3fc   : > { %v3133_v37 = vadd.f32 %v3131_v7, %v3092_v16 }
 0x3fe   : > { %3134 = vst [vmem:[#allocation2] sm:$0xff] %v3133_v37 }
 0x3ff PF: > { %3137 = sbr.rel (!%p4817_p10) target bundleno = 1355 (0x54b), region = 116  ;;  %v3171_v56 = vld [vmem:[#allocation16 + $0x78] sm:$0xff] (%p4817_p10)  ;;  %v3170_v31 = vld [vmem:[#allocation16 + $0x70] sm:$0xff] (%p4817_p10)  ;;  %v3169_v20 = vld [vmem:[#allocation16 + $0x68] sm:$0xff] (%p4817_p10)  ;;  %s7743_s26 = sld [smem:[#allocation75_spill]] (%p4817_p10)  ;;  %v4483_v14 = vmov (%p4817_p10), 0  }
 0x400   : > { %v3154_v53 = vld [vmem:[#allocation14 + $0x78] sm:$0xff] (%p4817_p10)  ;;  %3172 = vmatpush.msra.mxu0 (%p4817_p10), %v3171_v56  ;;  %v3153_v21 = vld [vmem:[#allocation14 + $0x70] sm:$0xff] (%p4817_p10)  ;;  %v3152_v48 = vld [vmem:[#allocation14 + $0x68] sm:$0xff] (%p4817_p10)  ;;  %4142 = vset.pattern.permute.xlu0 (%p4817_p10), %v4483_v14  ;;  %s7744_s19 = sld [smem:[#allocation77_spill]] (%p4817_p10) }
 0x401   : > { %3192 = vmatpush.msra.mxu1 (%p4817_p10), %v3154_v53  ;;  %v3168_v33 = vld [vmem:[#allocation16 + $0x60] sm:$0xff] (%p4817_p10)  ;;  %v3167_v10 = vld [vmem:[#allocation16 + $0x58] sm:$0xff] (%p4817_p10)  ;;  %v3166_v28 = vld [vmem:[#allocation16 + $0x50] sm:$0xff] (%p4817_p10) }
 0x402   : > { %3173 = vmatpush.msra.mxu0 (%p4817_p10), %v3170_v31  ;;  %v3151_v50 = vld [vmem:[#allocation14 + $0x60] sm:$0xff] (%p4817_p10)  ;;  %v3150_v13 = vld [vmem:[#allocation14 + $0x58] sm:$0xff] (%p4817_p10)  ;;  %v3149_v61 = vld [vmem:[#allocation14 + $0x50] sm:$0xff] (%p4817_p10) }
 0x403   : > { %3193 = vmatpush.msra.mxu1 (%p4817_p10), %v3153_v21  ;;  %v3165_v35 = vld [vmem:[#allocation16 + $0x48] sm:$0xff] (%p4817_p10)  ;;  %v3164_v0 = vld [vmem:[#allocation16 + $0x40] sm:$0xff] (%p4817_p10)  ;;  %v3163_v19 = vld [vmem:[#allocation16 + $0x38] sm:$0xff] (%p4817_p10) }
 0x404   : > { %3174 = vmatpush.msra.mxu0 %v3169_v20  ;;  %v3148_v11 = vld [vmem:[#allocation14 + $0x48] sm:$0xff]  ;;  %v3147_v47 = vld [vmem:[#allocation14 + $0x40] sm:$0xff]  ;;  %v3146_v32 = vld [vmem:[#allocation14 + $0x38] sm:$0xff] }
 0x405   : > { %3194 = vmatpush.msra.mxu1 %v3152_v48  ;;  %v3162_v25 = vld [vmem:[#allocation16 + $0x30] sm:$0xff]  ;;  %v3161_v57 = vld [vmem:[#allocation16 + $0x28] sm:$0xff]  ;;  %v3160_v5 = vld [vmem:[#allocation16 + $0x20] sm:$0xff] }
 0x406   : > { %3175 = vmatpush.msra.mxu0 %v3168_v33  ;;  %v3145_v4 = vld [vmem:[#allocation14 + $0x30] sm:$0xff]  ;;  %v3144_v51 = vld [vmem:[#allocation14 + $0x28] sm:$0xff]  ;;  %v3143_v52 = vld [vmem:[#allocation14 + $0x20] sm:$0xff] }
 0x407   : > { %3195 = vmatpush.msra.mxu1 %v3151_v50  ;;  %v3159_v27 = vld [vmem:[#allocation16 + $0x18] sm:$0xff]  ;;  %v3158_v62 = vld [vmem:[#allocation16 + $0x10] sm:$0xff]  ;;  %v3157_v36 = vld [vmem:[#allocation16 + $0x8] sm:$0xff] }
 0x408   : > { %3176 = vmatpush.msra.mxu0 %v3167_v10  ;;  %v3142_v59 = vld [vmem:[#allocation14 + $0x18] sm:$0xff]  ;;  %v3141_v18 = vld [vmem:[#allocation14 + $0x10] sm:$0xff]  ;;  %v3140_v3 = vld [vmem:[#allocation14 + $0x8] sm:$0xff] }
 0x409   : > { %3196 = vmatpush.msra.mxu1 %v3150_v13  ;;  %v3156_v26 = vld [vmem:[#allocation16] sm:$0xff]  ;;  %v3155_v44 = vld [vmem:[#allocation2] sm:$0xff]  ;;  %v3251_v30 = vld [vmem:[#allocation17 + $0x70] sm:$0xff] }
 0x40a   : > { %3177 = vmatpush.msra.mxu0 %v3166_v28  ;;  %v3139_v45 = vld [vmem:[#allocation14] sm:$0xff]  ;;  %v7298_v63 = vld [vmem:[%s4805_s9] sm:$0xff]  ;;  %v3250_v58 = vld [vmem:[#allocation17 + $0x68] sm:$0xff] }
 0x40b   : > { %3197 = vmatpush.msra.mxu1 %v3149_v61  ;;  %v3252_v15 = vld [vmem:[#allocation17 + $0x78] sm:$0xff]  ;;  %v3249_v39 = vld [vmem:[#allocation17 + $0x60] sm:$0xff]  ;;  %v3247_v12 = vld [vmem:[#allocation17 + $0x50] sm:$0xff] }
 0x40c   : > { %3178 = vmatpush.msra.mxu0 %v3165_v35  ;;  %3257 = vmatpush.msra.mxu2 %v3252_v15  ;;  %v3248_v24 = vld [vmem:[#allocation17 + $0x58] sm:$0xff]  ;;  %v3246_v23 = vld [vmem:[#allocation17 + $0x48] sm:$0xff]  ;;  %v3245_v38 = vld [vmem:[#allocation17 + $0x40] sm:$0xff] }
 0x40d   : > { %3198 = vmatpush.msra.mxu1 %v3148_v11  ;;  %v3244_v1 = vld [vmem:[#allocation17 + $0x38] sm:$0xff]  ;;  %v3243_v2 = vld [vmem:[#allocation17 + $0x30] sm:$0xff]  ;;  %v3242_v6 = vld [vmem:[#allocation17 + $0x28] sm:$0xff] }
 0x40e   : > { %3179 = vmatpush.msra.mxu0 %v3164_v0  ;;  %3258 = vmatpush.msra.mxu2 %v3251_v30  ;;  %v3241_v17 = vld [vmem:[#allocation17 + $0x20] sm:$0xff]  ;;  %v3240_v22 = vld [vmem:[#allocation17 + $0x18] sm:$0xff]  ;;  %v3239_v55 = vld [vmem:[#allocation17 + $0x10] sm:$0xff] }
 0x40f   : > { %3199 = vmatpush.msra.mxu1 %v3147_v47  ;;  %v3238_v54 = vld [vmem:[#allocation17 + $0x8] sm:$0xff]  ;;  %v4143_v46 = vld [vmem:[%s7743_s26] ss:$0 sm:$0xff]  ;;  %v3237_v40 = vld [vmem:[#allocation17] sm:$0xff] }
 0x410   : > { %3180 = vmatpush.msra.mxu0 %v3163_v19  ;;  %3259 = vmatpush.msra.mxu2 %v3250_v58  ;;  %v3278_v8 = vld [vmem:[%s4813_s30] sm:$0xff] }
 0x411   : > { %3200 = vmatpush.msra.mxu1 %v3146_v32  ;;  %3281 = vperm.xlu0 %4142, %v3278_v8   ;;  %v4144_v50 = vld [vmem:[%s7744_s19] ss:$0 sm:$0xff] }
 0x412   : > { %3181 = vmatpush.msra.mxu0 %v3162_v25  ;;  %3260 = vmatpush.msra.mxu2 %v3249_v39 }
 0x413   : > { %3201 = vmatpush.msra.mxu1 %v3145_v4 }
 0x414   : > { %3182 = vmatpush.msra.mxu0 %v3161_v57  ;;  %3261 = vmatpush.msra.mxu2 %v3248_v24 }
 0x415   : > { %3202 = vmatpush.msra.mxu1 %v3144_v51 }
 0x416   : > { %3183 = vmatpush.msra.mxu0 %v3160_v5  ;;  %3262 = vmatpush.msra.mxu2 %v3247_v12 }
 0x417   : > { %3203 = vmatpush.msra.mxu1 %v3143_v52 }
 0x418   : > { %3184 = vmatpush.msra.mxu0 %v3159_v27  ;;  %3263 = vmatpush.msra.mxu2 %v3246_v23 }
 0x419   : > { %3204 = vmatpush.msra.mxu1 %v3142_v59 }
 0x41a   : > { %3185 = vmatpush.msra.mxu0 %v3158_v62  ;;  %3264 = vmatpush.msra.mxu2 %v3245_v38 }
 0x41b   : > { %3205 = vmatpush.msra.mxu1 %v3141_v18 }
 0x41c   : > { %3186 = vmatpush.msra.mxu0 %v3157_v36  ;;  %3265 = vmatpush.msra.mxu2 %v3244_v1 }
 0x41d   : > { %3206 = vmatpush.msra.mxu1 %v3140_v3 }
 0x41e   : > { %3187 = vmatpush.msra.mxu0 %v3156_v26  ;;  %3266 = vmatpush.msra.mxu2 %v3243_v2 }
 0x41f   : > { %3207 = vmatpush.msra.mxu1 %v3139_v45  ;;  %3188 = vmatmul.f32.vlgmr.msra.gmra.mxu0 %v3155_v44 }
 0x420   : > { %3208 = vmatmul.f32.vlgmr.msra.gmra.mxu1 %v7298_v63  ;;  %3267 = vmatpush.msra.mxu2 %v3242_v6 }
 0x422   : > { %3268 = vmatpush.msra.mxu2 %v3241_v17 }
 0x424   : > { %3269 = vmatpush.msra.mxu2 %v3240_v22 }
 0x426   : > { %3270 = vmatpush.msra.mxu2 %v3239_v55 }
 0x428   : > { %3271 = vmatpush.msra.mxu2 %v3238_v54 }
 0x42a   : > { %3272 = vmatpush.msra.mxu2 %v3237_v40 }
 0x483   : > { %v3282_v28 = vpop.permute.xlu0 %3281 }
 0x49c   : > { %v3189_v43 = vpop.f32.mrf.mxu0 }
 0x49d   : > { %v3209_v60 = vpop.f32.mrf.mxu1 }
 0x49e   : > { %v3210_v41 = vadd.f32 %v3209_v60, %v3189_v43 }
 0x4a0   : > { %v3216_v42 = vadd.f32 %v4143_v46, %v3210_v41 }
 0x4a2   : > { %v3579_v49 = vmul.f32 -1.442695, %v3216_v42 }
 0x4a4   : > { %4145 = vpow2.f32 %v3579_v49 }
 0x4aa   : > { %v4146_v29 = vpop.eup %4145 }
 0x4ab   : > { %v3220_v34 = vadd.f32 1.0, %v4146_v29 }
 0x4ad   : > { %4147 = vrcp.f32 %v3220_v34  ;;  %v3232_v37 = vand.u32 2147483648, %v3220_v34  ;;  %v3230_v53 = vand.u32 2147483647, %v3220_v34  ;;  %vm3226_vm3 = vweird.f32 %v3220_v34 }
 0x4af   : > { %v3233_v21 = vor.u32 1.1754944e-38, %v3232_v37  ;;  %vm3231_vm5 = vcmp.eq.f32.partialorder %v3230_v53, 8.507059e+37 }
 0x4b3   : > { %v4148_v9 = vpop.eup %4147 }
 0x4b4   : > { %v3222_v16 = vmul.f32 %v4148_v9, %v3220_v34  ;;  %vm3227_vm1 = vweird.f32 %v4148_v9 }
 0x4b5   : > { %vm3228_vm4 = vmor %vm3226_vm3, %vm3227_vm1 }
 0x4b6   : > { %v3223_v7 = vsub.f32 1.0, %v3222_v16 }
 0x4b8   : > { %v3224_v56 = vmul.f32 %v4148_v9, %v3223_v7 }
 0x4ba   : > { %v3225_v31 = vadd.f32 %v4148_v9, %v3224_v56 }
 0x4bc   : > { %v3229_v20 = vsel %vm3228_vm4, %v4148_v9, %v3225_v31 }
 0x4bd   : > { %v3234_v48 = vsel %vm3231_vm5, %v3233_v21, %v3229_v20 }
 0x4be   : > { %v3236_v33 = vmul.f32 %v3234_v48, %v3216_v42 }
 0x4c0   : > { %3273 = vmatmul.f32.vlgmr.msra.gmra.mxu2 %v3236_v33 }
 0x543   : > { %v3274_v10 = vpop.f32.mrf.mxu2 }
 0x544   : > { %v3275_v13 = vadd.f32 %v4144_v50, %v3274_v10 }
 0x546   : > { %v3277_v61 = vadd.f32 %v3275_v13, %v7298_v63 }
 0x548   : > { %v3284_v35 = vmul.f32 %v3282_v28, %v3277_v61 }
 0x54a   : > { %3285 = vst [vmem:[%s679_s27] sm:$0xff] %v3284_v35 }
 0x54b PF: > { %s3641_s21 = scalar_select %p4638_p5, [#allocation4], [#allocation21] }
 0x54c   : > { %s7774_s29 = smov (!%p4638_p5, %s4627_s29), 0  ;;  %s3300_s3 = sshll.u32 %s679_s27, 4  ;;  %s3301_s3 = int_to_ptr.vmem [resolvable:$true] %s3300_s3 }
 0x54d   : > { %s3294_s25 = sld [smem:[%s3641_s21 + %s7774_s29]]  ;;  %s7747_s14 = sand.u32 1, %s4449_s2  }
 0x54e   : > { %s7746_s22 = sld [smem:[#allocation78_spill]]  ;;  %s3287_s7 = scalar_lea.sflag [#allocation10], %s7747_s14 }
 0x553   : > { %s3581_s13 = sshll.u32 %s3294_s25, 3 }
 0x554   : > { %s3298_s24 = scalar_lea.hbm %s7746_s22, %s3581_s13  ;;  %s4385_s27 = scalar_lea.hbm %s7746_s22, 8 }
 0x555   : > { %s3302_s1 = sshll.u32 %s3298_s24, 4  ;;  %s3303_s1 = int_to_ptr.hbm [resolvable:$true] %s3302_s1 }
 0x556   : > { %s4379_s4 = sshra.s32 %s3303_s1, 4  ;;  %s4380_s4 = int_to_ptr.hbm [resolvable:$true] %s4379_s4 }
 0x557   : > { %s4381_s18 = scalar_lea.hbm %s4380_s4, 8  ;;  %p4386_p12 = scmp.lt.s32.totalorder %s4380_s4, %s7746_s22 }
 0x558   : > { %p4382_p0 = scmp.ne.s32.totalorder %s4380_s4, %s4381_s18  ;;  %p4387_p4 = scmp.lt.s32.totalorder %s4385_s27, %s4381_s18 }
 0x55a   : > { %p4383_p2 = pnand %p4382_p0, %p4638_p5  ;;  %p4388_p13 = por %p4387_p4, %p4386_p12 }
 0x55c   : > { %p4384_p9 = pneg %p4383_p2 }
 0x55e   : > { %p4389_p1 = pnand %p4388_p13, %p4384_p9 }
 0x560   : > { %4392 = shalt.err (!%p4389_p1)
}
 0x561   : > { %3643 = dma.vmem_to_hbm [thread:$0]  (%p4638_p5), %s3301_s3, 128, %s3303_s1, %s3287_s7  }
 0x562 PF: > { %s7748_s9 = sld [smem:[#allocation29_spill]]  ;;  %p7750_p3 = scmp.ge.s32.totalorder %s4469_s28, 2 }
 0x564   : > { %p3668_p6 = pnand %p7750_p3, %p4643_p7 }
 0x566   : > { %p3669_p8 = pneg %p3668_p6 }
 0x568   : > { %s3314_s21 = sand.u32 1, %s7748_s9  }
 0x569   : > { %s3315_s25 = scalar_lea.sflag [#allocation10], %s3314_s21 }
 0x56a   : > { %4440 = dma.done.wait (%p3669_p8), %s3315_s25, 128  }
 0x56b   : > { %4442 = vsyncadd (%p3669_p8), %s3315_s25, 4294967168  ;;  %s7751_s28 = sld [smem:[#allocation33_spill]]  ;;  %s7754_s1 = smov %s4449_s2 }
 0x56c   : > { %s7752_s13 = sld [smem:[#allocation30_spill]]  ;;  %s7755_s2 = smov %s4453_s15 }
 0x56d   : > { %s7753_s27 = sld [smem:[#allocation34_spill]]  ;;  %s7756_s15 = smov %s4742_s16 }
 0x56e   : > { %s7757_s26 = smov %s4461_s12 }
 0x571   : > { %p53_p5 = scmp.ge.s32.totalorder %s7751_s28, 4  }
 0x572   : > { %s7758_s12 = smov %s7752_s13 }
 0x573   :  { %55 = sbr.rel (!%p53_p5) target bundleno = 36 (0x24), region = 166 }
 0x578   :  { %3321 = vsyncpa [#allocation9], 1 }
 0x579   :  { %3323 = vsyncpa [#allocation9 + $0x1], 1 }
 0x57a   :  { %3324 = vsyncpa [#allocation12], 1 }
 0x57b   :  { %3325 = vsyncpa [#allocation15], 1 }
 0x57c   :  { %3326 = vsyncpa [#allocation18], 1 }
 0x57d   :  { %3327 = vsyncpa [#allocation10], 1 }
 0x57e   :  { %3329 = vsyncpa [#allocation10 + $0x1], 1 }

</bundles_post_ra>
